<compile_context>
chip_gen: v7x
topology: tpu7x:2x2x1
jax: 0.10.0
libtpu: 0.0.40
codegen_flags: <defaults>
</compile_context>

<pallas_src>
import numpy as np
import jax
import jax.numpy as jnp
from jax.experimental import pallas as pl
from jax.experimental.pallas import tpu as pltpu

PADDING_IDX = 0


def lm_kernel(emb_ref, msel_ref,
              wi0_ref, wh0f_ref, wh0b_ref, b0_ref,
              wi1_ref, wh1f_ref, wh1b_ref, b1_ref,
              wlin_ref, blin_ref,
              out_ref):
    """4 LSTM directions + final linear for one batch block, all in VMEM."""
    L, NB, _ = emb_ref.shape
    H = wh0f_ref.shape[0]          # W_hh is (H, 4H)
    H4 = 4 * H

    # Validity mask, pre-broadcast to (L, NB, H); compare hoisted out of all loops.
    mb = msel_ref[...] > 0.5

    def lstm_cell(gx_t, h, c, wh):
        # gx_t already holds x @ W_ih + (b_ih + b_hh); only the recurrent matmul
        # stays on the serial path.  PyTorch gate order: i, f, g, o.
        gates = gx_t + jnp.dot(h.astype(wh.dtype), wh,
                               preferred_element_type=jnp.float32)        # (NB, 4H)
        sig = jax.nn.sigmoid(gates)      # full-width: one EUP pass covers i, f, o
        tnh = jnp.tanh(gates)            # full-width: one EUP pass covers g
        i_g = sig[:, 0 * H:1 * H]
        f_g = sig[:, 1 * H:2 * H]
        g_g = tnh[:, 2 * H:3 * H]
        o_g = sig[:, 3 * H:4 * H]
        c_new = f_g * c + i_g * g_g
        h_new = o_g * jnp.tanh(c_new)
        return h_new, c_new

    def run_direction(gx, wh, reverse):
        # gx: python list of L precomputed (NB, 4H) gate inputs.  L is small and
        # static -> fully unrolled so the scheduler sees the whole recurrence.
        h = jnp.zeros((NB, H), jnp.float32)
        c = jnp.zeros((NB, H), jnp.float32)
        outs = [None] * L
        order = range(L - 1, -1, -1) if reverse else range(L)
        for t in order:
            h_new, c_new = lstm_cell(gx[t], h, c, wh)
            m = mb[t]                      # packed-seq semantics: state is frozen
            h = jnp.where(m, h_new, h)     # once t >= length
            c = jnp.where(m, c_new, c)
            outs[t] = h
        return outs, h, c

    # ---- layer 0: hoisted input projection, one (L*NB, E) @ (E, 8H) matmul ----
    emb_flat = jnp.concatenate([emb_ref[t] for t in range(L)], axis=0)     # (L*NB, E) bf16
    xg0 = (jnp.dot(emb_flat, wi0_ref[...], preferred_element_type=jnp.float32)
           + b0_ref[...])                                                  # (L*NB, 8H) f32
    gx0f = [xg0[t * NB:(t + 1) * NB, :H4] for t in range(L)]
    gx0b = [xg0[t * NB:(t + 1) * NB, H4:] for t in range(L)]
    o0f, h0f, c0f = run_direction(gx0f, wh0f_ref[...], reverse=False)
    o0b, h0b, c0b = run_direction(gx0b, wh0b_ref[...], reverse=True)

    # ---- layer 1: input = concat(fwd, bwd) outputs; projection hoisted too ----
    x1 = jnp.concatenate([jnp.concatenate(o0f, axis=0),
                          jnp.concatenate(o0b, axis=0)],
                         axis=1).astype(wi1_ref.dtype)                     # (L*NB, 2H) bf16
    xg1 = (jnp.dot(x1, wi1_ref[...], preferred_element_type=jnp.float32)
           + b1_ref[...])                                                  # (L*NB, 8H) f32
    gx1f = [xg1[t * NB:(t + 1) * NB, :H4] for t in range(L)]
    gx1b = [xg1[t * NB:(t + 1) * NB, H4:] for t in range(L)]
    _, h1f, c1f = run_direction(gx1f, wh1f_ref[...], reverse=False)
    _, h1b, c1b = run_direction(gx1b, wh1b_ref[...], reverse=True)

    # meaning = cat([h[0..3], c[0..3]], dim=1) in PyTorch's (layer, dir) order.
    meaning = jnp.concatenate([h0f, h0b, h1f, h1b, c0f, c0b, c1f, c1b],
                              axis=1).astype(wlin_ref.dtype)               # (NB, 8H)
    out_ref[...] = (jnp.dot(meaning, wlin_ref[...],
                            preferred_element_type=jnp.float32)
                    + blin_ref[...])                                       # (NB, Vpad)


def autoreg_lm_forward(embedded_tm, msel, kp):
    """embedded_tm: (L, Npad, E) bf16 time-major; msel: (L, Npad, H) f32 validity
    mask (pre-broadcast).  Returns lane-padded logits (Npad, Vpad) f32."""
    L, Npad, E = embedded_tm.shape
    H = kp["wh0f"].shape[0]
    Vpad = kp["wlin"].shape[1]
    NB = Npad if Npad <= 256 else 256
    assert Npad % NB == 0
    grid = (Npad // NB,)

    def bspec(shape):          # batch-blocked, time-major 3-D inputs
        return pl.BlockSpec(shape, lambda b: (0, b, 0))

    def wspec(shape):          # VMEM-resident (un-blocked) weights
        return pl.BlockSpec(shape, lambda b: (0, 0))

    in_specs = [
        bspec((L, NB, E)),                     # embedded (time-major)
        bspec((L, NB, H)),                     # mask (pre-broadcast)
        wspec(kp["wi0"].shape), wspec(kp["wh0f"].shape), wspec(kp["wh0b"].shape),
        wspec(kp["b0"].shape),
        wspec(kp["wi1"].shape), wspec(kp["wh1f"].shape), wspec(kp["wh1b"].shape),
        wspec(kp["b1"].shape),
        wspec(kp["wlin"].shape), wspec(kp["blin"].shape),
    ]
    return pl.pallas_call(
        lm_kernel,
        out_shape=jax.ShapeDtypeStruct((Npad, Vpad), jnp.float32),
        grid=grid,
        in_specs=in_specs,
        out_specs=pl.BlockSpec((NB, Vpad), lambda b: (b, 0)),
        compiler_params=pltpu.CompilerParams(dimension_semantics=("parallel",)),
    )(embedded_tm, msel,
      kp["wi0"], kp["wh0f"], kp["wh0b"], kp["b0"],
      kp["wi1"], kp["wh1f"], kp["wh1b"], kp["b1"],
      kp["wlin"], kp["blin"])


def init_params(key, vocab, hidden):
    """Deterministic synthetic init matching the PyTorch module's shapes
    (weights already transposed to (in_features, out_features))."""
    H, V = hidden, vocab
    k_lstm = 1.0 / np.sqrt(H)
    k_lin = 1.0 / np.sqrt(8 * H)

    def u(k, shape, scale):
        return jax.random.uniform(k, shape, jnp.float32, -scale, scale)

    keys = jax.random.split(key, 32)
    it = iter(range(32))

    emb_table = jax.random.normal(keys[next(it)], (V, H), jnp.float32)
    emb_table = emb_table.at[PADDING_IDX].set(0.0)          # padding_idx row = 0

    def lstm_dir(in_dim):
        wi = u(keys[next(it)], (in_dim, 4 * H), k_lstm)      # W_ih^T
        wh = u(keys[next(it)], (H, 4 * H), k_lstm)           # W_hh^T
        b = u(keys[next(it)], (1, 4 * H), k_lstm) + u(keys[next(it)], (1, 4 * H), k_lstm)
        return wi, wh, b

    params = {}
    params["wi0f"], params["wh0f"], params["b0f"] = lstm_dir(H)       # layer0 fwd
    params["wi0b"], params["wh0b"], params["b0b"] = lstm_dir(H)       # layer0 bwd
    params["wi1f"], params["wh1f"], params["b1f"] = lstm_dir(2 * H)   # layer1 fwd
    params["wi1b"], params["wh1b"], params["b1b"] = lstm_dir(2 * H)   # layer1 bwd
    params["wlin"] = u(keys[next(it)], (8 * H, V), k_lin)             # Linear W^T
    params["blin"] = u(keys[next(it)], (1, V), k_lin)
    return emb_table, params


def prepare_kernel_params(params, H, V):
    """Stack fwd/bwd direction weights to 256-wide projections, pad the output
    projection to 128 lanes, cast MXU operands to bf16 (biases stay f32)."""
    Vpad = ((V + 127) // 128) * 128

    def stack_dirs(wf, wb):
        return jnp.concatenate([wf, wb], axis=1)

    kp = {}
    kp["wi0"] = stack_dirs(params["wi0f"], params["wi0b"]).astype(jnp.bfloat16)  # (E, 8H)
    kp["b0"] = stack_dirs(params["b0f"], params["b0b"])                          # (1, 8H)
    kp["wh0f"] = params["wh0f"].astype(jnp.bfloat16)                             # (H, 4H)
    kp["wh0b"] = params["wh0b"].astype(jnp.bfloat16)
    kp["wi1"] = stack_dirs(params["wi1f"], params["wi1b"]).astype(jnp.bfloat16)  # (2H, 8H)
    kp["b1"] = stack_dirs(params["b1f"], params["b1b"])
    kp["wh1f"] = params["wh1f"].astype(jnp.bfloat16)
    kp["wh1b"] = params["wh1b"].astype(jnp.bfloat16)
    wlin = jnp.zeros((8 * H, Vpad), jnp.float32).at[:, :V].set(params["wlin"])
    blin = jnp.zeros((1, Vpad), jnp.float32).at[:, :V].set(params["blin"])
    kp["wlin"] = wlin.astype(jnp.bfloat16)                                       # (8H, Vpad)
    kp["blin"] = blin                                                            # (1, Vpad)
    return kp


def split_and_flatten(seqs):
    """Host-side reimplementation of split_seqs + flatten (data-dependent filter)."""
    B, L = seqs.shape
    contexts, targets = [], []
    for b in range(B):
        for i in range(1, L):
            ctx = np.zeros(L, np.int32)
            ctx[:i] = seqs[b, :i]
            contexts.append(ctx)
            targets.append(int(seqs[b, i]))
    contexts = np.stack(contexts)                    # (B*(L-1), L)
    targets = np.asarray(targets, np.int32)          # (B*(L-1),)
    keep = targets != PADDING_IDX
    return contexts[keep], targets[keep]


if __name__ == "__main__":
    B, L = 2, 8        # batch of input sequences, sequence length
    V = 16             # input_size (vocab)
    H = 32             # hidden_size == embedding_size

    key = jax.random.PRNGKey(0)
    key_data, key_params = jax.random.split(key)

    # token ids in [1, V): no PADDING_IDX tokens inside the sequences themselves
    seqs = np.asarray(jax.random.randint(key_data, (B, L), 1, V), dtype=np.int32)

    contexts, targets = split_and_flatten(seqs)                  # (N, L), (N,)
    N = contexts.shape[0]
    lengths = (contexts != PADDING_IDX).sum(axis=1)              # per-context valid length

    emb_table, params = init_params(key_params, V, H)
    kp = prepare_kernel_params(params, H, V)

    # pad batch to a multiple of 16 (bf16 sublane tile); batch block <= 256 rows
    NB = 256 if N > 256 else ((N + 15) // 16) * 16
    Npad = ((N + NB - 1) // NB) * NB

    embedded = emb_table[jnp.asarray(contexts)]                  # (N, L, E) f32 gather (glue)
    embedded = jnp.pad(embedded, ((0, Npad - N), (0, 0), (0, 0)))
    embedded_tm = jnp.transpose(embedded, (1, 0, 2)).astype(jnp.bfloat16)   # (L, Npad, E)

    mask = (np.arange(L)[None, :] < lengths[:, None]).astype(np.float32)    # (N, L)
    mask = np.pad(mask, ((0, Npad - N), (0, 0)))
    msel = np.ascontiguousarray(
        np.broadcast_to(mask.T[:, :, None], (L, Npad, H))).astype(np.float32)
    msel = jnp.asarray(msel)                                     # (L, Npad, H)

    logits = autoreg_lm_forward(embedded_tm, msel, kp)[:N, :V]   # == linear_out
    target_flat = jnp.asarray(targets)                           # == target_flat

    jax.block_until_ready((logits, target_flat))
    print("KERNEL_OK")
</pallas_src>

<mosaic_0001>
module attributes {stable_mosaic.version = 11 : i64} {
  func.func @lm_kernel(%arg0: i32, %arg1: memref<8x16x32xbf16, #tpu.memory_space<vmem>>, %arg2: memref<8x16x32xf32, #tpu.memory_space<vmem>>, %arg3: memref<32x256xbf16, #tpu.memory_space<vmem>>, %arg4: memref<32x128xbf16, #tpu.memory_space<vmem>>, %arg5: memref<32x128xbf16, #tpu.memory_space<vmem>>, %arg6: memref<1x256xf32, #tpu.memory_space<vmem>>, %arg7: memref<64x256xbf16, #tpu.memory_space<vmem>>, %arg8: memref<32x128xbf16, #tpu.memory_space<vmem>>, %arg9: memref<32x128xbf16, #tpu.memory_space<vmem>>, %arg10: memref<1x256xf32, #tpu.memory_space<vmem>>, %arg11: memref<256x128xbf16, #tpu.memory_space<vmem>>, %arg12: memref<1x128xf32, #tpu.memory_space<vmem>>, %arg13: memref<16x128xf32, #tpu.memory_space<vmem>>) attributes {dimension_semantics = [#tpu.dimension_semantics<parallel>], iteration_bounds = array<i64: 1>, scalar_prefetch = 0 : i64, scratch_operands = 0 : i64, tpu.core_type = #tpu.core_type<tc>, window_params = [{transform_indices = @transform_0, window_bounds = array<i64: 8, 16, 32>}, {transform_indices = @transform_1, window_bounds = array<i64: 8, 16, 32>}, {pipeline_mode = #tpu.pipeline_mode<synchronous>, transform_indices = @transform_2, window_bounds = array<i64: 32, 256>}, {pipeline_mode = #tpu.pipeline_mode<synchronous>, transform_indices = @transform_3, window_bounds = array<i64: 32, 128>}, {pipeline_mode = #tpu.pipeline_mode<synchronous>, transform_indices = @transform_4, window_bounds = array<i64: 32, 128>}, {pipeline_mode = #tpu.pipeline_mode<synchronous>, transform_indices = @transform_5, window_bounds = array<i64: 1, 256>}, {pipeline_mode = #tpu.pipeline_mode<synchronous>, transform_indices = @transform_6, window_bounds = array<i64: 64, 256>}, {pipeline_mode = #tpu.pipeline_mode<synchronous>, transform_indices = @transform_7, window_bounds = array<i64: 32, 128>}, {pipeline_mode = #tpu.pipeline_mode<synchronous>, transform_indices = @transform_8, window_bounds = array<i64: 32, 128>}, {pipeline_mode = #tpu.pipeline_mode<synchronous>, transform_indices = @transform_9, window_bounds = array<i64: 1, 256>}, {pipeline_mode = #tpu.pipeline_mode<synchronous>, transform_indices = @transform_10, window_bounds = array<i64: 256, 128>}, {pipeline_mode = #tpu.pipeline_mode<synchronous>, transform_indices = @transform_11, window_bounds = array<i64: 1, 128>}, {transform_indices = @transform_12, window_bounds = array<i64: 16, 128>}]} {
    %c0 = arith.constant 0 : index
    %c0_0 = arith.constant 0 : index
    %c0_1 = arith.constant 0 : index
    %0 = vector.load %arg2[%c0, %c0_0, %c0_1] : memref<8x16x32xf32, #tpu.memory_space<vmem>>, vector<8x16x32xf32>
    %cst = arith.constant 5.000000e-01 : f32
    %1 = vector.broadcast %cst : f32 to vector<8x16x32xf32>
    %2 = arith.cmpf ogt, %0, %1 : vector<8x16x32xf32>
    %c0_2 = arith.constant 0 : index
    %c0_3 = arith.constant 0 : index
    %c0_4 = arith.constant 0 : index
    %3 = vector.load %arg1[%c0_2, %c0_3, %c0_4] : memref<8x16x32xbf16, #tpu.memory_space<vmem>>, vector<1x16x32xbf16>
    %4 = vector.shape_cast %3 : vector<1x16x32xbf16> to vector<16x32xbf16>
    %c1 = arith.constant 1 : index
    %c0_5 = arith.constant 0 : index
    %c0_6 = arith.constant 0 : index
    %5 = vector.load %arg1[%c1, %c0_5, %c0_6] : memref<8x16x32xbf16, #tpu.memory_space<vmem>>, vector<1x16x32xbf16>
    %6 = vector.shape_cast %5 : vector<1x16x32xbf16> to vector<16x32xbf16>
    %c2 = arith.constant 2 : index
    %c0_7 = arith.constant 0 : index
    %c0_8 = arith.constant 0 : index
    %7 = vector.load %arg1[%c2, %c0_7, %c0_8] : memref<8x16x32xbf16, #tpu.memory_space<vmem>>, vector<1x16x32xbf16>
    %8 = vector.shape_cast %7 : vector<1x16x32xbf16> to vector<16x32xbf16>
    %c3 = arith.constant 3 : index
    %c0_9 = arith.constant 0 : index
    %c0_10 = arith.constant 0 : index
    %9 = vector.load %arg1[%c3, %c0_9, %c0_10] : memref<8x16x32xbf16, #tpu.memory_space<vmem>>, vector<1x16x32xbf16>
    %10 = vector.shape_cast %9 : vector<1x16x32xbf16> to vector<16x32xbf16>
    %c4 = arith.constant 4 : index
    %c0_11 = arith.constant 0 : index
    %c0_12 = arith.constant 0 : index
    %11 = vector.load %arg1[%c4, %c0_11, %c0_12] : memref<8x16x32xbf16, #tpu.memory_space<vmem>>, vector<1x16x32xbf16>
    %12 = vector.shape_cast %11 : vector<1x16x32xbf16> to vector<16x32xbf16>
    %c5 = arith.constant 5 : index
    %c0_13 = arith.constant 0 : index
    %c0_14 = arith.constant 0 : index
    %13 = vector.load %arg1[%c5, %c0_13, %c0_14] : memref<8x16x32xbf16, #tpu.memory_space<vmem>>, vector<1x16x32xbf16>
    %14 = vector.shape_cast %13 : vector<1x16x32xbf16> to vector<16x32xbf16>
    %c6 = arith.constant 6 : index
    %c0_15 = arith.constant 0 : index
    %c0_16 = arith.constant 0 : index
    %15 = vector.load %arg1[%c6, %c0_15, %c0_16] : memref<8x16x32xbf16, #tpu.memory_space<vmem>>, vector<1x16x32xbf16>
    %16 = vector.shape_cast %15 : vector<1x16x32xbf16> to vector<16x32xbf16>
    %c7 = arith.constant 7 : index
    %c0_17 = arith.constant 0 : index
    %c0_18 = arith.constant 0 : index
    %17 = vector.load %arg1[%c7, %c0_17, %c0_18] : memref<8x16x32xbf16, #tpu.memory_space<vmem>>, vector<1x16x32xbf16>
    %18 = vector.shape_cast %17 : vector<1x16x32xbf16> to vector<16x32xbf16>
    %19 = tpu.concatenate %4, %6, %8, %10, %12, %14, %16, %18 in 0 : vector<16x32xbf16>, vector<16x32xbf16>, vector<16x32xbf16>, vector<16x32xbf16>, vector<16x32xbf16>, vector<16x32xbf16>, vector<16x32xbf16>, vector<16x32xbf16> -> vector<128x32xbf16>
    %c0_19 = arith.constant 0 : index
    %c0_20 = arith.constant 0 : index
    %20 = vector.load %arg3[%c0_19, %c0_20] : memref<32x256xbf16, #tpu.memory_space<vmem>>, vector<32x256xbf16>
    %cst_21 = arith.constant dense<0.000000e+00> : vector<128x256xf32>
    %21 = tpu.matmul %19, %20, %cst_21 {dimension_numbers = #tpu.dot_dimension_numbers<[1], [0], [0], [1], [0, 0, 1, 1], [], []>} : vector<128x32xbf16>, vector<32x256xbf16>, vector<128x256xf32> -> vector<128x256xf32>
    %c0_22 = arith.constant 0 : index
    %c0_23 = arith.constant 0 : index
    %22 = vector.load %arg6[%c0_22, %c0_23] : memref<1x256xf32, #tpu.memory_space<vmem>>, vector<1x256xf32>
    %23 = vector.broadcast %22 : vector<1x256xf32> to vector<128x256xf32>
    %24 = arith.addf %21, %23 : vector<128x256xf32>
    %25 = vector.extract_strided_slice %24 {offsets = [0, 0], sizes = [16, 128], strides = [1, 1]} : vector<128x256xf32> to vector<16x128xf32>
    %26 = vector.extract_strided_slice %24 {offsets = [16, 0], sizes = [16, 128], strides = [1, 1]} : vector<128x256xf32> to vector<16x128xf32>
    %27 = vector.extract_strided_slice %24 {offsets = [32, 0], sizes = [16, 128], strides = [1, 1]} : vector<128x256xf32> to vector<16x128xf32>
    %28 = vector.extract_strided_slice %24 {offsets = [48, 0], sizes = [16, 128], strides = [1, 1]} : vector<128x256xf32> to vector<16x128xf32>
    %29 = vector.extract_strided_slice %24 {offsets = [64, 0], sizes = [16, 128], strides = [1, 1]} : vector<128x256xf32> to vector<16x128xf32>
    %30 = vector.extract_strided_slice %24 {offsets = [80, 0], sizes = [16, 128], strides = [1, 1]} : vector<128x256xf32> to vector<16x128xf32>
    %31 = vector.extract_strided_slice %24 {offsets = [96, 0], sizes = [16, 128], strides = [1, 1]} : vector<128x256xf32> to vector<16x128xf32>
    %32 = vector.extract_strided_slice %24 {offsets = [112, 0], sizes = [16, 128], strides = [1, 1]} : vector<128x256xf32> to vector<16x128xf32>
    %33 = vector.extract_strided_slice %24 {offsets = [0, 128], sizes = [16, 128], strides = [1, 1]} : vector<128x256xf32> to vector<16x128xf32>
    %34 = vector.extract_strided_slice %24 {offsets = [16, 128], sizes = [16, 128], strides = [1, 1]} : vector<128x256xf32> to vector<16x128xf32>
    %35 = vector.extract_strided_slice %24 {offsets = [32, 128], sizes = [16, 128], strides = [1, 1]} : vector<128x256xf32> to vector<16x128xf32>
    %36 = vector.extract_strided_slice %24 {offsets = [48, 128], sizes = [16, 128], strides = [1, 1]} : vector<128x256xf32> to vector<16x128xf32>
    %37 = vector.extract_strided_slice %24 {offsets = [64, 128], sizes = [16, 128], strides = [1, 1]} : vector<128x256xf32> to vector<16x128xf32>
    %38 = vector.extract_strided_slice %24 {offsets = [80, 128], sizes = [16, 128], strides = [1, 1]} : vector<128x256xf32> to vector<16x128xf32>
    %39 = vector.extract_strided_slice %24 {offsets = [96, 128], sizes = [16, 128], strides = [1, 1]} : vector<128x256xf32> to vector<16x128xf32>
    %40 = vector.extract_strided_slice %24 {offsets = [112, 128], sizes = [16, 128], strides = [1, 1]} : vector<128x256xf32> to vector<16x128xf32>
    %c0_24 = arith.constant 0 : index
    %c0_25 = arith.constant 0 : index
    %41 = vector.load %arg4[%c0_24, %c0_25] : memref<32x128xbf16, #tpu.memory_space<vmem>>, vector<32x128xbf16>
    %cst_26 = arith.constant 0.000000e+00 : f32
    %42 = vector.broadcast %cst_26 : f32 to vector<16x32xf32>
    %cst_27 = arith.constant 0.000000e+00 : f32
    %43 = vector.broadcast %cst_27 : f32 to vector<16x32xf32>
    %44 = arith.truncf %42 : vector<16x32xf32> to vector<16x32xbf16>
    %cst_28 = arith.constant dense<0.000000e+00> : vector<16x128xf32>
    %45 = tpu.matmul %44, %41, %cst_28 {dimension_numbers = #tpu.dot_dimension_numbers<[1], [0], [0], [1], [0, 0, 1, 1], [], []>} : vector<16x32xbf16>, vector<32x128xbf16>, vector<16x128xf32> -> vector<16x128xf32>
    %46 = arith.addf %25, %45 : vector<16x128xf32>
    %47 = arith.negf %46 : vector<16x128xf32>
    %48 = math.exp %47 : vector<16x128xf32>
    %cst_29 = arith.constant 1.000000e+00 : f32
    %49 = vector.broadcast %cst_29 : f32 to vector<16x128xf32>
    %50 = arith.addf %49, %48 : vector<16x128xf32>
    %51 = arith.divf %49, %50 : vector<16x128xf32>
    %52 = math.tanh %46 : vector<16x128xf32>
    %53 = vector.extract_strided_slice %51 {offsets = [0, 0], sizes = [16, 32], strides = [1, 1]} : vector<16x128xf32> to vector<16x32xf32>
    %54 = vector.extract_strided_slice %51 {offsets = [0, 32], sizes = [16, 32], strides = [1, 1]} : vector<16x128xf32> to vector<16x32xf32>
    %55 = vector.extract_strided_slice %52 {offsets = [0, 64], sizes = [16, 32], strides = [1, 1]} : vector<16x128xf32> to vector<16x32xf32>
    %56 = vector.extract_strided_slice %51 {offsets = [0, 96], sizes = [16, 32], strides = [1, 1]} : vector<16x128xf32> to vector<16x32xf32>
    %57 = arith.mulf %54, %43 : vector<16x32xf32>
    %58 = arith.mulf %53, %55 : vector<16x32xf32>
    %59 = arith.addf %57, %58 : vector<16x32xf32>
    %60 = math.tanh %59 : vector<16x32xf32>
    %61 = arith.mulf %56, %60 : vector<16x32xf32>
    %62 = vector.extract_strided_slice %2 {offsets = [0, 0, 0], sizes = [1, 16, 32], strides = [1, 1, 1]} : vector<8x16x32xi1> to vector<1x16x32xi1>
    %63 = vector.shape_cast %62 : vector<1x16x32xi1> to vector<16x32xi1>
    %64 = arith.select %63, %61, %42 : vector<16x32xi1>, vector<16x32xf32>
    %65 = arith.select %63, %59, %43 : vector<16x32xi1>, vector<16x32xf32>
    %66 = arith.truncf %64 : vector<16x32xf32> to vector<16x32xbf16>
    %cst_30 = arith.constant dense<0.000000e+00> : vector<16x128xf32>
    %67 = tpu.matmul %66, %41, %cst_30 {dimension_numbers = #tpu.dot_dimension_numbers<[1], [0], [0], [1], [0, 0, 1, 1], [], []>} : vector<16x32xbf16>, vector<32x128xbf16>, vector<16x128xf32> -> vector<16x128xf32>
    %68 = arith.addf %26, %67 : vector<16x128xf32>
    %69 = arith.negf %68 : vector<16x128xf32>
    %70 = math.exp %69 : vector<16x128xf32>
    %cst_31 = arith.constant 1.000000e+00 : f32
    %71 = vector.broadcast %cst_31 : f32 to vector<16x128xf32>
    %72 = arith.addf %71, %70 : vector<16x128xf32>
    %73 = arith.divf %71, %72 : vector<16x128xf32>
    %74 = math.tanh %68 : vector<16x128xf32>
    %75 = vector.extract_strided_slice %73 {offsets = [0, 0], sizes = [16, 32], strides = [1, 1]} : vector<16x128xf32> to vector<16x32xf32>
    %76 = vector.extract_strided_slice %73 {offsets = [0, 32], sizes = [16, 32], strides = [1, 1]} : vector<16x128xf32> to vector<16x32xf32>
    %77 = vector.extract_strided_slice %74 {offsets = [0, 64], sizes = [16, 32], strides = [1, 1]} : vector<16x128xf32> to vector<16x32xf32>
    %78 = vector.extract_strided_slice %73 {offsets = [0, 96], sizes = [16, 32], strides = [1, 1]} : vector<16x128xf32> to vector<16x32xf32>
    %79 = arith.mulf %76, %65 : vector<16x32xf32>
    %80 = arith.mulf %75, %77 : vector<16x32xf32>
    %81 = arith.addf %79, %80 : vector<16x32xf32>
    %82 = math.tanh %81 : vector<16x32xf32>
    %83 = arith.mulf %78, %82 : vector<16x32xf32>
    %84 = vector.extract_strided_slice %2 {offsets = [1, 0, 0], sizes = [1, 16, 32], strides = [1, 1, 1]} : vector<8x16x32xi1> to vector<1x16x32xi1>
    %85 = vector.shape_cast %84 : vector<1x16x32xi1> to vector<16x32xi1>
    %86 = arith.select %85, %83, %64 : vector<16x32xi1>, vector<16x32xf32>
    %87 = arith.select %85, %81, %65 : vector<16x32xi1>, vector<16x32xf32>
    %88 = arith.truncf %86 : vector<16x32xf32> to vector<16x32xbf16>
    %cst_32 = arith.constant dense<0.000000e+00> : vector<16x128xf32>
    %89 = tpu.matmul %88, %41, %cst_32 {dimension_numbers = #tpu.dot_dimension_numbers<[1], [0], [0], [1], [0, 0, 1, 1], [], []>} : vector<16x32xbf16>, vector<32x128xbf16>, vector<16x128xf32> -> vector<16x128xf32>
    %90 = arith.addf %27, %89 : vector<16x128xf32>
    %91 = arith.negf %90 : vector<16x128xf32>
    %92 = math.exp %91 : vector<16x128xf32>
    %cst_33 = arith.constant 1.000000e+00 : f32
    %93 = vector.broadcast %cst_33 : f32 to vector<16x128xf32>
    %94 = arith.addf %93, %92 : vector<16x128xf32>
    %95 = arith.divf %93, %94 : vector<16x128xf32>
    %96 = math.tanh %90 : vector<16x128xf32>
    %97 = vector.extract_strided_slice %95 {offsets = [0, 0], sizes = [16, 32], strides = [1, 1]} : vector<16x128xf32> to vector<16x32xf32>
    %98 = vector.extract_strided_slice %95 {offsets = [0, 32], sizes = [16, 32], strides = [1, 1]} : vector<16x128xf32> to vector<16x32xf32>
    %99 = vector.extract_strided_slice %96 {offsets = [0, 64], sizes = [16, 32], strides = [1, 1]} : vector<16x128xf32> to vector<16x32xf32>
    %100 = vector.extract_strided_slice %95 {offsets = [0, 96], sizes = [16, 32], strides = [1, 1]} : vector<16x128xf32> to vector<16x32xf32>
    %101 = arith.mulf %98, %87 : vector<16x32xf32>
    %102 = arith.mulf %97, %99 : vector<16x32xf32>
    %103 = arith.addf %101, %102 : vector<16x32xf32>
    %104 = math.tanh %103 : vector<16x32xf32>
    %105 = arith.mulf %100, %104 : vector<16x32xf32>
    %106 = vector.extract_strided_slice %2 {offsets = [2, 0, 0], sizes = [1, 16, 32], strides = [1, 1, 1]} : vector<8x16x32xi1> to vector<1x16x32xi1>
    %107 = vector.shape_cast %106 : vector<1x16x32xi1> to vector<16x32xi1>
    %108 = arith.select %107, %105, %86 : vector<16x32xi1>, vector<16x32xf32>
    %109 = arith.select %107, %103, %87 : vector<16x32xi1>, vector<16x32xf32>
    %110 = arith.truncf %108 : vector<16x32xf32> to vector<16x32xbf16>
    %cst_34 = arith.constant dense<0.000000e+00> : vector<16x128xf32>
    %111 = tpu.matmul %110, %41, %cst_34 {dimension_numbers = #tpu.dot_dimension_numbers<[1], [0], [0], [1], [0, 0, 1, 1], [], []>} : vector<16x32xbf16>, vector<32x128xbf16>, vector<16x128xf32> -> vector<16x128xf32>
    %112 = arith.addf %28, %111 : vector<16x128xf32>
    %113 = arith.negf %112 : vector<16x128xf32>
    %114 = math.exp %113 : vector<16x128xf32>
    %cst_35 = arith.constant 1.000000e+00 : f32
    %115 = vector.broadcast %cst_35 : f32 to vector<16x128xf32>
    %116 = arith.addf %115, %114 : vector<16x128xf32>
    %117 = arith.divf %115, %116 : vector<16x128xf32>
    %118 = math.tanh %112 : vector<16x128xf32>
    %119 = vector.extract_strided_slice %117 {offsets = [0, 0], sizes = [16, 32], strides = [1, 1]} : vector<16x128xf32> to vector<16x32xf32>
    %120 = vector.extract_strided_slice %117 {offsets = [0, 32], sizes = [16, 32], strides = [1, 1]} : vector<16x128xf32> to vector<16x32xf32>
    %121 = vector.extract_strided_slice %118 {offsets = [0, 64], sizes = [16, 32], strides = [1, 1]} : vector<16x128xf32> to vector<16x32xf32>
    %122 = vector.extract_strided_slice %117 {offsets = [0, 96], sizes = [16, 32], strides = [1, 1]} : vector<16x128xf32> to vector<16x32xf32>
    %123 = arith.mulf %120, %109 : vector<16x32xf32>
    %124 = arith.mulf %119, %121 : vector<16x32xf32>
    %125 = arith.addf %123, %124 : vector<16x32xf32>
    %126 = math.tanh %125 : vector<16x32xf32>
    %127 = arith.mulf %122, %126 : vector<16x32xf32>
    %128 = vector.extract_strided_slice %2 {offsets = [3, 0, 0], sizes = [1, 16, 32], strides = [1, 1, 1]} : vector<8x16x32xi1> to vector<1x16x32xi1>
    %129 = vector.shape_cast %128 : vector<1x16x32xi1> to vector<16x32xi1>
    %130 = arith.select %129, %127, %108 : vector<16x32xi1>, vector<16x32xf32>
    %131 = arith.select %129, %125, %109 : vector<16x32xi1>, vector<16x32xf32>
    %132 = arith.truncf %130 : vector<16x32xf32> to vector<16x32xbf16>
    %cst_36 = arith.constant dense<0.000000e+00> : vector<16x128xf32>
    %133 = tpu.matmul %132, %41, %cst_36 {dimension_numbers = #tpu.dot_dimension_numbers<[1], [0], [0], [1], [0, 0, 1, 1], [], []>} : vector<16x32xbf16>, vector<32x128xbf16>, vector<16x128xf32> -> vector<16x128xf32>
    %134 = arith.addf %29, %133 : vector<16x128xf32>
    %135 = arith.negf %134 : vector<16x128xf32>
    %136 = math.exp %135 : vector<16x128xf32>
    %cst_37 = arith.constant 1.000000e+00 : f32
    %137 = vector.broadcast %cst_37 : f32 to vector<16x128xf32>
    %138 = arith.addf %137, %136 : vector<16x128xf32>
    %139 = arith.divf %137, %138 : vector<16x128xf32>
    %140 = math.tanh %134 : vector<16x128xf32>
    %141 = vector.extract_strided_slice %139 {offsets = [0, 0], sizes = [16, 32], strides = [1, 1]} : vector<16x128xf32> to vector<16x32xf32>
    %142 = vector.extract_strided_slice %139 {offsets = [0, 32], sizes = [16, 32], strides = [1, 1]} : vector<16x128xf32> to vector<16x32xf32>
    %143 = vector.extract_strided_slice %140 {offsets = [0, 64], sizes = [16, 32], strides = [1, 1]} : vector<16x128xf32> to vector<16x32xf32>
    %144 = vector.extract_strided_slice %139 {offsets = [0, 96], sizes = [16, 32], strides = [1, 1]} : vector<16x128xf32> to vector<16x32xf32>
    %145 = arith.mulf %142, %131 : vector<16x32xf32>
    %146 = arith.mulf %141, %143 : vector<16x32xf32>
    %147 = arith.addf %145, %146 : vector<16x32xf32>
    %148 = math.tanh %147 : vector<16x32xf32>
    %149 = arith.mulf %144, %148 : vector<16x32xf32>
    %150 = vector.extract_strided_slice %2 {offsets = [4, 0, 0], sizes = [1, 16, 32], strides = [1, 1, 1]} : vector<8x16x32xi1> to vector<1x16x32xi1>
    %151 = vector.shape_cast %150 : vector<1x16x32xi1> to vector<16x32xi1>
    %152 = arith.select %151, %149, %130 : vector<16x32xi1>, vector<16x32xf32>
    %153 = arith.select %151, %147, %131 : vector<16x32xi1>, vector<16x32xf32>
    %154 = arith.truncf %152 : vector<16x32xf32> to vector<16x32xbf16>
    %cst_38 = arith.constant dense<0.000000e+00> : vector<16x128xf32>
    %155 = tpu.matmul %154, %41, %cst_38 {dimension_numbers = #tpu.dot_dimension_numbers<[1], [0], [0], [1], [0, 0, 1, 1], [], []>} : vector<16x32xbf16>, vector<32x128xbf16>, vector<16x128xf32> -> vector<16x128xf32>
    %156 = arith.addf %30, %155 : vector<16x128xf32>
    %157 = arith.negf %156 : vector<16x128xf32>
    %158 = math.exp %157 : vector<16x128xf32>
    %cst_39 = arith.constant 1.000000e+00 : f32
    %159 = vector.broadcast %cst_39 : f32 to vector<16x128xf32>
    %160 = arith.addf %159, %158 : vector<16x128xf32>
    %161 = arith.divf %159, %160 : vector<16x128xf32>
    %162 = math.tanh %156 : vector<16x128xf32>
    %163 = vector.extract_strided_slice %161 {offsets = [0, 0], sizes = [16, 32], strides = [1, 1]} : vector<16x128xf32> to vector<16x32xf32>
    %164 = vector.extract_strided_slice %161 {offsets = [0, 32], sizes = [16, 32], strides = [1, 1]} : vector<16x128xf32> to vector<16x32xf32>
    %165 = vector.extract_strided_slice %162 {offsets = [0, 64], sizes = [16, 32], strides = [1, 1]} : vector<16x128xf32> to vector<16x32xf32>
    %166 = vector.extract_strided_slice %161 {offsets = [0, 96], sizes = [16, 32], strides = [1, 1]} : vector<16x128xf32> to vector<16x32xf32>
    %167 = arith.mulf %164, %153 : vector<16x32xf32>
    %168 = arith.mulf %163, %165 : vector<16x32xf32>
    %169 = arith.addf %167, %168 : vector<16x32xf32>
    %170 = math.tanh %169 : vector<16x32xf32>
    %171 = arith.mulf %166, %170 : vector<16x32xf32>
    %172 = vector.extract_strided_slice %2 {offsets = [5, 0, 0], sizes = [1, 16, 32], strides = [1, 1, 1]} : vector<8x16x32xi1> to vector<1x16x32xi1>
    %173 = vector.shape_cast %172 : vector<1x16x32xi1> to vector<16x32xi1>
    %174 = arith.select %173, %171, %152 : vector<16x32xi1>, vector<16x32xf32>
    %175 = arith.select %173, %169, %153 : vector<16x32xi1>, vector<16x32xf32>
    %176 = arith.truncf %174 : vector<16x32xf32> to vector<16x32xbf16>
    %cst_40 = arith.constant dense<0.000000e+00> : vector<16x128xf32>
    %177 = tpu.matmul %176, %41, %cst_40 {dimension_numbers = #tpu.dot_dimension_numbers<[1], [0], [0], [1], [0, 0, 1, 1], [], []>} : vector<16x32xbf16>, vector<32x128xbf16>, vector<16x128xf32> -> vector<16x128xf32>
    %178 = arith.addf %31, %177 : vector<16x128xf32>
    %179 = arith.negf %178 : vector<16x128xf32>
    %180 = math.exp %179 : vector<16x128xf32>
    %cst_41 = arith.constant 1.000000e+00 : f32
    %181 = vector.broadcast %cst_41 : f32 to vector<16x128xf32>
    %182 = arith.addf %181, %180 : vector<16x128xf32>
    %183 = arith.divf %181, %182 : vector<16x128xf32>
    %184 = math.tanh %178 : vector<16x128xf32>
    %185 = vector.extract_strided_slice %183 {offsets = [0, 0], sizes = [16, 32], strides = [1, 1]} : vector<16x128xf32> to vector<16x32xf32>
    %186 = vector.extract_strided_slice %183 {offsets = [0, 32], sizes = [16, 32], strides = [1, 1]} : vector<16x128xf32> to vector<16x32xf32>
    %187 = vector.extract_strided_slice %184 {offsets = [0, 64], sizes = [16, 32], strides = [1, 1]} : vector<16x128xf32> to vector<16x32xf32>
    %188 = vector.extract_strided_slice %183 {offsets = [0, 96], sizes = [16, 32], strides = [1, 1]} : vector<16x128xf32> to vector<16x32xf32>
    %189 = arith.mulf %186, %175 : vector<16x32xf32>
    %190 = arith.mulf %185, %187 : vector<16x32xf32>
    %191 = arith.addf %189, %190 : vector<16x32xf32>
    %192 = math.tanh %191 : vector<16x32xf32>
    %193 = arith.mulf %188, %192 : vector<16x32xf32>
    %194 = vector.extract_strided_slice %2 {offsets = [6, 0, 0], sizes = [1, 16, 32], strides = [1, 1, 1]} : vector<8x16x32xi1> to vector<1x16x32xi1>
    %195 = vector.shape_cast %194 : vector<1x16x32xi1> to vector<16x32xi1>
    %196 = arith.select %195, %193, %174 : vector<16x32xi1>, vector<16x32xf32>
    %197 = arith.select %195, %191, %175 : vector<16x32xi1>, vector<16x32xf32>
    %198 = arith.truncf %196 : vector<16x32xf32> to vector<16x32xbf16>
    %cst_42 = arith.constant dense<0.000000e+00> : vector<16x128xf32>
    %199 = tpu.matmul %198, %41, %cst_42 {dimension_numbers = #tpu.dot_dimension_numbers<[1], [0], [0], [1], [0, 0, 1, 1], [], []>} : vector<16x32xbf16>, vector<32x128xbf16>, vector<16x128xf32> -> vector<16x128xf32>
    %200 = arith.addf %32, %199 : vector<16x128xf32>
    %201 = arith.negf %200 : vector<16x128xf32>
    %202 = math.exp %201 : vector<16x128xf32>
    %cst_43 = arith.constant 1.000000e+00 : f32
    %203 = vector.broadcast %cst_43 : f32 to vector<16x128xf32>
    %204 = arith.addf %203, %202 : vector<16x128xf32>
    %205 = arith.divf %203, %204 : vector<16x128xf32>
    %206 = math.tanh %200 : vector<16x128xf32>
    %207 = vector.extract_strided_slice %205 {offsets = [0, 0], sizes = [16, 32], strides = [1, 1]} : vector<16x128xf32> to vector<16x32xf32>
    %208 = vector.extract_strided_slice %205 {offsets = [0, 32], sizes = [16, 32], strides = [1, 1]} : vector<16x128xf32> to vector<16x32xf32>
    %209 = vector.extract_strided_slice %206 {offsets = [0, 64], sizes = [16, 32], strides = [1, 1]} : vector<16x128xf32> to vector<16x32xf32>
    %210 = vector.extract_strided_slice %205 {offsets = [0, 96], sizes = [16, 32], strides = [1, 1]} : vector<16x128xf32> to vector<16x32xf32>
    %211 = arith.mulf %208, %197 : vector<16x32xf32>
    %212 = arith.mulf %207, %209 : vector<16x32xf32>
    %213 = arith.addf %211, %212 : vector<16x32xf32>
    %214 = math.tanh %213 : vector<16x32xf32>
    %215 = arith.mulf %210, %214 : vector<16x32xf32>
    %216 = vector.extract_strided_slice %2 {offsets = [7, 0, 0], sizes = [1, 16, 32], strides = [1, 1, 1]} : vector<8x16x32xi1> to vector<1x16x32xi1>
    %217 = vector.shape_cast %216 : vector<1x16x32xi1> to vector<16x32xi1>
    %218 = arith.select %217, %215, %196 : vector<16x32xi1>, vector<16x32xf32>
    %219 = arith.select %217, %213, %197 : vector<16x32xi1>, vector<16x32xf32>
    %c0_44 = arith.constant 0 : index
    %c0_45 = arith.constant 0 : index
    %220 = vector.load %arg5[%c0_44, %c0_45] : memref<32x128xbf16, #tpu.memory_space<vmem>>, vector<32x128xbf16>
    %cst_46 = arith.constant 0.000000e+00 : f32
    %221 = vector.broadcast %cst_46 : f32 to vector<16x32xf32>
    %cst_47 = arith.constant 0.000000e+00 : f32
    %222 = vector.broadcast %cst_47 : f32 to vector<16x32xf32>
    %223 = arith.truncf %221 : vector<16x32xf32> to vector<16x32xbf16>
    %cst_48 = arith.constant dense<0.000000e+00> : vector<16x128xf32>
    %224 = tpu.matmul %223, %220, %cst_48 {dimension_numbers = #tpu.dot_dimension_numbers<[1], [0], [0], [1], [0, 0, 1, 1], [], []>} : vector<16x32xbf16>, vector<32x128xbf16>, vector<16x128xf32> -> vector<16x128xf32>
    %225 = arith.addf %40, %224 : vector<16x128xf32>
    %226 = arith.negf %225 : vector<16x128xf32>
    %227 = math.exp %226 : vector<16x128xf32>
    %cst_49 = arith.constant 1.000000e+00 : f32
    %228 = vector.broadcast %cst_49 : f32 to vector<16x128xf32>
    %229 = arith.addf %228, %227 : vector<16x128xf32>
    %230 = arith.divf %228, %229 : vector<16x128xf32>
    %231 = math.tanh %225 : vector<16x128xf32>
    %232 = vector.extract_strided_slice %230 {offsets = [0, 0], sizes = [16, 32], strides = [1, 1]} : vector<16x128xf32> to vector<16x32xf32>
    %233 = vector.extract_strided_slice %230 {offsets = [0, 32], sizes = [16, 32], strides = [1, 1]} : vector<16x128xf32> to vector<16x32xf32>
    %234 = vector.extract_strided_slice %231 {offsets = [0, 64], sizes = [16, 32], strides = [1, 1]} : vector<16x128xf32> to vector<16x32xf32>
    %235 = vector.extract_strided_slice %230 {offsets = [0, 96], sizes = [16, 32], strides = [1, 1]} : vector<16x128xf32> to vector<16x32xf32>
    %236 = arith.mulf %233, %222 : vector<16x32xf32>
    %237 = arith.mulf %232, %234 : vector<16x32xf32>
    %238 = arith.addf %236, %237 : vector<16x32xf32>
    %239 = math.tanh %238 : vector<16x32xf32>
    %240 = arith.mulf %235, %239 : vector<16x32xf32>
    %241 = vector.extract_strided_slice %2 {offsets = [7, 0, 0], sizes = [1, 16, 32], strides = [1, 1, 1]} : vector<8x16x32xi1> to vector<1x16x32xi1>
    %242 = vector.shape_cast %241 : vector<1x16x32xi1> to vector<16x32xi1>
    %243 = arith.select %242, %240, %221 : vector<16x32xi1>, vector<16x32xf32>
    %244 = arith.select %242, %238, %222 : vector<16x32xi1>, vector<16x32xf32>
    %245 = arith.truncf %243 : vector<16x32xf32> to vector<16x32xbf16>
    %cst_50 = arith.constant dense<0.000000e+00> : vector<16x128xf32>
    %246 = tpu.matmul %245, %220, %cst_50 {dimension_numbers = #tpu.dot_dimension_numbers<[1], [0], [0], [1], [0, 0, 1, 1], [], []>} : vector<16x32xbf16>, vector<32x128xbf16>, vector<16x128xf32> -> vector<16x128xf32>
    %247 = arith.addf %39, %246 : vector<16x128xf32>
    %248 = arith.negf %247 : vector<16x128xf32>
    %249 = math.exp %248 : vector<16x128xf32>
    %cst_51 = arith.constant 1.000000e+00 : f32
    %250 = vector.broadcast %cst_51 : f32 to vector<16x128xf32>
    %251 = arith.addf %250, %249 : vector<16x128xf32>
    %252 = arith.divf %250, %251 : vector<16x128xf32>
    %253 = math.tanh %247 : vector<16x128xf32>
    %254 = vector.extract_strided_slice %252 {offsets = [0, 0], sizes = [16, 32], strides = [1, 1]} : vector<16x128xf32> to vector<16x32xf32>
    %255 = vector.extract_strided_slice %252 {offsets = [0, 32], sizes = [16, 32], strides = [1, 1]} : vector<16x128xf32> to vector<16x32xf32>
    %256 = vector.extract_strided_slice %253 {offsets = [0, 64], sizes = [16, 32], strides = [1, 1]} : vector<16x128xf32> to vector<16x32xf32>
    %257 = vector.extract_strided_slice %252 {offsets = [0, 96], sizes = [16, 32], strides = [1, 1]} : vector<16x128xf32> to vector<16x32xf32>
    %258 = arith.mulf %255, %244 : vector<16x32xf32>
    %259 = arith.mulf %254, %256 : vector<16x32xf32>
    %260 = arith.addf %258, %259 : vector<16x32xf32>
    %261 = math.tanh %260 : vector<16x32xf32>
    %262 = arith.mulf %257, %261 : vector<16x32xf32>
    %263 = vector.extract_strided_slice %2 {offsets = [6, 0, 0], sizes = [1, 16, 32], strides = [1, 1, 1]} : vector<8x16x32xi1> to vector<1x16x32xi1>
    %264 = vector.shape_cast %263 : vector<1x16x32xi1> to vector<16x32xi1>
    %265 = arith.select %264, %262, %243 : vector<16x32xi1>, vector<16x32xf32>
    %266 = arith.select %264, %260, %244 : vector<16x32xi1>, vector<16x32xf32>
    %267 = arith.truncf %265 : vector<16x32xf32> to vector<16x32xbf16>
    %cst_52 = arith.constant dense<0.000000e+00> : vector<16x128xf32>
    %268 = tpu.matmul %267, %220, %cst_52 {dimension_numbers = #tpu.dot_dimension_numbers<[1], [0], [0], [1], [0, 0, 1, 1], [], []>} : vector<16x32xbf16>, vector<32x128xbf16>, vector<16x128xf32> -> vector<16x128xf32>
    %269 = arith.addf %38, %268 : vector<16x128xf32>
    %270 = arith.negf %269 : vector<16x128xf32>
    %271 = math.exp %270 : vector<16x128xf32>
    %cst_53 = arith.constant 1.000000e+00 : f32
    %272 = vector.broadcast %cst_53 : f32 to vector<16x128xf32>
    %273 = arith.addf %272, %271 : vector<16x128xf32>
    %274 = arith.divf %272, %273 : vector<16x128xf32>
    %275 = math.tanh %269 : vector<16x128xf32>
    %276 = vector.extract_strided_slice %274 {offsets = [0, 0], sizes = [16, 32], strides = [1, 1]} : vector<16x128xf32> to vector<16x32xf32>
    %277 = vector.extract_strided_slice %274 {offsets = [0, 32], sizes = [16, 32], strides = [1, 1]} : vector<16x128xf32> to vector<16x32xf32>
    %278 = vector.extract_strided_slice %275 {offsets = [0, 64], sizes = [16, 32], strides = [1, 1]} : vector<16x128xf32> to vector<16x32xf32>
    %279 = vector.extract_strided_slice %274 {offsets = [0, 96], sizes = [16, 32], strides = [1, 1]} : vector<16x128xf32> to vector<16x32xf32>
    %280 = arith.mulf %277, %266 : vector<16x32xf32>
    %281 = arith.mulf %276, %278 : vector<16x32xf32>
    %282 = arith.addf %280, %281 : vector<16x32xf32>
    %283 = math.tanh %282 : vector<16x32xf32>
    %284 = arith.mulf %279, %283 : vector<16x32xf32>
    %285 = vector.extract_strided_slice %2 {offsets = [5, 0, 0], sizes = [1, 16, 32], strides = [1, 1, 1]} : vector<8x16x32xi1> to vector<1x16x32xi1>
    %286 = vector.shape_cast %285 : vector<1x16x32xi1> to vector<16x32xi1>
    %287 = arith.select %286, %284, %265 : vector<16x32xi1>, vector<16x32xf32>
    %288 = arith.select %286, %282, %266 : vector<16x32xi1>, vector<16x32xf32>
    %289 = arith.truncf %287 : vector<16x32xf32> to vector<16x32xbf16>
    %cst_54 = arith.constant dense<0.000000e+00> : vector<16x128xf32>
    %290 = tpu.matmul %289, %220, %cst_54 {dimension_numbers = #tpu.dot_dimension_numbers<[1], [0], [0], [1], [0, 0, 1, 1], [], []>} : vector<16x32xbf16>, vector<32x128xbf16>, vector<16x128xf32> -> vector<16x128xf32>
    %291 = arith.addf %37, %290 : vector<16x128xf32>
    %292 = arith.negf %291 : vector<16x128xf32>
    %293 = math.exp %292 : vector<16x128xf32>
    %cst_55 = arith.constant 1.000000e+00 : f32
    %294 = vector.broadcast %cst_55 : f32 to vector<16x128xf32>
    %295 = arith.addf %294, %293 : vector<16x128xf32>
    %296 = arith.divf %294, %295 : vector<16x128xf32>
    %297 = math.tanh %291 : vector<16x128xf32>
    %298 = vector.extract_strided_slice %296 {offsets = [0, 0], sizes = [16, 32], strides = [1, 1]} : vector<16x128xf32> to vector<16x32xf32>
    %299 = vector.extract_strided_slice %296 {offsets = [0, 32], sizes = [16, 32], strides = [1, 1]} : vector<16x128xf32> to vector<16x32xf32>
    %300 = vector.extract_strided_slice %297 {offsets = [0, 64], sizes = [16, 32], strides = [1, 1]} : vector<16x128xf32> to vector<16x32xf32>
    %301 = vector.extract_strided_slice %296 {offsets = [0, 96], sizes = [16, 32], strides = [1, 1]} : vector<16x128xf32> to vector<16x32xf32>
    %302 = arith.mulf %299, %288 : vector<16x32xf32>
    %303 = arith.mulf %298, %300 : vector<16x32xf32>
    %304 = arith.addf %302, %303 : vector<16x32xf32>
    %305 = math.tanh %304 : vector<16x32xf32>
    %306 = arith.mulf %301, %305 : vector<16x32xf32>
    %307 = vector.extract_strided_slice %2 {offsets = [4, 0, 0], sizes = [1, 16, 32], strides = [1, 1, 1]} : vector<8x16x32xi1> to vector<1x16x32xi1>
    %308 = vector.shape_cast %307 : vector<1x16x32xi1> to vector<16x32xi1>
    %309 = arith.select %308, %306, %287 : vector<16x32xi1>, vector<16x32xf32>
    %310 = arith.select %308, %304, %288 : vector<16x32xi1>, vector<16x32xf32>
    %311 = arith.truncf %309 : vector<16x32xf32> to vector<16x32xbf16>
    %cst_56 = arith.constant dense<0.000000e+00> : vector<16x128xf32>
    %312 = tpu.matmul %311, %220, %cst_56 {dimension_numbers = #tpu.dot_dimension_numbers<[1], [0], [0], [1], [0, 0, 1, 1], [], []>} : vector<16x32xbf16>, vector<32x128xbf16>, vector<16x128xf32> -> vector<16x128xf32>
    %313 = arith.addf %36, %312 : vector<16x128xf32>
    %314 = arith.negf %313 : vector<16x128xf32>
    %315 = math.exp %314 : vector<16x128xf32>
    %cst_57 = arith.constant 1.000000e+00 : f32
    %316 = vector.broadcast %cst_57 : f32 to vector<16x128xf32>
    %317 = arith.addf %316, %315 : vector<16x128xf32>
    %318 = arith.divf %316, %317 : vector<16x128xf32>
    %319 = math.tanh %313 : vector<16x128xf32>
    %320 = vector.extract_strided_slice %318 {offsets = [0, 0], sizes = [16, 32], strides = [1, 1]} : vector<16x128xf32> to vector<16x32xf32>
    %321 = vector.extract_strided_slice %318 {offsets = [0, 32], sizes = [16, 32], strides = [1, 1]} : vector<16x128xf32> to vector<16x32xf32>
    %322 = vector.extract_strided_slice %319 {offsets = [0, 64], sizes = [16, 32], strides = [1, 1]} : vector<16x128xf32> to vector<16x32xf32>
    %323 = vector.extract_strided_slice %318 {offsets = [0, 96], sizes = [16, 32], strides = [1, 1]} : vector<16x128xf32> to vector<16x32xf32>
    %324 = arith.mulf %321, %310 : vector<16x32xf32>
    %325 = arith.mulf %320, %322 : vector<16x32xf32>
    %326 = arith.addf %324, %325 : vector<16x32xf32>
    %327 = math.tanh %326 : vector<16x32xf32>
    %328 = arith.mulf %323, %327 : vector<16x32xf32>
    %329 = vector.extract_strided_slice %2 {offsets = [3, 0, 0], sizes = [1, 16, 32], strides = [1, 1, 1]} : vector<8x16x32xi1> to vector<1x16x32xi1>
    %330 = vector.shape_cast %329 : vector<1x16x32xi1> to vector<16x32xi1>
    %331 = arith.select %330, %328, %309 : vector<16x32xi1>, vector<16x32xf32>
    %332 = arith.select %330, %326, %310 : vector<16x32xi1>, vector<16x32xf32>
    %333 = arith.truncf %331 : vector<16x32xf32> to vector<16x32xbf16>
    %cst_58 = arith.constant dense<0.000000e+00> : vector<16x128xf32>
    %334 = tpu.matmul %333, %220, %cst_58 {dimension_numbers = #tpu.dot_dimension_numbers<[1], [0], [0], [1], [0, 0, 1, 1], [], []>} : vector<16x32xbf16>, vector<32x128xbf16>, vector<16x128xf32> -> vector<16x128xf32>
    %335 = arith.addf %35, %334 : vector<16x128xf32>
    %336 = arith.negf %335 : vector<16x128xf32>
    %337 = math.exp %336 : vector<16x128xf32>
    %cst_59 = arith.constant 1.000000e+00 : f32
    %338 = vector.broadcast %cst_59 : f32 to vector<16x128xf32>
    %339 = arith.addf %338, %337 : vector<16x128xf32>
    %340 = arith.divf %338, %339 : vector<16x128xf32>
    %341 = math.tanh %335 : vector<16x128xf32>
    %342 = vector.extract_strided_slice %340 {offsets = [0, 0], sizes = [16, 32], strides = [1, 1]} : vector<16x128xf32> to vector<16x32xf32>
    %343 = vector.extract_strided_slice %340 {offsets = [0, 32], sizes = [16, 32], strides = [1, 1]} : vector<16x128xf32> to vector<16x32xf32>
    %344 = vector.extract_strided_slice %341 {offsets = [0, 64], sizes = [16, 32], strides = [1, 1]} : vector<16x128xf32> to vector<16x32xf32>
    %345 = vector.extract_strided_slice %340 {offsets = [0, 96], sizes = [16, 32], strides = [1, 1]} : vector<16x128xf32> to vector<16x32xf32>
    %346 = arith.mulf %343, %332 : vector<16x32xf32>
    %347 = arith.mulf %342, %344 : vector<16x32xf32>
    %348 = arith.addf %346, %347 : vector<16x32xf32>
    %349 = math.tanh %348 : vector<16x32xf32>
    %350 = arith.mulf %345, %349 : vector<16x32xf32>
    %351 = vector.extract_strided_slice %2 {offsets = [2, 0, 0], sizes = [1, 16, 32], strides = [1, 1, 1]} : vector<8x16x32xi1> to vector<1x16x32xi1>
    %352 = vector.shape_cast %351 : vector<1x16x32xi1> to vector<16x32xi1>
    %353 = arith.select %352, %350, %331 : vector<16x32xi1>, vector<16x32xf32>
    %354 = arith.select %352, %348, %332 : vector<16x32xi1>, vector<16x32xf32>
    %355 = arith.truncf %353 : vector<16x32xf32> to vector<16x32xbf16>
    %cst_60 = arith.constant dense<0.000000e+00> : vector<16x128xf32>
    %356 = tpu.matmul %355, %220, %cst_60 {dimension_numbers = #tpu.dot_dimension_numbers<[1], [0], [0], [1], [0, 0, 1, 1], [], []>} : vector<16x32xbf16>, vector<32x128xbf16>, vector<16x128xf32> -> vector<16x128xf32>
    %357 = arith.addf %34, %356 : vector<16x128xf32>
    %358 = arith.negf %357 : vector<16x128xf32>
    %359 = math.exp %358 : vector<16x128xf32>
    %cst_61 = arith.constant 1.000000e+00 : f32
    %360 = vector.broadcast %cst_61 : f32 to vector<16x128xf32>
    %361 = arith.addf %360, %359 : vector<16x128xf32>
    %362 = arith.divf %360, %361 : vector<16x128xf32>
    %363 = math.tanh %357 : vector<16x128xf32>
    %364 = vector.extract_strided_slice %362 {offsets = [0, 0], sizes = [16, 32], strides = [1, 1]} : vector<16x128xf32> to vector<16x32xf32>
    %365 = vector.extract_strided_slice %362 {offsets = [0, 32], sizes = [16, 32], strides = [1, 1]} : vector<16x128xf32> to vector<16x32xf32>
    %366 = vector.extract_strided_slice %363 {offsets = [0, 64], sizes = [16, 32], strides = [1, 1]} : vector<16x128xf32> to vector<16x32xf32>
    %367 = vector.extract_strided_slice %362 {offsets = [0, 96], sizes = [16, 32], strides = [1, 1]} : vector<16x128xf32> to vector<16x32xf32>
    %368 = arith.mulf %365, %354 : vector<16x32xf32>
    %369 = arith.mulf %364, %366 : vector<16x32xf32>
    %370 = arith.addf %368, %369 : vector<16x32xf32>
    %371 = math.tanh %370 : vector<16x32xf32>
    %372 = arith.mulf %367, %371 : vector<16x32xf32>
    %373 = vector.extract_strided_slice %2 {offsets = [1, 0, 0], sizes = [1, 16, 32], strides = [1, 1, 1]} : vector<8x16x32xi1> to vector<1x16x32xi1>
    %374 = vector.shape_cast %373 : vector<1x16x32xi1> to vector<16x32xi1>
    %375 = arith.select %374, %372, %353 : vector<16x32xi1>, vector<16x32xf32>
    %376 = arith.select %374, %370, %354 : vector<16x32xi1>, vector<16x32xf32>
    %377 = arith.truncf %375 : vector<16x32xf32> to vector<16x32xbf16>
    %cst_62 = arith.constant dense<0.000000e+00> : vector<16x128xf32>
    %378 = tpu.matmul %377, %220, %cst_62 {dimension_numbers = #tpu.dot_dimension_numbers<[1], [0], [0], [1], [0, 0, 1, 1], [], []>} : vector<16x32xbf16>, vector<32x128xbf16>, vector<16x128xf32> -> vector<16x128xf32>
    %379 = arith.addf %33, %378 : vector<16x128xf32>
    %380 = arith.negf %379 : vector<16x128xf32>
    %381 = math.exp %380 : vector<16x128xf32>
    %cst_63 = arith.constant 1.000000e+00 : f32
    %382 = vector.broadcast %cst_63 : f32 to vector<16x128xf32>
    %383 = arith.addf %382, %381 : vector<16x128xf32>
    %384 = arith.divf %382, %383 : vector<16x128xf32>
    %385 = math.tanh %379 : vector<16x128xf32>
    %386 = vector.extract_strided_slice %384 {offsets = [0, 0], sizes = [16, 32], strides = [1, 1]} : vector<16x128xf32> to vector<16x32xf32>
    %387 = vector.extract_strided_slice %384 {offsets = [0, 32], sizes = [16, 32], strides = [1, 1]} : vector<16x128xf32> to vector<16x32xf32>
    %388 = vector.extract_strided_slice %385 {offsets = [0, 64], sizes = [16, 32], strides = [1, 1]} : vector<16x128xf32> to vector<16x32xf32>
    %389 = vector.extract_strided_slice %384 {offsets = [0, 96], sizes = [16, 32], strides = [1, 1]} : vector<16x128xf32> to vector<16x32xf32>
    %390 = arith.mulf %387, %376 : vector<16x32xf32>
    %391 = arith.mulf %386, %388 : vector<16x32xf32>
    %392 = arith.addf %390, %391 : vector<16x32xf32>
    %393 = math.tanh %392 : vector<16x32xf32>
    %394 = arith.mulf %389, %393 : vector<16x32xf32>
    %395 = vector.extract_strided_slice %2 {offsets = [0, 0, 0], sizes = [1, 16, 32], strides = [1, 1, 1]} : vector<8x16x32xi1> to vector<1x16x32xi1>
    %396 = vector.shape_cast %395 : vector<1x16x32xi1> to vector<16x32xi1>
    %397 = arith.select %396, %394, %375 : vector<16x32xi1>, vector<16x32xf32>
    %398 = arith.select %396, %392, %376 : vector<16x32xi1>, vector<16x32xf32>
    %399 = tpu.concatenate %64, %86, %108, %130, %152, %174, %196, %218 in 0 : vector<16x32xf32>, vector<16x32xf32>, vector<16x32xf32>, vector<16x32xf32>, vector<16x32xf32>, vector<16x32xf32>, vector<16x32xf32>, vector<16x32xf32> -> vector<128x32xf32>
    %400 = tpu.concatenate %397, %375, %353, %331, %309, %287, %265, %243 in 0 : vector<16x32xf32>, vector<16x32xf32>, vector<16x32xf32>, vector<16x32xf32>, vector<16x32xf32>, vector<16x32xf32>, vector<16x32xf32>, vector<16x32xf32> -> vector<128x32xf32>
    %401 = tpu.concatenate %399, %400 in 1 : vector<128x32xf32>, vector<128x32xf32> -> vector<128x64xf32>
    %402 = arith.truncf %401 : vector<128x64xf32> to vector<128x64xbf16>
    %c0_64 = arith.constant 0 : index
    %c0_65 = arith.constant 0 : index
    %403 = vector.load %arg7[%c0_64, %c0_65] : memref<64x256xbf16, #tpu.memory_space<vmem>>, vector<64x256xbf16>
    %cst_66 = arith.constant dense<0.000000e+00> : vector<128x256xf32>
    %404 = tpu.matmul %402, %403, %cst_66 {dimension_numbers = #tpu.dot_dimension_numbers<[1], [0], [0], [1], [0, 0, 1, 1], [], []>} : vector<128x64xbf16>, vector<64x256xbf16>, vector<128x256xf32> -> vector<128x256xf32>
    %c0_67 = arith.constant 0 : index
    %c0_68 = arith.constant 0 : index
    %405 = vector.load %arg10[%c0_67, %c0_68] : memref<1x256xf32, #tpu.memory_space<vmem>>, vector<1x256xf32>
    %406 = vector.broadcast %405 : vector<1x256xf32> to vector<128x256xf32>
    %407 = arith.addf %404, %406 : vector<128x256xf32>
    %408 = vector.extract_strided_slice %407 {offsets = [0, 0], sizes = [16, 128], strides = [1, 1]} : vector<128x256xf32> to vector<16x128xf32>
    %409 = vector.extract_strided_slice %407 {offsets = [16, 0], sizes = [16, 128], strides = [1, 1]} : vector<128x256xf32> to vector<16x128xf32>
    %410 = vector.extract_strided_slice %407 {offsets = [32, 0], sizes = [16, 128], strides = [1, 1]} : vector<128x256xf32> to vector<16x128xf32>
    %411 = vector.extract_strided_slice %407 {offsets = [48, 0], sizes = [16, 128], strides = [1, 1]} : vector<128x256xf32> to vector<16x128xf32>
    %412 = vector.extract_strided_slice %407 {offsets = [64, 0], sizes = [16, 128], strides = [1, 1]} : vector<128x256xf32> to vector<16x128xf32>
    %413 = vector.extract_strided_slice %407 {offsets = [80, 0], sizes = [16, 128], strides = [1, 1]} : vector<128x256xf32> to vector<16x128xf32>
    %414 = vector.extract_strided_slice %407 {offsets = [96, 0], sizes = [16, 128], strides = [1, 1]} : vector<128x256xf32> to vector<16x128xf32>
    %415 = vector.extract_strided_slice %407 {offsets = [112, 0], sizes = [16, 128], strides = [1, 1]} : vector<128x256xf32> to vector<16x128xf32>
    %416 = vector.extract_strided_slice %407 {offsets = [0, 128], sizes = [16, 128], strides = [1, 1]} : vector<128x256xf32> to vector<16x128xf32>
    %417 = vector.extract_strided_slice %407 {offsets = [16, 128], sizes = [16, 128], strides = [1, 1]} : vector<128x256xf32> to vector<16x128xf32>
    %418 = vector.extract_strided_slice %407 {offsets = [32, 128], sizes = [16, 128], strides = [1, 1]} : vector<128x256xf32> to vector<16x128xf32>
    %419 = vector.extract_strided_slice %407 {offsets = [48, 128], sizes = [16, 128], strides = [1, 1]} : vector<128x256xf32> to vector<16x128xf32>
    %420 = vector.extract_strided_slice %407 {offsets = [64, 128], sizes = [16, 128], strides = [1, 1]} : vector<128x256xf32> to vector<16x128xf32>
    %421 = vector.extract_strided_slice %407 {offsets = [80, 128], sizes = [16, 128], strides = [1, 1]} : vector<128x256xf32> to vector<16x128xf32>
    %422 = vector.extract_strided_slice %407 {offsets = [96, 128], sizes = [16, 128], strides = [1, 1]} : vector<128x256xf32> to vector<16x128xf32>
    %423 = vector.extract_strided_slice %407 {offsets = [112, 128], sizes = [16, 128], strides = [1, 1]} : vector<128x256xf32> to vector<16x128xf32>
    %c0_69 = arith.constant 0 : index
    %c0_70 = arith.constant 0 : index
    %424 = vector.load %arg8[%c0_69, %c0_70] : memref<32x128xbf16, #tpu.memory_space<vmem>>, vector<32x128xbf16>
    %cst_71 = arith.constant 0.000000e+00 : f32
    %425 = vector.broadcast %cst_71 : f32 to vector<16x32xf32>
    %cst_72 = arith.constant 0.000000e+00 : f32
    %426 = vector.broadcast %cst_72 : f32 to vector<16x32xf32>
    %427 = arith.truncf %425 : vector<16x32xf32> to vector<16x32xbf16>
    %cst_73 = arith.constant dense<0.000000e+00> : vector<16x128xf32>
    %428 = tpu.matmul %427, %424, %cst_73 {dimension_numbers = #tpu.dot_dimension_numbers<[1], [0], [0], [1], [0, 0, 1, 1], [], []>} : vector<16x32xbf16>, vector<32x128xbf16>, vector<16x128xf32> -> vector<16x128xf32>
    %429 = arith.addf %408, %428 : vector<16x128xf32>
    %430 = arith.negf %429 : vector<16x128xf32>
    %431 = math.exp %430 : vector<16x128xf32>
    %cst_74 = arith.constant 1.000000e+00 : f32
    %432 = vector.broadcast %cst_74 : f32 to vector<16x128xf32>
    %433 = arith.addf %432, %431 : vector<16x128xf32>
    %434 = arith.divf %432, %433 : vector<16x128xf32>
    %435 = math.tanh %429 : vector<16x128xf32>
    %436 = vector.extract_strided_slice %434 {offsets = [0, 0], sizes = [16, 32], strides = [1, 1]} : vector<16x128xf32> to vector<16x32xf32>
    %437 = vector.extract_strided_slice %434 {offsets = [0, 32], sizes = [16, 32], strides = [1, 1]} : vector<16x128xf32> to vector<16x32xf32>
    %438 = vector.extract_strided_slice %435 {offsets = [0, 64], sizes = [16, 32], strides = [1, 1]} : vector<16x128xf32> to vector<16x32xf32>
    %439 = vector.extract_strided_slice %434 {offsets = [0, 96], sizes = [16, 32], strides = [1, 1]} : vector<16x128xf32> to vector<16x32xf32>
    %440 = arith.mulf %437, %426 : vector<16x32xf32>
    %441 = arith.mulf %436, %438 : vector<16x32xf32>
    %442 = arith.addf %440, %441 : vector<16x32xf32>
    %443 = math.tanh %442 : vector<16x32xf32>
    %444 = arith.mulf %439, %443 : vector<16x32xf32>
    %445 = vector.extract_strided_slice %2 {offsets = [0, 0, 0], sizes = [1, 16, 32], strides = [1, 1, 1]} : vector<8x16x32xi1> to vector<1x16x32xi1>
    %446 = vector.shape_cast %445 : vector<1x16x32xi1> to vector<16x32xi1>
    %447 = arith.select %446, %444, %425 : vector<16x32xi1>, vector<16x32xf32>
    %448 = arith.select %446, %442, %426 : vector<16x32xi1>, vector<16x32xf32>
    %449 = arith.truncf %447 : vector<16x32xf32> to vector<16x32xbf16>
    %cst_75 = arith.constant dense<0.000000e+00> : vector<16x128xf32>
    %450 = tpu.matmul %449, %424, %cst_75 {dimension_numbers = #tpu.dot_dimension_numbers<[1], [0], [0], [1], [0, 0, 1, 1], [], []>} : vector<16x32xbf16>, vector<32x128xbf16>, vector<16x128xf32> -> vector<16x128xf32>
    %451 = arith.addf %409, %450 : vector<16x128xf32>
    %452 = arith.negf %451 : vector<16x128xf32>
    %453 = math.exp %452 : vector<16x128xf32>
    %cst_76 = arith.constant 1.000000e+00 : f32
    %454 = vector.broadcast %cst_76 : f32 to vector<16x128xf32>
    %455 = arith.addf %454, %453 : vector<16x128xf32>
    %456 = arith.divf %454, %455 : vector<16x128xf32>
    %457 = math.tanh %451 : vector<16x128xf32>
    %458 = vector.extract_strided_slice %456 {offsets = [0, 0], sizes = [16, 32], strides = [1, 1]} : vector<16x128xf32> to vector<16x32xf32>
    %459 = vector.extract_strided_slice %456 {offsets = [0, 32], sizes = [16, 32], strides = [1, 1]} : vector<16x128xf32> to vector<16x32xf32>
    %460 = vector.extract_strided_slice %457 {offsets = [0, 64], sizes = [16, 32], strides = [1, 1]} : vector<16x128xf32> to vector<16x32xf32>
    %461 = vector.extract_strided_slice %456 {offsets = [0, 96], sizes = [16, 32], strides = [1, 1]} : vector<16x128xf32> to vector<16x32xf32>
    %462 = arith.mulf %459, %448 : vector<16x32xf32>
    %463 = arith.mulf %458, %460 : vector<16x32xf32>
    %464 = arith.addf %462, %463 : vector<16x32xf32>
    %465 = math.tanh %464 : vector<16x32xf32>
    %466 = arith.mulf %461, %465 : vector<16x32xf32>
    %467 = vector.extract_strided_slice %2 {offsets = [1, 0, 0], sizes = [1, 16, 32], strides = [1, 1, 1]} : vector<8x16x32xi1> to vector<1x16x32xi1>
    %468 = vector.shape_cast %467 : vector<1x16x32xi1> to vector<16x32xi1>
    %469 = arith.select %468, %466, %447 : vector<16x32xi1>, vector<16x32xf32>
    %470 = arith.select %468, %464, %448 : vector<16x32xi1>, vector<16x32xf32>
    %471 = arith.truncf %469 : vector<16x32xf32> to vector<16x32xbf16>
    %cst_77 = arith.constant dense<0.000000e+00> : vector<16x128xf32>
    %472 = tpu.matmul %471, %424, %cst_77 {dimension_numbers = #tpu.dot_dimension_numbers<[1], [0], [0], [1], [0, 0, 1, 1], [], []>} : vector<16x32xbf16>, vector<32x128xbf16>, vector<16x128xf32> -> vector<16x128xf32>
    %473 = arith.addf %410, %472 : vector<16x128xf32>
    %474 = arith.negf %473 : vector<16x128xf32>
    %475 = math.exp %474 : vector<16x128xf32>
    %cst_78 = arith.constant 1.000000e+00 : f32
    %476 = vector.broadcast %cst_78 : f32 to vector<16x128xf32>
    %477 = arith.addf %476, %475 : vector<16x128xf32>
    %478 = arith.divf %476, %477 : vector<16x128xf32>
    %479 = math.tanh %473 : vector<16x128xf32>
    %480 = vector.extract_strided_slice %478 {offsets = [0, 0], sizes = [16, 32], strides = [1, 1]} : vector<16x128xf32> to vector<16x32xf32>
    %481 = vector.extract_strided_slice %478 {offsets = [0, 32], sizes = [16, 32], strides = [1, 1]} : vector<16x128xf32> to vector<16x32xf32>
    %482 = vector.extract_strided_slice %479 {offsets = [0, 64], sizes = [16, 32], strides = [1, 1]} : vector<16x128xf32> to vector<16x32xf32>
    %483 = vector.extract_strided_slice %478 {offsets = [0, 96], sizes = [16, 32], strides = [1, 1]} : vector<16x128xf32> to vector<16x32xf32>
    %484 = arith.mulf %481, %470 : vector<16x32xf32>
    %485 = arith.mulf %480, %482 : vector<16x32xf32>
    %486 = arith.addf %484, %485 : vector<16x32xf32>
    %487 = math.tanh %486 : vector<16x32xf32>
    %488 = arith.mulf %483, %487 : vector<16x32xf32>
    %489 = vector.extract_strided_slice %2 {offsets = [2, 0, 0], sizes = [1, 16, 32], strides = [1, 1, 1]} : vector<8x16x32xi1> to vector<1x16x32xi1>
    %490 = vector.shape_cast %489 : vector<1x16x32xi1> to vector<16x32xi1>
    %491 = arith.select %490, %488, %469 : vector<16x32xi1>, vector<16x32xf32>
    %492 = arith.select %490, %486, %470 : vector<16x32xi1>, vector<16x32xf32>
    %493 = arith.truncf %491 : vector<16x32xf32> to vector<16x32xbf16>
    %cst_79 = arith.constant dense<0.000000e+00> : vector<16x128xf32>
    %494 = tpu.matmul %493, %424, %cst_79 {dimension_numbers = #tpu.dot_dimension_numbers<[1], [0], [0], [1], [0, 0, 1, 1], [], []>} : vector<16x32xbf16>, vector<32x128xbf16>, vector<16x128xf32> -> vector<16x128xf32>
    %495 = arith.addf %411, %494 : vector<16x128xf32>
    %496 = arith.negf %495 : vector<16x128xf32>
    %497 = math.exp %496 : vector<16x128xf32>
    %cst_80 = arith.constant 1.000000e+00 : f32
    %498 = vector.broadcast %cst_80 : f32 to vector<16x128xf32>
    %499 = arith.addf %498, %497 : vector<16x128xf32>
    %500 = arith.divf %498, %499 : vector<16x128xf32>
    %501 = math.tanh %495 : vector<16x128xf32>
    %502 = vector.extract_strided_slice %500 {offsets = [0, 0], sizes = [16, 32], strides = [1, 1]} : vector<16x128xf32> to vector<16x32xf32>
    %503 = vector.extract_strided_slice %500 {offsets = [0, 32], sizes = [16, 32], strides = [1, 1]} : vector<16x128xf32> to vector<16x32xf32>
    %504 = vector.extract_strided_slice %501 {offsets = [0, 64], sizes = [16, 32], strides = [1, 1]} : vector<16x128xf32> to vector<16x32xf32>
    %505 = vector.extract_strided_slice %500 {offsets = [0, 96], sizes = [16, 32], strides = [1, 1]} : vector<16x128xf32> to vector<16x32xf32>
    %506 = arith.mulf %503, %492 : vector<16x32xf32>
    %507 = arith.mulf %502, %504 : vector<16x32xf32>
    %508 = arith.addf %506, %507 : vector<16x32xf32>
    %509 = math.tanh %508 : vector<16x32xf32>
    %510 = arith.mulf %505, %509 : vector<16x32xf32>
    %511 = vector.extract_strided_slice %2 {offsets = [3, 0, 0], sizes = [1, 16, 32], strides = [1, 1, 1]} : vector<8x16x32xi1> to vector<1x16x32xi1>
    %512 = vector.shape_cast %511 : vector<1x16x32xi1> to vector<16x32xi1>
    %513 = arith.select %512, %510, %491 : vector<16x32xi1>, vector<16x32xf32>
    %514 = arith.select %512, %508, %492 : vector<16x32xi1>, vector<16x32xf32>
    %515 = arith.truncf %513 : vector<16x32xf32> to vector<16x32xbf16>
    %cst_81 = arith.constant dense<0.000000e+00> : vector<16x128xf32>
    %516 = tpu.matmul %515, %424, %cst_81 {dimension_numbers = #tpu.dot_dimension_numbers<[1], [0], [0], [1], [0, 0, 1, 1], [], []>} : vector<16x32xbf16>, vector<32x128xbf16>, vector<16x128xf32> -> vector<16x128xf32>
    %517 = arith.addf %412, %516 : vector<16x128xf32>
    %518 = arith.negf %517 : vector<16x128xf32>
    %519 = math.exp %518 : vector<16x128xf32>
    %cst_82 = arith.constant 1.000000e+00 : f32
    %520 = vector.broadcast %cst_82 : f32 to vector<16x128xf32>
    %521 = arith.addf %520, %519 : vector<16x128xf32>
    %522 = arith.divf %520, %521 : vector<16x128xf32>
    %523 = math.tanh %517 : vector<16x128xf32>
    %524 = vector.extract_strided_slice %522 {offsets = [0, 0], sizes = [16, 32], strides = [1, 1]} : vector<16x128xf32> to vector<16x32xf32>
    %525 = vector.extract_strided_slice %522 {offsets = [0, 32], sizes = [16, 32], strides = [1, 1]} : vector<16x128xf32> to vector<16x32xf32>
    %526 = vector.extract_strided_slice %523 {offsets = [0, 64], sizes = [16, 32], strides = [1, 1]} : vector<16x128xf32> to vector<16x32xf32>
    %527 = vector.extract_strided_slice %522 {offsets = [0, 96], sizes = [16, 32], strides = [1, 1]} : vector<16x128xf32> to vector<16x32xf32>
    %528 = arith.mulf %525, %514 : vector<16x32xf32>
    %529 = arith.mulf %524, %526 : vector<16x32xf32>
    %530 = arith.addf %528, %529 : vector<16x32xf32>
    %531 = math.tanh %530 : vector<16x32xf32>
    %532 = arith.mulf %527, %531 : vector<16x32xf32>
    %533 = vector.extract_strided_slice %2 {offsets = [4, 0, 0], sizes = [1, 16, 32], strides = [1, 1, 1]} : vector<8x16x32xi1> to vector<1x16x32xi1>
    %534 = vector.shape_cast %533 : vector<1x16x32xi1> to vector<16x32xi1>
    %535 = arith.select %534, %532, %513 : vector<16x32xi1>, vector<16x32xf32>
    %536 = arith.select %534, %530, %514 : vector<16x32xi1>, vector<16x32xf32>
    %537 = arith.truncf %535 : vector<16x32xf32> to vector<16x32xbf16>
    %cst_83 = arith.constant dense<0.000000e+00> : vector<16x128xf32>
    %538 = tpu.matmul %537, %424, %cst_83 {dimension_numbers = #tpu.dot_dimension_numbers<[1], [0], [0], [1], [0, 0, 1, 1], [], []>} : vector<16x32xbf16>, vector<32x128xbf16>, vector<16x128xf32> -> vector<16x128xf32>
    %539 = arith.addf %413, %538 : vector<16x128xf32>
    %540 = arith.negf %539 : vector<16x128xf32>
    %541 = math.exp %540 : vector<16x128xf32>
    %cst_84 = arith.constant 1.000000e+00 : f32
    %542 = vector.broadcast %cst_84 : f32 to vector<16x128xf32>
    %543 = arith.addf %542, %541 : vector<16x128xf32>
    %544 = arith.divf %542, %543 : vector<16x128xf32>
    %545 = math.tanh %539 : vector<16x128xf32>
    %546 = vector.extract_strided_slice %544 {offsets = [0, 0], sizes = [16, 32], strides = [1, 1]} : vector<16x128xf32> to vector<16x32xf32>
    %547 = vector.extract_strided_slice %544 {offsets = [0, 32], sizes = [16, 32], strides = [1, 1]} : vector<16x128xf32> to vector<16x32xf32>
    %548 = vector.extract_strided_slice %545 {offsets = [0, 64], sizes = [16, 32], strides = [1, 1]} : vector<16x128xf32> to vector<16x32xf32>
    %549 = vector.extract_strided_slice %544 {offsets = [0, 96], sizes = [16, 32], strides = [1, 1]} : vector<16x128xf32> to vector<16x32xf32>
    %550 = arith.mulf %547, %536 : vector<16x32xf32>
    %551 = arith.mulf %546, %548 : vector<16x32xf32>
    %552 = arith.addf %550, %551 : vector<16x32xf32>
    %553 = math.tanh %552 : vector<16x32xf32>
    %554 = arith.mulf %549, %553 : vector<16x32xf32>
    %555 = vector.extract_strided_slice %2 {offsets = [5, 0, 0], sizes = [1, 16, 32], strides = [1, 1, 1]} : vector<8x16x32xi1> to vector<1x16x32xi1>
    %556 = vector.shape_cast %555 : vector<1x16x32xi1> to vector<16x32xi1>
    %557 = arith.select %556, %554, %535 : vector<16x32xi1>, vector<16x32xf32>
    %558 = arith.select %556, %552, %536 : vector<16x32xi1>, vector<16x32xf32>
    %559 = arith.truncf %557 : vector<16x32xf32> to vector<16x32xbf16>
    %cst_85 = arith.constant dense<0.000000e+00> : vector<16x128xf32>
    %560 = tpu.matmul %559, %424, %cst_85 {dimension_numbers = #tpu.dot_dimension_numbers<[1], [0], [0], [1], [0, 0, 1, 1], [], []>} : vector<16x32xbf16>, vector<32x128xbf16>, vector<16x128xf32> -> vector<16x128xf32>
    %561 = arith.addf %414, %560 : vector<16x128xf32>
    %562 = arith.negf %561 : vector<16x128xf32>
    %563 = math.exp %562 : vector<16x128xf32>
    %cst_86 = arith.constant 1.000000e+00 : f32
    %564 = vector.broadcast %cst_86 : f32 to vector<16x128xf32>
    %565 = arith.addf %564, %563 : vector<16x128xf32>
    %566 = arith.divf %564, %565 : vector<16x128xf32>
    %567 = math.tanh %561 : vector<16x128xf32>
    %568 = vector.extract_strided_slice %566 {offsets = [0, 0], sizes = [16, 32], strides = [1, 1]} : vector<16x128xf32> to vector<16x32xf32>
    %569 = vector.extract_strided_slice %566 {offsets = [0, 32], sizes = [16, 32], strides = [1, 1]} : vector<16x128xf32> to vector<16x32xf32>
    %570 = vector.extract_strided_slice %567 {offsets = [0, 64], sizes = [16, 32], strides = [1, 1]} : vector<16x128xf32> to vector<16x32xf32>
    %571 = vector.extract_strided_slice %566 {offsets = [0, 96], sizes = [16, 32], strides = [1, 1]} : vector<16x128xf32> to vector<16x32xf32>
    %572 = arith.mulf %569, %558 : vector<16x32xf32>
    %573 = arith.mulf %568, %570 : vector<16x32xf32>
    %574 = arith.addf %572, %573 : vector<16x32xf32>
    %575 = math.tanh %574 : vector<16x32xf32>
    %576 = arith.mulf %571, %575 : vector<16x32xf32>
    %577 = vector.extract_strided_slice %2 {offsets = [6, 0, 0], sizes = [1, 16, 32], strides = [1, 1, 1]} : vector<8x16x32xi1> to vector<1x16x32xi1>
    %578 = vector.shape_cast %577 : vector<1x16x32xi1> to vector<16x32xi1>
    %579 = arith.select %578, %576, %557 : vector<16x32xi1>, vector<16x32xf32>
    %580 = arith.select %578, %574, %558 : vector<16x32xi1>, vector<16x32xf32>
    %581 = arith.truncf %579 : vector<16x32xf32> to vector<16x32xbf16>
    %cst_87 = arith.constant dense<0.000000e+00> : vector<16x128xf32>
    %582 = tpu.matmul %581, %424, %cst_87 {dimension_numbers = #tpu.dot_dimension_numbers<[1], [0], [0], [1], [0, 0, 1, 1], [], []>} : vector<16x32xbf16>, vector<32x128xbf16>, vector<16x128xf32> -> vector<16x128xf32>
    %583 = arith.addf %415, %582 : vector<16x128xf32>
    %584 = arith.negf %583 : vector<16x128xf32>
    %585 = math.exp %584 : vector<16x128xf32>
    %cst_88 = arith.constant 1.000000e+00 : f32
    %586 = vector.broadcast %cst_88 : f32 to vector<16x128xf32>
    %587 = arith.addf %586, %585 : vector<16x128xf32>
    %588 = arith.divf %586, %587 : vector<16x128xf32>
    %589 = math.tanh %583 : vector<16x128xf32>
    %590 = vector.extract_strided_slice %588 {offsets = [0, 0], sizes = [16, 32], strides = [1, 1]} : vector<16x128xf32> to vector<16x32xf32>
    %591 = vector.extract_strided_slice %588 {offsets = [0, 32], sizes = [16, 32], strides = [1, 1]} : vector<16x128xf32> to vector<16x32xf32>
    %592 = vector.extract_strided_slice %589 {offsets = [0, 64], sizes = [16, 32], strides = [1, 1]} : vector<16x128xf32> to vector<16x32xf32>
    %593 = vector.extract_strided_slice %588 {offsets = [0, 96], sizes = [16, 32], strides = [1, 1]} : vector<16x128xf32> to vector<16x32xf32>
    %594 = arith.mulf %591, %580 : vector<16x32xf32>
    %595 = arith.mulf %590, %592 : vector<16x32xf32>
    %596 = arith.addf %594, %595 : vector<16x32xf32>
    %597 = math.tanh %596 : vector<16x32xf32>
    %598 = arith.mulf %593, %597 : vector<16x32xf32>
    %599 = vector.extract_strided_slice %2 {offsets = [7, 0, 0], sizes = [1, 16, 32], strides = [1, 1, 1]} : vector<8x16x32xi1> to vector<1x16x32xi1>
    %600 = vector.shape_cast %599 : vector<1x16x32xi1> to vector<16x32xi1>
    %601 = arith.select %600, %598, %579 : vector<16x32xi1>, vector<16x32xf32>
    %602 = arith.select %600, %596, %580 : vector<16x32xi1>, vector<16x32xf32>
    %c0_89 = arith.constant 0 : index
    %c0_90 = arith.constant 0 : index
    %603 = vector.load %arg9[%c0_89, %c0_90] : memref<32x128xbf16, #tpu.memory_space<vmem>>, vector<32x128xbf16>
    %cst_91 = arith.constant 0.000000e+00 : f32
    %604 = vector.broadcast %cst_91 : f32 to vector<16x32xf32>
    %cst_92 = arith.constant 0.000000e+00 : f32
    %605 = vector.broadcast %cst_92 : f32 to vector<16x32xf32>
    %606 = arith.truncf %604 : vector<16x32xf32> to vector<16x32xbf16>
    %cst_93 = arith.constant dense<0.000000e+00> : vector<16x128xf32>
    %607 = tpu.matmul %606, %603, %cst_93 {dimension_numbers = #tpu.dot_dimension_numbers<[1], [0], [0], [1], [0, 0, 1, 1], [], []>} : vector<16x32xbf16>, vector<32x128xbf16>, vector<16x128xf32> -> vector<16x128xf32>
    %608 = arith.addf %423, %607 : vector<16x128xf32>
    %609 = arith.negf %608 : vector<16x128xf32>
    %610 = math.exp %609 : vector<16x128xf32>
    %cst_94 = arith.constant 1.000000e+00 : f32
    %611 = vector.broadcast %cst_94 : f32 to vector<16x128xf32>
    %612 = arith.addf %611, %610 : vector<16x128xf32>
    %613 = arith.divf %611, %612 : vector<16x128xf32>
    %614 = math.tanh %608 : vector<16x128xf32>
    %615 = vector.extract_strided_slice %613 {offsets = [0, 0], sizes = [16, 32], strides = [1, 1]} : vector<16x128xf32> to vector<16x32xf32>
    %616 = vector.extract_strided_slice %613 {offsets = [0, 32], sizes = [16, 32], strides = [1, 1]} : vector<16x128xf32> to vector<16x32xf32>
    %617 = vector.extract_strided_slice %614 {offsets = [0, 64], sizes = [16, 32], strides = [1, 1]} : vector<16x128xf32> to vector<16x32xf32>
    %618 = vector.extract_strided_slice %613 {offsets = [0, 96], sizes = [16, 32], strides = [1, 1]} : vector<16x128xf32> to vector<16x32xf32>
    %619 = arith.mulf %616, %605 : vector<16x32xf32>
    %620 = arith.mulf %615, %617 : vector<16x32xf32>
    %621 = arith.addf %619, %620 : vector<16x32xf32>
    %622 = math.tanh %621 : vector<16x32xf32>
    %623 = arith.mulf %618, %622 : vector<16x32xf32>
    %624 = vector.extract_strided_slice %2 {offsets = [7, 0, 0], sizes = [1, 16, 32], strides = [1, 1, 1]} : vector<8x16x32xi1> to vector<1x16x32xi1>
    %625 = vector.shape_cast %624 : vector<1x16x32xi1> to vector<16x32xi1>
    %626 = arith.select %625, %623, %604 : vector<16x32xi1>, vector<16x32xf32>
    %627 = arith.select %625, %621, %605 : vector<16x32xi1>, vector<16x32xf32>
    %628 = arith.truncf %626 : vector<16x32xf32> to vector<16x32xbf16>
    %cst_95 = arith.constant dense<0.000000e+00> : vector<16x128xf32>
    %629 = tpu.matmul %628, %603, %cst_95 {dimension_numbers = #tpu.dot_dimension_numbers<[1], [0], [0], [1], [0, 0, 1, 1], [], []>} : vector<16x32xbf16>, vector<32x128xbf16>, vector<16x128xf32> -> vector<16x128xf32>
    %630 = arith.addf %422, %629 : vector<16x128xf32>
    %631 = arith.negf %630 : vector<16x128xf32>
    %632 = math.exp %631 : vector<16x128xf32>
    %cst_96 = arith.constant 1.000000e+00 : f32
    %633 = vector.broadcast %cst_96 : f32 to vector<16x128xf32>
    %634 = arith.addf %633, %632 : vector<16x128xf32>
    %635 = arith.divf %633, %634 : vector<16x128xf32>
    %636 = math.tanh %630 : vector<16x128xf32>
    %637 = vector.extract_strided_slice %635 {offsets = [0, 0], sizes = [16, 32], strides = [1, 1]} : vector<16x128xf32> to vector<16x32xf32>
    %638 = vector.extract_strided_slice %635 {offsets = [0, 32], sizes = [16, 32], strides = [1, 1]} : vector<16x128xf32> to vector<16x32xf32>
    %639 = vector.extract_strided_slice %636 {offsets = [0, 64], sizes = [16, 32], strides = [1, 1]} : vector<16x128xf32> to vector<16x32xf32>
    %640 = vector.extract_strided_slice %635 {offsets = [0, 96], sizes = [16, 32], strides = [1, 1]} : vector<16x128xf32> to vector<16x32xf32>
    %641 = arith.mulf %638, %627 : vector<16x32xf32>
    %642 = arith.mulf %637, %639 : vector<16x32xf32>
    %643 = arith.addf %641, %642 : vector<16x32xf32>
    %644 = math.tanh %643 : vector<16x32xf32>
    %645 = arith.mulf %640, %644 : vector<16x32xf32>
    %646 = vector.extract_strided_slice %2 {offsets = [6, 0, 0], sizes = [1, 16, 32], strides = [1, 1, 1]} : vector<8x16x32xi1> to vector<1x16x32xi1>
    %647 = vector.shape_cast %646 : vector<1x16x32xi1> to vector<16x32xi1>
    %648 = arith.select %647, %645, %626 : vector<16x32xi1>, vector<16x32xf32>
    %649 = arith.select %647, %643, %627 : vector<16x32xi1>, vector<16x32xf32>
    %650 = arith.truncf %648 : vector<16x32xf32> to vector<16x32xbf16>
    %cst_97 = arith.constant dense<0.000000e+00> : vector<16x128xf32>
    %651 = tpu.matmul %650, %603, %cst_97 {dimension_numbers = #tpu.dot_dimension_numbers<[1], [0], [0], [1], [0, 0, 1, 1], [], []>} : vector<16x32xbf16>, vector<32x128xbf16>, vector<16x128xf32> -> vector<16x128xf32>
    %652 = arith.addf %421, %651 : vector<16x128xf32>
    %653 = arith.negf %652 : vector<16x128xf32>
    %654 = math.exp %653 : vector<16x128xf32>
    %cst_98 = arith.constant 1.000000e+00 : f32
    %655 = vector.broadcast %cst_98 : f32 to vector<16x128xf32>
    %656 = arith.addf %655, %654 : vector<16x128xf32>
    %657 = arith.divf %655, %656 : vector<16x128xf32>
    %658 = math.tanh %652 : vector<16x128xf32>
    %659 = vector.extract_strided_slice %657 {offsets = [0, 0], sizes = [16, 32], strides = [1, 1]} : vector<16x128xf32> to vector<16x32xf32>
    %660 = vector.extract_strided_slice %657 {offsets = [0, 32], sizes = [16, 32], strides = [1, 1]} : vector<16x128xf32> to vector<16x32xf32>
    %661 = vector.extract_strided_slice %658 {offsets = [0, 64], sizes = [16, 32], strides = [1, 1]} : vector<16x128xf32> to vector<16x32xf32>
    %662 = vector.extract_strided_slice %657 {offsets = [0, 96], sizes = [16, 32], strides = [1, 1]} : vector<16x128xf32> to vector<16x32xf32>
    %663 = arith.mulf %660, %649 : vector<16x32xf32>
    %664 = arith.mulf %659, %661 : vector<16x32xf32>
    %665 = arith.addf %663, %664 : vector<16x32xf32>
    %666 = math.tanh %665 : vector<16x32xf32>
    %667 = arith.mulf %662, %666 : vector<16x32xf32>
    %668 = vector.extract_strided_slice %2 {offsets = [5, 0, 0], sizes = [1, 16, 32], strides = [1, 1, 1]} : vector<8x16x32xi1> to vector<1x16x32xi1>
    %669 = vector.shape_cast %668 : vector<1x16x32xi1> to vector<16x32xi1>
    %670 = arith.select %669, %667, %648 : vector<16x32xi1>, vector<16x32xf32>
    %671 = arith.select %669, %665, %649 : vector<16x32xi1>, vector<16x32xf32>
    %672 = arith.truncf %670 : vector<16x32xf32> to vector<16x32xbf16>
    %cst_99 = arith.constant dense<0.000000e+00> : vector<16x128xf32>
    %673 = tpu.matmul %672, %603, %cst_99 {dimension_numbers = #tpu.dot_dimension_numbers<[1], [0], [0], [1], [0, 0, 1, 1], [], []>} : vector<16x32xbf16>, vector<32x128xbf16>, vector<16x128xf32> -> vector<16x128xf32>
    %674 = arith.addf %420, %673 : vector<16x128xf32>
    %675 = arith.negf %674 : vector<16x128xf32>
    %676 = math.exp %675 : vector<16x128xf32>
    %cst_100 = arith.constant 1.000000e+00 : f32
    %677 = vector.broadcast %cst_100 : f32 to vector<16x128xf32>
    %678 = arith.addf %677, %676 : vector<16x128xf32>
    %679 = arith.divf %677, %678 : vector<16x128xf32>
    %680 = math.tanh %674 : vector<16x128xf32>
    %681 = vector.extract_strided_slice %679 {offsets = [0, 0], sizes = [16, 32], strides = [1, 1]} : vector<16x128xf32> to vector<16x32xf32>
    %682 = vector.extract_strided_slice %679 {offsets = [0, 32], sizes = [16, 32], strides = [1, 1]} : vector<16x128xf32> to vector<16x32xf32>
    %683 = vector.extract_strided_slice %680 {offsets = [0, 64], sizes = [16, 32], strides = [1, 1]} : vector<16x128xf32> to vector<16x32xf32>
    %684 = vector.extract_strided_slice %679 {offsets = [0, 96], sizes = [16, 32], strides = [1, 1]} : vector<16x128xf32> to vector<16x32xf32>
    %685 = arith.mulf %682, %671 : vector<16x32xf32>
    %686 = arith.mulf %681, %683 : vector<16x32xf32>
    %687 = arith.addf %685, %686 : vector<16x32xf32>
    %688 = math.tanh %687 : vector<16x32xf32>
    %689 = arith.mulf %684, %688 : vector<16x32xf32>
    %690 = vector.extract_strided_slice %2 {offsets = [4, 0, 0], sizes = [1, 16, 32], strides = [1, 1, 1]} : vector<8x16x32xi1> to vector<1x16x32xi1>
    %691 = vector.shape_cast %690 : vector<1x16x32xi1> to vector<16x32xi1>
    %692 = arith.select %691, %689, %670 : vector<16x32xi1>, vector<16x32xf32>
    %693 = arith.select %691, %687, %671 : vector<16x32xi1>, vector<16x32xf32>
    %694 = arith.truncf %692 : vector<16x32xf32> to vector<16x32xbf16>
    %cst_101 = arith.constant dense<0.000000e+00> : vector<16x128xf32>
    %695 = tpu.matmul %694, %603, %cst_101 {dimension_numbers = #tpu.dot_dimension_numbers<[1], [0], [0], [1], [0, 0, 1, 1], [], []>} : vector<16x32xbf16>, vector<32x128xbf16>, vector<16x128xf32> -> vector<16x128xf32>
    %696 = arith.addf %419, %695 : vector<16x128xf32>
    %697 = arith.negf %696 : vector<16x128xf32>
    %698 = math.exp %697 : vector<16x128xf32>
    %cst_102 = arith.constant 1.000000e+00 : f32
    %699 = vector.broadcast %cst_102 : f32 to vector<16x128xf32>
    %700 = arith.addf %699, %698 : vector<16x128xf32>
    %701 = arith.divf %699, %700 : vector<16x128xf32>
    %702 = math.tanh %696 : vector<16x128xf32>
    %703 = vector.extract_strided_slice %701 {offsets = [0, 0], sizes = [16, 32], strides = [1, 1]} : vector<16x128xf32> to vector<16x32xf32>
    %704 = vector.extract_strided_slice %701 {offsets = [0, 32], sizes = [16, 32], strides = [1, 1]} : vector<16x128xf32> to vector<16x32xf32>
    %705 = vector.extract_strided_slice %702 {offsets = [0, 64], sizes = [16, 32], strides = [1, 1]} : vector<16x128xf32> to vector<16x32xf32>
    %706 = vector.extract_strided_slice %701 {offsets = [0, 96], sizes = [16, 32], strides = [1, 1]} : vector<16x128xf32> to vector<16x32xf32>
    %707 = arith.mulf %704, %693 : vector<16x32xf32>
    %708 = arith.mulf %703, %705 : vector<16x32xf32>
    %709 = arith.addf %707, %708 : vector<16x32xf32>
    %710 = math.tanh %709 : vector<16x32xf32>
    %711 = arith.mulf %706, %710 : vector<16x32xf32>
    %712 = vector.extract_strided_slice %2 {offsets = [3, 0, 0], sizes = [1, 16, 32], strides = [1, 1, 1]} : vector<8x16x32xi1> to vector<1x16x32xi1>
    %713 = vector.shape_cast %712 : vector<1x16x32xi1> to vector<16x32xi1>
    %714 = arith.select %713, %711, %692 : vector<16x32xi1>, vector<16x32xf32>
    %715 = arith.select %713, %709, %693 : vector<16x32xi1>, vector<16x32xf32>
    %716 = arith.truncf %714 : vector<16x32xf32> to vector<16x32xbf16>
    %cst_103 = arith.constant dense<0.000000e+00> : vector<16x128xf32>
    %717 = tpu.matmul %716, %603, %cst_103 {dimension_numbers = #tpu.dot_dimension_numbers<[1], [0], [0], [1], [0, 0, 1, 1], [], []>} : vector<16x32xbf16>, vector<32x128xbf16>, vector<16x128xf32> -> vector<16x128xf32>
    %718 = arith.addf %418, %717 : vector<16x128xf32>
    %719 = arith.negf %718 : vector<16x128xf32>
    %720 = math.exp %719 : vector<16x128xf32>
    %cst_104 = arith.constant 1.000000e+00 : f32
    %721 = vector.broadcast %cst_104 : f32 to vector<16x128xf32>
    %722 = arith.addf %721, %720 : vector<16x128xf32>
    %723 = arith.divf %721, %722 : vector<16x128xf32>
    %724 = math.tanh %718 : vector<16x128xf32>
    %725 = vector.extract_strided_slice %723 {offsets = [0, 0], sizes = [16, 32], strides = [1, 1]} : vector<16x128xf32> to vector<16x32xf32>
    %726 = vector.extract_strided_slice %723 {offsets = [0, 32], sizes = [16, 32], strides = [1, 1]} : vector<16x128xf32> to vector<16x32xf32>
    %727 = vector.extract_strided_slice %724 {offsets = [0, 64], sizes = [16, 32], strides = [1, 1]} : vector<16x128xf32> to vector<16x32xf32>
    %728 = vector.extract_strided_slice %723 {offsets = [0, 96], sizes = [16, 32], strides = [1, 1]} : vector<16x128xf32> to vector<16x32xf32>
    %729 = arith.mulf %726, %715 : vector<16x32xf32>
    %730 = arith.mulf %725, %727 : vector<16x32xf32>
    %731 = arith.addf %729, %730 : vector<16x32xf32>
    %732 = math.tanh %731 : vector<16x32xf32>
    %733 = arith.mulf %728, %732 : vector<16x32xf32>
    %734 = vector.extract_strided_slice %2 {offsets = [2, 0, 0], sizes = [1, 16, 32], strides = [1, 1, 1]} : vector<8x16x32xi1> to vector<1x16x32xi1>
    %735 = vector.shape_cast %734 : vector<1x16x32xi1> to vector<16x32xi1>
    %736 = arith.select %735, %733, %714 : vector<16x32xi1>, vector<16x32xf32>
    %737 = arith.select %735, %731, %715 : vector<16x32xi1>, vector<16x32xf32>
    %738 = arith.truncf %736 : vector<16x32xf32> to vector<16x32xbf16>
    %cst_105 = arith.constant dense<0.000000e+00> : vector<16x128xf32>
    %739 = tpu.matmul %738, %603, %cst_105 {dimension_numbers = #tpu.dot_dimension_numbers<[1], [0], [0], [1], [0, 0, 1, 1], [], []>} : vector<16x32xbf16>, vector<32x128xbf16>, vector<16x128xf32> -> vector<16x128xf32>
    %740 = arith.addf %417, %739 : vector<16x128xf32>
    %741 = arith.negf %740 : vector<16x128xf32>
    %742 = math.exp %741 : vector<16x128xf32>
    %cst_106 = arith.constant 1.000000e+00 : f32
    %743 = vector.broadcast %cst_106 : f32 to vector<16x128xf32>
    %744 = arith.addf %743, %742 : vector<16x128xf32>
    %745 = arith.divf %743, %744 : vector<16x128xf32>
    %746 = math.tanh %740 : vector<16x128xf32>
    %747 = vector.extract_strided_slice %745 {offsets = [0, 0], sizes = [16, 32], strides = [1, 1]} : vector<16x128xf32> to vector<16x32xf32>
    %748 = vector.extract_strided_slice %745 {offsets = [0, 32], sizes = [16, 32], strides = [1, 1]} : vector<16x128xf32> to vector<16x32xf32>
    %749 = vector.extract_strided_slice %746 {offsets = [0, 64], sizes = [16, 32], strides = [1, 1]} : vector<16x128xf32> to vector<16x32xf32>
    %750 = vector.extract_strided_slice %745 {offsets = [0, 96], sizes = [16, 32], strides = [1, 1]} : vector<16x128xf32> to vector<16x32xf32>
    %751 = arith.mulf %748, %737 : vector<16x32xf32>
    %752 = arith.mulf %747, %749 : vector<16x32xf32>
    %753 = arith.addf %751, %752 : vector<16x32xf32>
    %754 = math.tanh %753 : vector<16x32xf32>
    %755 = arith.mulf %750, %754 : vector<16x32xf32>
    %756 = vector.extract_strided_slice %2 {offsets = [1, 0, 0], sizes = [1, 16, 32], strides = [1, 1, 1]} : vector<8x16x32xi1> to vector<1x16x32xi1>
    %757 = vector.shape_cast %756 : vector<1x16x32xi1> to vector<16x32xi1>
    %758 = arith.select %757, %755, %736 : vector<16x32xi1>, vector<16x32xf32>
    %759 = arith.select %757, %753, %737 : vector<16x32xi1>, vector<16x32xf32>
    %760 = arith.truncf %758 : vector<16x32xf32> to vector<16x32xbf16>
    %cst_107 = arith.constant dense<0.000000e+00> : vector<16x128xf32>
    %761 = tpu.matmul %760, %603, %cst_107 {dimension_numbers = #tpu.dot_dimension_numbers<[1], [0], [0], [1], [0, 0, 1, 1], [], []>} : vector<16x32xbf16>, vector<32x128xbf16>, vector<16x128xf32> -> vector<16x128xf32>
    %762 = arith.addf %416, %761 : vector<16x128xf32>
    %763 = arith.negf %762 : vector<16x128xf32>
    %764 = math.exp %763 : vector<16x128xf32>
    %cst_108 = arith.constant 1.000000e+00 : f32
    %765 = vector.broadcast %cst_108 : f32 to vector<16x128xf32>
    %766 = arith.addf %765, %764 : vector<16x128xf32>
    %767 = arith.divf %765, %766 : vector<16x128xf32>
    %768 = math.tanh %762 : vector<16x128xf32>
    %769 = vector.extract_strided_slice %767 {offsets = [0, 0], sizes = [16, 32], strides = [1, 1]} : vector<16x128xf32> to vector<16x32xf32>
    %770 = vector.extract_strided_slice %767 {offsets = [0, 32], sizes = [16, 32], strides = [1, 1]} : vector<16x128xf32> to vector<16x32xf32>
    %771 = vector.extract_strided_slice %768 {offsets = [0, 64], sizes = [16, 32], strides = [1, 1]} : vector<16x128xf32> to vector<16x32xf32>
    %772 = vector.extract_strided_slice %767 {offsets = [0, 96], sizes = [16, 32], strides = [1, 1]} : vector<16x128xf32> to vector<16x32xf32>
    %773 = arith.mulf %770, %759 : vector<16x32xf32>
    %774 = arith.mulf %769, %771 : vector<16x32xf32>
    %775 = arith.addf %773, %774 : vector<16x32xf32>
    %776 = math.tanh %775 : vector<16x32xf32>
    %777 = arith.mulf %772, %776 : vector<16x32xf32>
    %778 = vector.extract_strided_slice %2 {offsets = [0, 0, 0], sizes = [1, 16, 32], strides = [1, 1, 1]} : vector<8x16x32xi1> to vector<1x16x32xi1>
    %779 = vector.shape_cast %778 : vector<1x16x32xi1> to vector<16x32xi1>
    %780 = arith.select %779, %777, %758 : vector<16x32xi1>, vector<16x32xf32>
    %781 = arith.select %779, %775, %759 : vector<16x32xi1>, vector<16x32xf32>
    %782 = tpu.concatenate %218, %397, %601, %780, %219, %398, %602, %781 in 1 : vector<16x32xf32>, vector<16x32xf32>, vector<16x32xf32>, vector<16x32xf32>, vector<16x32xf32>, vector<16x32xf32>, vector<16x32xf32>, vector<16x32xf32> -> vector<16x256xf32>
    %783 = arith.truncf %782 : vector<16x256xf32> to vector<16x256xbf16>
    %c0_109 = arith.constant 0 : index
    %c0_110 = arith.constant 0 : index
    %784 = vector.load %arg11[%c0_109, %c0_110] : memref<256x128xbf16, #tpu.memory_space<vmem>>, vector<256x128xbf16>
    %cst_111 = arith.constant dense<0.000000e+00> : vector<16x128xf32>
    %785 = tpu.matmul %783, %784, %cst_111 {dimension_numbers = #tpu.dot_dimension_numbers<[1], [0], [0], [1], [0, 0, 1, 1], [], []>} : vector<16x256xbf16>, vector<256x128xbf16>, vector<16x128xf32> -> vector<16x128xf32>
    %c0_112 = arith.constant 0 : index
    %c0_113 = arith.constant 0 : index
    %786 = vector.load %arg12[%c0_112, %c0_113] : memref<1x128xf32, #tpu.memory_space<vmem>>, vector<1x128xf32>
    %787 = vector.broadcast %786 : vector<1x128xf32> to vector<16x128xf32>
    %788 = arith.addf %785, %787 : vector<16x128xf32>
    %c0_114 = arith.constant 0 : index
    %c0_115 = arith.constant 0 : index
    %789 = vector.load %arg13[%c0_114, %c0_115] : memref<16x128xf32, #tpu.memory_space<vmem>>, vector<16x128xf32>
    tpu.vector_store %arg13[%c0_114, %c0_115], %788 {strides = array<i32>} : memref<16x128xf32, #tpu.memory_space<vmem>>, vector<16x128xf32>,
    return
  }
  func.func @transform_0(%arg0: i32) -> (i32, i32, i32) {
    %c0_i32 = arith.constant 0 : i32
    %c0_i32_0 = arith.constant 0 : i32
    %c0_i32_1 = arith.constant 0 : i32
    return %c0_i32, %arg0, %c0_i32_0 : i32, i32, i32
  }
  func.func @transform_1(%arg0: i32) -> (i32, i32, i32) {
    %c0_i32 = arith.constant 0 : i32
    %c0_i32_0 = arith.constant 0 : i32
    %c0_i32_1 = arith.constant 0 : i32
    return %c0_i32, %arg0, %c0_i32_0 : i32, i32, i32
  }
  func.func @transform_2(%arg0: i32) -> (i32, i32) {
    %c0_i32 = arith.constant 0 : i32
    %c0_i32_0 = arith.constant 0 : i32
    %c0_i32_1 = arith.constant 0 : i32
    return %c0_i32, %c0_i32_0 : i32, i32
  }
  func.func @transform_3(%arg0: i32) -> (i32, i32) {
    %c0_i32 = arith.constant 0 : i32
    %c0_i32_0 = arith.constant 0 : i32
    %c0_i32_1 = arith.constant 0 : i32
    return %c0_i32, %c0_i32_0 : i32, i32
  }
  func.func @transform_4(%arg0: i32) -> (i32, i32) {
    %c0_i32 = arith.constant 0 : i32
    %c0_i32_0 = arith.constant 0 : i32
    %c0_i32_1 = arith.constant 0 : i32
    return %c0_i32, %c0_i32_0 : i32, i32
  }
  func.func @transform_5(%arg0: i32) -> (i32, i32) {
    %c0_i32 = arith.constant 0 : i32
    %c0_i32_0 = arith.constant 0 : i32
    %c0_i32_1 = arith.constant 0 : i32
    return %c0_i32, %c0_i32_0 : i32, i32
  }
  func.func @transform_6(%arg0: i32) -> (i32, i32) {
    %c0_i32 = arith.constant 0 : i32
    %c0_i32_0 = arith.constant 0 : i32
    %c0_i32_1 = arith.constant 0 : i32
    return %c0_i32, %c0_i32_0 : i32, i32
  }
  func.func @transform_7(%arg0: i32) -> (i32, i32) {
    %c0_i32 = arith.constant 0 : i32
    %c0_i32_0 = arith.constant 0 : i32
    %c0_i32_1 = arith.constant 0 : i32
    return %c0_i32, %c0_i32_0 : i32, i32
  }
  func.func @transform_8(%arg0: i32) -> (i32, i32) {
    %c0_i32 = arith.constant 0 : i32
    %c0_i32_0 = arith.constant 0 : i32
    %c0_i32_1 = arith.constant 0 : i32
    return %c0_i32, %c0_i32_0 : i32, i32
  }
  func.func @transform_9(%arg0: i32) -> (i32, i32) {
    %c0_i32 = arith.constant 0 : i32
    %c0_i32_0 = arith.constant 0 : i32
    %c0_i32_1 = arith.constant 0 : i32
    return %c0_i32, %c0_i32_0 : i32, i32
  }
  func.func @transform_10(%arg0: i32) -> (i32, i32) {
    %c0_i32 = arith.constant 0 : i32
    %c0_i32_0 = arith.constant 0 : i32
    %c0_i32_1 = arith.constant 0 : i32
    return %c0_i32, %c0_i32_0 : i32, i32
  }
  func.func @transform_11(%arg0: i32) -> (i32, i32) {
    %c0_i32 = arith.constant 0 : i32
    %c0_i32_0 = arith.constant 0 : i32
    %c0_i32_1 = arith.constant 0 : i32
    return %c0_i32, %c0_i32_0 : i32, i32
  }
  func.func @transform_12(%arg0: i32) -> (i32, i32) {
    %c0_i32 = arith.constant 0 : i32
    %c0_i32_0 = arith.constant 0 : i32
    return %arg0, %c0_i32 : i32, i32
  }
}

</mosaic_0001>

<bundles_post_ra>
// kernel: tpu_custom_call.1
= control target key start
LH: loop header
LB: loop body
LE: loop exit
PB: predicated region body
PF: predicated region fallthrough
CT: control target
= control target key end

     0   :  { %17 = vsyncpa [#allocation3], 0  ;;  %s8432_s0 = inlined_call_operand.hbm [shape: bf16[8,16,32], index: 0, kind: input, shape index: {}]   ;;  %s8433_s1 = inlined_call_operand.hbm [shape: f32[8,16,32], index: 1, kind: input, shape index: {}]   ;;  %s8434_s2 = inlined_call_operand.hbm [shape: bf16[32,256], index: 2, kind: input, shape index: {}]   ;;  %s8435_s3 = inlined_call_operand.hbm [shape: bf16[32,128], index: 3, kind: input, shape index: {}]   ;;  %s8436_s4 = inlined_call_operand.hbm [shape: bf16[32,128], index: 4, kind: input, shape index: {}]   ;;  %s8437_s5 = inlined_call_operand.vmem [shape: f32[1,256], index: 5, kind: input, shape index: {}]   ;;  %s8438_s6 = inlined_call_operand.hbm [shape: bf16[64,256], index: 6, kind: input, shape index: {}]   ;;  %s8439_s7 = inlined_call_operand.vmem [shape: bf16[32,128], index: 7, kind: input, shape index: {}]   ;;  %s8440_s8 = inlined_call_operand.hbm [shape: bf16[32,128], index: 8, kind: input, shape index: {}]   ;;  %s8441_s9 = inlined_call_operand.vmem [shape: f32[1,256], index: 9, kind: input, shape index: {}]   ;;  %s8442_s10 = inlined_call_operand.hbm [shape: bf16[256,128], index: 10, kind: input, shape index: {}]   ;;  %s8443_s11 = inlined_call_operand.vmem [shape: f32[1,128], index: 11, kind: input, shape index: {}]   ;;  %s8444_s12 = inlined_call_operand.hbm [shape: f32[16,128], index: 12, kind: output, shape index: {}]  }
   0x1   :  { %18 = vsyncpa [#allocation6], 0 }
   0x2   :  { %19 = vsyncpa [#allocation9], 0 }
   0x3   :  { %20 = vsyncpa [#allocation12], 0 }
   0x4   :  { %21 = vsyncpa [#allocation15], 0 }
   0x5   :  { %22 = vsyncpa [#allocation4], 0  ;;  %s6485_s21 = smov [#allocation5]   ;;  %s6275_s25 = scalar_lea.hbm %s8433_s1, 2048 }
   0x6   :  { %s40_s22 = sshll.u32 %s6485_s21, 4  ;;  %p6276_p0 = scmp.ne.s32.totalorder %s8433_s1, %s6275_s25  ;;  %s41_s22 = int_to_ptr.vmem [resolvable:$true] %s40_s22 }
   0x7   :  { %p6279_p1 = scmp.lt.u32.totalorder %s6275_s25, %s8433_s1 }
   0x9   :  { %p6281_p2 = pnand %p6279_p1, %p6276_p0 }
   0xb   :  { %6284 = shalt.err (!%p6281_p2)
}
   0xc   :  { %s6285_s30 = scalar_lea.vmem %s41_s22, 2048  ;;  %p6290_p4 = scmp.lt.s32.totalorder %s41_s22, %s41_s22 }
   0xd   :  { %p6286_p3 = scmp.ne.s32.totalorder %s41_s22, %s6285_s30  ;;  %p6291_p5 = scmp.lt.s32.totalorder %s6285_s30, %s6285_s30 }
   0xf   :  { %p6292_p6 = por %p6291_p5, %p6290_p4 }
  0x11   :  { %p6293_p7 = pnand %p6292_p6, %p6286_p3 }
  0x13   :  { %6296 = shalt.err (!%p6293_p7)
}
  0x14   :  { %s6486_s13 = smov 128   ;;  %s6487_s14 = smov 8  }
  0x15   :  { %46 = dma.hbm_to_vmem [thread:$0]  %s8433_s1, 2048, %s41_s22, [#allocation6], %s6486_s13, %s6486_s13, %s6487_s14  }
  0x16   :  { %s6488_s17 = smov [#allocation8]   ;;  %s6489_s19 = smov [#allocation11]  }
  0x17   :  { %s64_s18 = sshll.u32 %s6488_s17, 4  ;;  %s90_s20 = sshll.u32 %s6489_s19, 4  ;;  %s65_s18 = int_to_ptr.vmem [resolvable:$true] %s64_s18  ;;  %s91_s20 = int_to_ptr.vmem [resolvable:$true] %s90_s20 }
  0x18   :  { %s6297_s24 = scalar_lea.hbm %s8435_s3, 256 }
  0x19   :  { %p6298_p8 = scmp.ne.s32.totalorder %s8435_s3, %s6297_s24  ;;  %p6301_p9 = scmp.lt.u32.totalorder %s6297_s24, %s8435_s3 }
  0x1b   :  { %p6303_p10 = pnand %p6301_p9, %p6298_p8 }
  0x1d   :  { %6306 = shalt.err (!%p6303_p10)
}
  0x1e   :  { %s6307_s1 = scalar_lea.vmem %s65_s18, 256  ;;  %p6312_p12 = scmp.lt.s32.totalorder %s65_s18, %s65_s18 }
  0x1f   :  { %p6308_p11 = scmp.ne.s32.totalorder %s65_s18, %s6307_s1  ;;  %p6313_p13 = scmp.lt.s32.totalorder %s6307_s1, %s6307_s1 }
  0x21   :  { %p6314_p0 = por %p6313_p13, %p6312_p12 }
  0x23   :  { %p6315_p1 = pnand %p6314_p0, %p6308_p11 }
  0x25   :  { %6318 = shalt.err (!%p6315_p1)
}
  0x26   :  { %s6490_s22 = smov 64   ;;  %s6491_s29 = smov 4  }
  0x27   :  { %70 = dma.hbm_to_vmem [thread:$0]  %s8435_s3, 256, %s65_s18, [#allocation9], %s6490_s22, %s6490_s22, %s6491_s29  }
  0x28   :  { %s6319_s19 = scalar_lea.hbm %s8438_s6, 1024 }
  0x29   :  { %p6320_p2 = scmp.ne.s32.totalorder %s8438_s6, %s6319_s19  ;;  %p6323_p3 = scmp.lt.u32.totalorder %s6319_s19, %s8438_s6 }
  0x2b   :  { %p6325_p4 = pnand %p6323_p3, %p6320_p2 }
  0x2d   :  { %6328 = shalt.err (!%p6325_p4)
}
  0x2e   :  { %s6329_s26 = scalar_lea.vmem %s91_s20, 1024  ;;  %p6334_p6 = scmp.lt.s32.totalorder %s91_s20, %s91_s20 }
  0x2f   :  { %p6330_p5 = scmp.ne.s32.totalorder %s91_s20, %s6329_s26  ;;  %p6335_p7 = scmp.lt.s32.totalorder %s6329_s26, %s6329_s26 }
  0x31   :  { %p6336_p8 = por %p6335_p7, %p6334_p6 }
  0x33   :  { %p6337_p9 = pnand %p6336_p8, %p6330_p5 }
  0x35   :  { %6340 = shalt.err (!%p6337_p9)
}
  0x36   :  { %96 = dma.hbm_to_vmem [thread:$0]  %s8438_s6, 1024, %s91_s20, [#allocation12], %s6486_s13, %s6486_s13, %s6487_s14  }
  0x37   :  { %s6492_s27 = smov [#allocation2]   ;;  %s6493_s1 = smov [#allocation7]  }
  0x38   :  { %s28_s28 = sshll.u32 %s6492_s27, 4  ;;  %s52_s30 = sshll.u32 %s6493_s1, 4  ;;  %s29_s28 = int_to_ptr.vmem [resolvable:$true] %s28_s28  ;;  %s53_s30 = int_to_ptr.vmem [resolvable:$true] %s52_s30 }
  0x39   :  { %s6341_s17 = scalar_lea.hbm %s8432_s0, 1024 }
  0x3a   :  { %p6342_p10 = scmp.ne.s32.totalorder %s8432_s0, %s6341_s17  ;;  %p6345_p11 = scmp.lt.u32.totalorder %s6341_s17, %s8432_s0 }
  0x3c   :  { %p6347_p12 = pnand %p6345_p11, %p6342_p10 }
  0x3e   :  { %6350 = shalt.err (!%p6347_p12)
}
  0x3f   :  { %s6351_s6 = scalar_lea.vmem %s29_s28, 1024  ;;  %p6356_p0 = scmp.lt.s32.totalorder %s29_s28, %s29_s28 }
  0x40   :  { %p6352_p13 = scmp.ne.s32.totalorder %s29_s28, %s6351_s6  ;;  %p6357_p1 = scmp.lt.s32.totalorder %s6351_s6, %s6351_s6 }
  0x42   :  { %p6358_p2 = por %p6357_p1, %p6356_p0 }
  0x44   :  { %p6359_p3 = pnand %p6358_p2, %p6352_p13 }
  0x46   :  { %6362 = shalt.err (!%p6359_p3)
}
  0x47   :  { %34 = dma.hbm_to_vmem [thread:$0]  %s8432_s0, 1024, %s29_s28, [#allocation3], %s6490_s22, %s6490_s22, %s6491_s29  }
  0x48   :  { %s6363_s18 = scalar_lea.hbm %s8434_s2, 512 }
  0x49   :  { %p6364_p4 = scmp.ne.s32.totalorder %s8434_s2, %s6363_s18  ;;  %p6367_p5 = scmp.lt.u32.totalorder %s6363_s18, %s8434_s2 }
  0x4b   :  { %p6369_p6 = pnand %p6367_p5, %p6364_p4 }
  0x4d   :  { %6372 = shalt.err (!%p6369_p6)
}
  0x4e   :  { %s6373_s17 = scalar_lea.vmem %s53_s30, 512  ;;  %p6378_p8 = scmp.lt.s32.totalorder %s53_s30, %s53_s30 }
  0x4f   :  { %p6374_p7 = scmp.ne.s32.totalorder %s53_s30, %s6373_s17  ;;  %p6379_p9 = scmp.lt.s32.totalorder %s6373_s17, %s6373_s17 }
  0x51   :  { %p6380_p10 = por %p6379_p9, %p6378_p8 }
  0x53   :  { %p6381_p11 = pnand %p6380_p10, %p6374_p7 }
  0x55   :  { %6384 = shalt.err (!%p6381_p11)
}
  0x56   :  { %58 = dma.hbm_to_vmem [thread:$0]  %s8434_s2, 512, %s53_s30, [#allocation6], %s6486_s13, %s6486_s13, %s6487_s14  }
  0x57   :  { %s6494_s19 = smov [#allocation10]   ;;  %s6495_s23 = smov [#allocation13]  }
  0x58   :  { %s76_s21 = sshll.u32 %s6494_s19, 4  ;;  %s104_s24 = sshll.u32 %s6495_s23, 4  ;;  %s77_s21 = int_to_ptr.vmem [resolvable:$true] %s76_s21  ;;  %s105_s24 = int_to_ptr.vmem [resolvable:$true] %s104_s24 }
  0x59   :  { %s6385_s25 = scalar_lea.hbm %s8436_s4, 256 }
  0x5a   :  { %p6386_p12 = scmp.ne.s32.totalorder %s8436_s4, %s6385_s25  ;;  %p6389_p13 = scmp.lt.u32.totalorder %s6385_s25, %s8436_s4 }
  0x5c   :  { %p6391_p0 = pnand %p6389_p13, %p6386_p12 }
  0x5e   :  { %6394 = shalt.err (!%p6391_p0)
}
  0x5f   :  { %s6395_s2 = scalar_lea.vmem %s77_s21, 256  ;;  %p6400_p2 = scmp.lt.s32.totalorder %s77_s21, %s77_s21 }
  0x60   :  { %p6396_p1 = scmp.ne.s32.totalorder %s77_s21, %s6395_s2  ;;  %p6401_p3 = scmp.lt.s32.totalorder %s6395_s2, %s6395_s2 }
  0x62   :  { %p6402_p4 = por %p6401_p3, %p6400_p2 }
  0x64   :  { %p6403_p5 = pnand %p6402_p4, %p6396_p1 }
  0x66   :  { %6406 = shalt.err (!%p6403_p5)
}
  0x67   :  { %82 = dma.hbm_to_vmem [thread:$0]  %s8436_s4, 256, %s77_s21, [#allocation9], %s6490_s22, %s6490_s22, %s6491_s29  }
  0x68   :  { %s6407_s17 = scalar_lea.hbm %s8440_s8, 256 }
  0x69   :  { %p6408_p6 = scmp.ne.s32.totalorder %s8440_s8, %s6407_s17  ;;  %p6411_p7 = scmp.lt.u32.totalorder %s6407_s17, %s8440_s8 }
  0x6b   :  { %p6413_p8 = pnand %p6411_p7, %p6408_p6 }
  0x6d   :  { %6416 = shalt.err (!%p6413_p8)
}
  0x6e   :  { %s6417_s6 = scalar_lea.vmem %s105_s24, 256  ;;  %p6422_p10 = scmp.lt.s32.totalorder %s105_s24, %s105_s24 }
  0x6f   :  { %p6418_p9 = scmp.ne.s32.totalorder %s105_s24, %s6417_s6  ;;  %p6423_p11 = scmp.lt.s32.totalorder %s6417_s6, %s6417_s6 }
  0x71   :  { %p6424_p12 = por %p6423_p11, %p6422_p10 }
  0x73   :  { %p6425_p13 = pnand %p6424_p12, %p6418_p9 }
  0x75   :  { %6428 = shalt.err (!%p6425_p13)
}
  0x76   :  { %110 = dma.hbm_to_vmem [thread:$0]  %s8440_s8, 256, %s105_s24, [#allocation12], %s6490_s22, %s6490_s22, %s6491_s29  }
  0x77   :  { %s6496_s20 = smov [#allocation14]   ;;  %s6429_s18 = scalar_lea.hbm %s8442_s10, 2048 }
  0x78   :  { %s118_s25 = sshll.u32 %s6496_s20, 4  ;;  %p6430_p0 = scmp.ne.s32.totalorder %s8442_s10, %s6429_s18  ;;  %s119_s25 = int_to_ptr.vmem [resolvable:$true] %s118_s25 }
  0x79   :  { %p6433_p1 = scmp.lt.u32.totalorder %s6429_s18, %s8442_s10 }
  0x7b   :  { %p6435_p2 = pnand %p6433_p1, %p6430_p0 }
  0x7d   :  { %6438 = shalt.err (!%p6435_p2)
}
  0x7e   :  { %s6439_s15 = scalar_lea.vmem %s119_s25, 2048  ;;  %p6444_p4 = scmp.lt.s32.totalorder %s119_s25, %s119_s25 }
  0x7f   :  { %p6440_p3 = scmp.ne.s32.totalorder %s119_s25, %s6439_s15  ;;  %p6445_p5 = scmp.lt.s32.totalorder %s6439_s15, %s6439_s15 }
  0x81   :  { %p6446_p6 = por %p6445_p5, %p6444_p4 }
  0x83   :  { %p6447_p7 = pnand %p6446_p6, %p6440_p3 }
  0x85   :  { %6450 = shalt.err (!%p6447_p7)
}
  0x86   :  { %124 = dma.hbm_to_vmem [thread:$0]  %s8442_s10, 2048, %s119_s25, [#allocation15], %s6490_s22, %s6490_s22, %s6491_s29  }
  0x87   :  { %6473 = dma.done.wait [#allocation3], 1024  }
  0x88   :  { %6474 = vsyncadd [#allocation3], 4294966272 }
  0x89   :  { %6475 = dma.done.wait [#allocation6], 2560  }
  0x8a   :  { %6476 = vsyncadd [#allocation6], 4294964736 }
  0x8b   :  { %6477 = dma.done.wait [#allocation9], 512  }
  0x8c   :  { %6478 = vsyncadd [#allocation9], 4294966784 }
  0x8d   :  { %6479 = dma.done.wait [#allocation12], 1280  }
  0x8e   :  { %6480 = vsyncadd [#allocation12], 4294966016 }
  0x8f   :  { %6481 = dma.done.wait [#allocation15], 2048  }
  0x90   :  { %6482 = vsyncadd [#allocation15], 4294965248  ;;  %v8447_v0 = vmov 0   ;;  %v8449_v1 = vmov 0.0   ;;  %vm6499_vm0 = vmmov 0   ;;  %v6692_v6 = vld [vmem:[#allocation8] sm:$0xff]   ;;  %v253_v18 = vlaneseq }
  0x91   :  { %340 = vmatprep.mubr.bf16.mxu0 %v8447_v0  ;;  %5195 = vmatprep.subr.bf16.mxu1 %v8449_v1  ;;  %v5706_v2 = vld [vmem:[#allocation7 + $0x4] ss:$8 sps:$4 sm:$0xff]   ;;  %v5708_v3 = vld [vmem:[#allocation7] ss:$8 sps:$4 sm:$0xff]   ;;  %v5709_v4 = vld [vmem:[#allocation7 + $0x14] ss:$8 sps:$4 sm:$0xff]  }
  0x92   :  { %5199 = vmatprep.mubr.msk.bf16.mxu1 %vm6499_vm0, %v8449_v1  ;;  %308 = vmatprep.subr.bf16.mxu0 %v5706_v2  ;;  %v5711_v5 = vld [vmem:[#allocation7 + $0x10] ss:$8 sps:$4 sm:$0xff]   ;;  %v5712_v7 = vld [vmem:[#allocation2] sm:$0xff]   ;;  %vm283_vm1 = vcmask 261120   ;;  %v6698_v8 = vld [vmem:[#allocation8 + $0x8] sm:$0xff]   ;;  %v6732_v19 = vshrl.u32 %v253_v18, 7 }
  0x93   :  { %309 = vmatpush1.bf16.msra.mxu0 %v5708_v3  ;;  %5196 = vmatpush3.bf16.msra.mxu1 %v6692_v6  ;;  %v5714_v9 = vld [vmem:[#allocation2 + $0x8] sm:$0xff]   ;;  %v5715_v10 = vld [vmem:[#allocation2 + $0x10] sm:$0xff]   ;;  %v5716_v11 = vld [vmem:[#allocation2 + $0x18] sm:$0xff]   ;;  %s6501_s16 = smov 96   ;;  %s6502_s3 = smov [#allocation16]  }
  0x94   :  { %310 = vmatprep.subr.bf16.mxu0 %v5709_v4  ;;  %5197 = vmatprep.subr.bf16.mxu1 %v8449_v1  ;;  %v5717_v12 = vld [vmem:[#allocation2 + $0x20] sm:$0xff]   ;;  %v5719_v13 = vld [vmem:[#allocation2 + $0x28] sm:$0xff]   ;;  %v5720_v14 = vld [vmem:[#allocation2 + $0x30] sm:$0xff]   ;;  %v8445_v20 = vsub.s32 1, %v6732_v19  ;;  %v8446_v27 = vsub.s32 0, %v6732_v19  ;;  %s4900_s18 = sshll.u32 %s6502_s3, 4  ;;  %s4901_s18 = int_to_ptr.vmem [resolvable:$true] %s4900_s18 }
  0x95   :  { %v5721_v15 = vld [vmem:[#allocation2 + $0x38] sm:$0xff]   ;;  %v5722_v16 = vld [vmem:[#allocation10] sm:$0xff]   ;;  %v251_v21 = vld [vmem:[%s8437_s5] sm:$0x3]  ;;  %s6500_s5 = smov 32   ;;  %s6451_s27 = scalar_lea.vmem %s4901_s18, 256 }
  0x96   :  { %v5723_v17 = vld [vmem:[#allocation10 + $0x8] sm:$0xff]   ;;  %v6740_v22 = vrot.slane %v251_v21, %v8445_v20  ;;  %v256_v30 = vrot.slane %v251_v21, %v8446_v27  ;;  %p6452_p8 = scmp.ne.s32.totalorder %s4901_s18, %s6451_s27  ;;  %p6456_p9 = scmp.lt.s32.totalorder %s4901_s18, %s4901_s18 }
  0x97   :  { %311 = vmatpush1.bf16.msra.mxu0 %v5711_v5  ;;  %5198 = vmatpush3.bf16.msra.mxu1 %v6698_v8  ;;  %p6457_p10 = scmp.lt.s32.totalorder %s6451_s27, %s6451_s27 }
  0x98   :  { %5187 = vmatprep.subr.bf16.mxu0 %v8449_v1  ;;  %5203 = vmatprep.subr.bf16.mxu1 %v8449_v1 }
  0x99   :  { %p6458_p11 = por %p6457_p10, %p6456_p9 }
  0x9a   :  { %4928 = vmatmul.mubr.msk.bf16.vlgmr.msra.gmra.mrb[0].mxu0 %vm283_vm1, %v5712_v7 }
  0x9b   :  { %5188 = vmatpush3.bf16.msra.mxu0 %v6692_v6  ;;  %350 = vmatprep.mubr.bf16.mxu0 %v8447_v0  ;;  %p6459_p12 = pnand %p6458_p11, %p6452_p8 }
  0x9c   :  { %5189 = vmatprep.subr.bf16.mxu0 %v8449_v1 }
  0x9f   :  { %5190 = vmatpush3.bf16.msra.mxu0 %v6698_v8 }
  0xa0   :  { %5251 = vmatprep.subr.bf16.mxu0 %v8449_v1 }
  0xa2   :  { %4929 = vmatmul.mubr.msk.bf16.gmra.mrb[4].mxu0 %vm283_vm1, %v5714_v9 }
  0xa3   :  { %360 = vmatprep.mubr.bf16.mxu0 %v8447_v0 }
  0xaa   :  { %4930 = vmatmul.mubr.msk.bf16.gmra.mrb[8].mxu0 %vm283_vm1, %v5715_v10 }
  0xab   :  { %370 = vmatprep.mubr.bf16.mxu0 %v8447_v0 }
  0xb2   :  { %4931 = vmatmul.mubr.msk.bf16.gmra.mrb[12].mxu0 %vm283_vm1, %v5716_v11 }
  0xb3   :  { %380 = vmatprep.mubr.bf16.mxu0 %v8447_v0 }
  0xba   :  { %4932 = vmatmul.mubr.msk.bf16.gmra.mrb[16].mxu0 %vm283_vm1, %v5717_v12 }
  0xbb   :  { %390 = vmatprep.mubr.bf16.mxu0 %v8447_v0 }
  0xc2   :  { %4933 = vmatmul.mubr.msk.bf16.gmra.mrb[20].mxu0 %vm283_vm1, %v5719_v13 }
  0xc3   :  { %400 = vmatprep.mubr.bf16.mxu0 %v8447_v0 }
  0xca   :  { %4934 = vmatmul.mubr.msk.bf16.gmra.mrb[24].mxu0 %vm283_vm1, %v5720_v14 }
  0xcb   :  { %410 = vmatprep.mubr.bf16.mxu0 %v8447_v0 }
  0xd2   :  { %4935 = vmatmul.mubr.msk.bf16.gmra.mrb[28].mxu0 %vm283_vm1, %v5721_v15 }
  0xd3   :  { %5191 = vmatprep.mubr.msk.bf16.mxu0 %vm6499_vm0, %v8449_v1 }
  0xda   :  { %5192 = vmatmul.mubr.bf16.vlgmr.msra.gmra.mrb[32].mxu0 %v8447_v0 }
  0xdb   :  { %5252 = vmatpush3.bf16.msra.mxu0 %v5722_v16  ;;  %5255 = vmatprep.mubr.msk.bf16.mxu0 %vm6499_vm0, %v8449_v1 }
  0xdc   :  { %5253 = vmatprep.subr.bf16.mxu0 %v8449_v1 }
  0xdf   :  { %5254 = vmatpush3.bf16.msra.mxu0 %v5723_v17 }
  0xe0   :  { %5267 = vmatprep.subr.bf16.mxu0 %v8449_v1 }
  0xe2   :  { %5256 = vmatmul.mubr.bf16.vlgmr.msra.gmra.mrb[36].mxu0 %v8447_v0 }
  0xe3   :  { %5268 = vmatpush3.bf16.msra.mxu0 %v5722_v16  ;;  %5271 = vmatprep.mubr.msk.bf16.mxu0 %vm6499_vm0, %v8449_v1 }
  0xe4   :  { %5269 = vmatprep.subr.bf16.mxu0 %v8449_v1 }
  0xe7   :  { %5270 = vmatpush3.bf16.msra.mxu0 %v5723_v17 }
  0xe8   :  { %5283 = vmatprep.subr.bf16.mxu0 %v8449_v1 }
 0x16d   :  { %v342_v23 = vpop.f32.mrb[0].mxu0 }
 0x16e   :  { %v344_v24 = vpop.f32.mrb[1].mxu0 }
 0x16f   :  { %v6743_v25 = vadd.f32 %v344_v24, %v6740_v22  ;;  %v346_v26 = vpop.f32.mrb[2].mxu0 }
 0x170   :  { %v348_v28 = vpop.f32.mrb[3].mxu0 }
 0x171   :  { %v6747_v29 = vadd.f32 %v348_v28, %v6740_v22 }
 0x175   :  { %v352_v31 = vpop.f32.mrb[4].mxu0 }
 0x176   :  { %v6751_v32 = vadd.f32 %v352_v31, %v256_v30  ;;  %v354_v33 = vpop.f32.mrb[5].mxu0 }
 0x177   :  { %v6754_v34 = vadd.f32 %v354_v33, %v6740_v22  ;;  %v356_v35 = vpop.f32.mrb[6].mxu0 }
 0x178   :  { %v6756_v36 = vadd.f32 %v356_v35, %v256_v30  ;;  %v358_v37 = vpop.f32.mrb[7].mxu0 }
 0x179   :  { %v6759_v38 = vadd.f32 %v358_v37, %v6740_v22  ;;  %v343_v37 = vadd.f32 %v342_v23, %v256_v30 }
 0x17d   :  { %v362_v39 = vpop.f32.mrb[8].mxu0 }
 0x17e   :  { %v6761_v40 = vadd.f32 %v362_v39, %v256_v30  ;;  %v364_v41 = vpop.f32.mrb[9].mxu0 }
 0x17f   :  { %v6764_v42 = vadd.f32 %v364_v41, %v6740_v22  ;;  %v366_v43 = vpop.f32.mrb[10].mxu0  ;;  %v347_v41 = vadd.f32 %v346_v26, %v256_v30 }
 0x180   :  { %v6766_v44 = vadd.f32 %v366_v43, %v256_v30  ;;  %v368_v45 = vpop.f32.mrb[11].mxu0 }
 0x181   :  { %v6769_v46 = vadd.f32 %v368_v45, %v6740_v22 }
 0x185   :  { %v372_v47 = vpop.f32.mrb[12].mxu0 }
 0x186   :  { %v6771_v48 = vadd.f32 %v372_v47, %v256_v30  ;;  %v374_v49 = vpop.f32.mrb[13].mxu0 }
 0x187   :  { %v6774_v50 = vadd.f32 %v374_v49, %v6740_v22  ;;  %v376_v51 = vpop.f32.mrb[14].mxu0 }
 0x188   :  { %v6776_v52 = vadd.f32 %v376_v51, %v256_v30  ;;  %v378_v53 = vpop.f32.mrb[15].mxu0 }
 0x189   :  { %v6779_v54 = vadd.f32 %v378_v53, %v6740_v22 }
 0x18d   :  { %v382_v55 = vpop.f32.mrb[16].mxu0 }
 0x18e   :  { %v6781_v56 = vadd.f32 %v382_v55, %v256_v30  ;;  %v384_v57 = vpop.f32.mrb[17].mxu0 }
 0x18f   :  { %v6784_v58 = vadd.f32 %v384_v57, %v6740_v22  ;;  %v386_v59 = vpop.f32.mrb[18].mxu0 }
 0x190   :  { %v6786_v60 = vadd.f32 %v386_v59, %v256_v30  ;;  %v388_v61 = vpop.f32.mrb[19].mxu0 }
 0x191   :  { %v6789_v62 = vadd.f32 %v388_v61, %v6740_v22 }
 0x195   :  { %v392_v63 = vpop.f32.mrb[20].mxu0 }
 0x196   :  { %v6791_v2 = vadd.f32 %v392_v63, %v256_v30  ;;  %v394_v3 = vpop.f32.mrb[21].mxu0 }
 0x197   :  { %v6794_v4 = vadd.f32 %v394_v3, %v6740_v22  ;;  %v396_v5 = vpop.f32.mrb[22].mxu0 }
 0x198   :  { %v6796_v7 = vadd.f32 %v396_v5, %v256_v30  ;;  %v398_v9 = vpop.f32.mrb[23].mxu0 }
 0x199   :  { %v6799_v10 = vadd.f32 %v398_v9, %v6740_v22 }
 0x19d   :  { %v402_v11 = vpop.f32.mrb[24].mxu0 }
 0x19e   :  { %v6801_v12 = vadd.f32 %v402_v11, %v256_v30  ;;  %v404_v13 = vpop.f32.mrb[25].mxu0 }
 0x19f   :  { %v6804_v14 = vadd.f32 %v404_v13, %v6740_v22  ;;  %v406_v15 = vpop.f32.mrb[26].mxu0 }
 0x1a0   :  { %v6806_v16 = vadd.f32 %v406_v15, %v256_v30  ;;  %v408_v17 = vpop.f32.mrb[27].mxu0 }
 0x1a1   :  { %v6809_v18 = vadd.f32 %v408_v17, %v6740_v22 }
 0x1a5   :  { %v412_v21 = vpop.f32.mrb[28].mxu0 }
 0x1a6   :  { %v6811_v24 = vadd.f32 %v412_v21, %v256_v30  ;;  %v414_v28 = vpop.f32.mrb[29].mxu0 }
 0x1a7   :  { %v416_v31 = vpop.f32.mrb[30].mxu0  ;;  %v415_v53 = vadd.f32 %v414_v28, %v6740_v22 }
 0x1a8   :  { %v6813_v33 = vadd.f32 %v416_v31, %v256_v30  ;;  %v418_v35 = vpop.f32.mrb[31].mxu0 }
 0x1a9   :  { %v419_v57 = vadd.f32 %v418_v35, %v6740_v22 }
 0x1ad   :  { %v474_v39 = vpop.f32.mrb[32].mxu0 }
 0x1ae   :  { %v481_v43 = vadd.f32 %v474_v39, %v343_v37  ;;  %v5193_v45 = vpop.f32.mrb[33].mxu0 }
 0x1af   :  { %v477_v47 = vpop.f32.mrb[34].mxu0 }
 0x1b0   :  { %v482_v49 = vadd.f32 %v477_v47, %v347_v41  ;;  %v5194_v51 = vpop.f32.mrb[35].mxu0  ;;  %5756 = vtanh.f32 %v481_v43  ;;  %v4938_v5 = vmul.f32 -1.442695, %v481_v43 }
 0x1b2   :  { %5758 = vtanh.f32 %v482_v49  ;;  %v4939_v9 = vmul.f32 -1.442695, %v482_v49 }
 0x1b3   :  { %5760 = vpow2.f32 %v4938_v5 }
 0x1b4   :  { %5762 = vpow2.f32 %v4939_v9 }
 0x1b5   :  { %v1462_v55 = vpop.f32.mrb[36].mxu0 }
 0x1b6   :  { %v6817_v59 = vadd.f32 %v1462_v55, %v415_v53  ;;  %v5257_v61 = vpop.f32.mrb[37].mxu0 }
 0x1b7   :  { %v1465_v63 = vpop.f32.mrb[38].mxu0 }
 0x1b8   :  { %v6819_v3 = vadd.f32 %v1465_v63, %v419_v57  ;;  %v5258_v23 = vpop.f32.mrb[39].mxu0 }
 0x1ba   :  { %v5757_v26 = vpop.eup %5756 }
 0x1bb   :  { %501 = vrot.lane.b32.xlu0 %v5757_v26, %s6490_s22  ;;  %v6830_v26 = vld [vmem:[#allocation5 + $0x8] sm:$0xff] }
 0x1bc   :  { %v5759_v30 = vpop.eup %5758  ;;  %8480 = vst [vmem:[#allocation23_spill] sm:$0xff] %v6830_v26  ;;  %vm8452_vm2 = vcmp.gt.f32.partialorder %v6830_v26, 0.5 }
 0x1bd   :  { %v5761_v11 = vpop.eup %5760 }
 0x1be   :  { %v489_v13 = vadd.f32 1.0, %v5761_v11  ;;  %v5763_v22 = vpop.eup %5762 }
 0x1bf   :  { %503 = vrot.lane.b32.xlu0 %v5759_v30, %s6490_s22  ;;  %v490_v15 = vadd.f32 1.0, %v5763_v22  ;;  %v6832_v30 = vld [vmem:[#allocation5] sm:$0xff] }
 0x1c0   :  { %5764 = vrcp.f32 %v489_v13  ;;  %8481 = vst [vmem:[#allocation24_spill] sm:$0xff] %v6832_v30  ;;  %vm8451_vm3 = vcmp.gt.f32.partialorder %v6832_v30, 0.5 }
 0x1c1   :  { %5766 = vrcp.f32 %v490_v15 }
 0x1ca   :  { %v5765_v17 = vpop.eup %5764 }
 0x1cb   :  { %v5767_v31 = vpop.eup %5766  ;;  %v497_v39 = vmul.f32 0.0, %v5765_v17 }
 0x1cc   :  { %v498_v45 = vmul.f32 0.0, %v5767_v31 }
 0x22d   :  { %v502_v21 = vpop.permute.xlu0 %501 }
 0x22e   :  { %v507_v28 = vmul.f32 %v5765_v17, %v502_v21 }
 0x230   :  { %511 = vrot.lane.b32.xlu1 %v507_v28, %s6500_s5 }
 0x231   :  { %v504_v35 = vpop.permute.xlu0 %503 }
 0x232   :  { %v508_v37 = vmul.f32 %v5767_v31, %v504_v35 }
 0x234   :  { %513 = vrot.lane.b32.xlu1 %v508_v37, %s6500_s5 }
 0x2a2   :  { %v512_v41 = vpop.permute.xlu1 %511 }
 0x2a3   :  { %v517_v43 = vadd.f32 %v512_v41, %v497_v39 }
 0x2a5   :  { %5768 = vtanh.f32 %v517_v43 }
 0x2a6   :  { %v514_v47 = vpop.permute.xlu1 %513 }
 0x2a7   :  { %v518_v49 = vadd.f32 %v514_v47, %v498_v45 }
 0x2a9   :  { %5770 = vtanh.f32 %v518_v49 }
 0x2af   :  { %v5769_v51 = vpop.eup %5768 }
 0x2b0   :  { %523 = vrot.lane.b32.xlu0 %v5769_v51, %s6490_s22 }
 0x2b3   :  { %v5771_v53 = vpop.eup %5770 }
 0x2b4   :  { %525 = vrot.lane.b32.xlu1 %v5771_v53, %s6490_s22 }
 0x2b8   :  { %543 = vrot.lane.b32.xlu1 %v517_v43, %s6501_s16 }
 0x322   :  { %v524_v55 = vpop.permute.xlu0 %523 }
 0x323   :  { %v529_v61 = vmul.f32 %v5765_v17, %v524_v55 }
 0x326   :  { %v526_v57 = vpop.permute.xlu1 %525 }
 0x327   :  { %v530_v63 = vmul.f32 %v5767_v31, %v526_v57 }
 0x329   :  { %v5461_v23 = vpack.i.bf16 %v530_v63, %v529_v61 }
 0x32a   :  { %v544_v41 = vpop.permute.xlu1 %543 }
 0x32b   :  { %5462 = vrot.lane.b32.xlu0 %v5461_v23, %s6500_s5  ;;  %v6859_v47 = vsel %vm8451_vm3, %v544_v41, 0.0 }
 0x32f   :  { %545 = vrot.lane.b32.xlu0 %v518_v49, %s6501_s16 }
 0x39d   :  { %v5463_v5 = vpop.permute.xlu0 %5462 }
 0x39e   :  { %v5465_v9 = vunpack.i.h.bf16 %v5463_v5  ;;  %v5464_v11 = vunpack.i.l.bf16 %v5463_v5 }
 0x3a0   :  { %v6838_v13 = vsel %vm8451_vm3, %v5464_v11, 0.0  ;;  %v6842_v22 = vsel %vm8452_vm2, %v5465_v9, 0.0 }
 0x3a1   :  { %v551_v15 = vpack.c.bf16 %v6842_v22, %v6838_v13  ;;  %v546_v45 = vpop.permute.xlu0 %545 }
 0x3a3   :  { %5200 = vmatmul.mubr.msk.bf16.vlgmr.msra.gmra.mrb[0].mxu1 %vm283_vm1, %v551_v15 }
 0x3a4   :  { %5204 = vmatpush3.bf16.msra.mxu1 %v6692_v6  ;;  %5207 = vmatprep.mubr.msk.bf16.mxu1 %vm6499_vm0, %v8449_v1 }
 0x3a5   :  { %5205 = vmatprep.subr.bf16.mxu1 %v8449_v1 }
 0x3a8   :  { %5206 = vmatpush3.bf16.msra.mxu1 %v6698_v8 }
 0x3a9   :  { %5211 = vmatprep.subr.bf16.mxu1 %v8449_v1 }
 0x476   :  { %v589_v17 = vpop.f32.mrb[0].mxu1 }
 0x477   :  { %v596_v21 = vadd.f32 %v589_v17, %v6751_v32  ;;  %v5201_v28 = vpop.f32.mrb[1].mxu1  ;;  %v6865_v32 = vsel %vm8452_vm2, %v546_v45, 0.0 }
 0x478   :  { %v592_v31 = vpop.f32.mrb[2].mxu1 }
 0x479   :  { %5772 = vtanh.f32 %v596_v21  ;;  %v597_v35 = vadd.f32 %v592_v31, %v6756_v36  ;;  %v5202_v37 = vpop.f32.mrb[3].mxu1  ;;  %v4941_v36 = vmul.f32 -1.442695, %v596_v21 }
 0x47b   :  { %5774 = vtanh.f32 %v597_v35  ;;  %v4942_v49 = vmul.f32 -1.442695, %v597_v35 }
 0x47c   :  { %5776 = vpow2.f32 %v4941_v36 }
 0x47d   :  { %5778 = vpow2.f32 %v4942_v49 }
 0x483   :  { %v5773_v39 = vpop.eup %5772 }
 0x484   :  { %624 = vrot.lane.b32.xlu1 %v5773_v39, %s6490_s22 }
 0x485   :  { %v5775_v43 = vpop.eup %5774 }
 0x486   :  { %626 = vrot.lane.b32.xlu0 %v5775_v43, %s6490_s22  ;;  %v5777_v51 = vpop.eup %5776 }
 0x487   :  { %v5779_v53 = vpop.eup %5778  ;;  %v604_v55 = vadd.f32 1.0, %v5777_v51 }
 0x488   :  { %614 = vrot.lane.b32.xlu1 %v6859_v47, %s6500_s5  ;;  %v605_v57 = vadd.f32 1.0, %v5779_v53 }
 0x489   :  { %5780 = vrcp.f32 %v604_v55  ;;  %v6876_v55 = vld [vmem:[#allocation5 + $0x18] sm:$0xff] }
 0x48a   :  { %616 = vrot.lane.b32.xlu0 %v6865_v32, %s6500_s5  ;;  %5782 = vrcp.f32 %v605_v57  ;;  %v6878_v57 = vld [vmem:[#allocation5 + $0x10] sm:$0xff]  ;;  %vm171_vm4 = vcmp.gt.f32.partialorder %v6876_v55, 0.5 }
 0x48b   :  { %vm170_vm5 = vcmp.gt.f32.partialorder %v6878_v57, 0.5 }
 0x493   :  { %v5781_v61 = vpop.eup %5780 }
 0x494   :  { %v5783_v5 = vpop.eup %5782 }
 0x4f6   :  { %v625_v63 = vpop.permute.xlu1 %624 }
 0x4f7   :  { %v630_v23 = vmul.f32 %v5781_v61, %v625_v63 }
 0x4f8   :  { %v627_v9 = vpop.permute.xlu0 %626 }
 0x4f9   :  { %634 = vrot.lane.b32.xlu1 %v630_v23, %s6500_s5  ;;  %v631_v11 = vmul.f32 %v5783_v5, %v627_v9 }
 0x4fa   :  { %v615_v15 = vpop.permute.xlu1 %614 }
 0x4fb   :  { %636 = vrot.lane.b32.xlu0 %v631_v11, %s6500_s5  ;;  %v620_v17 = vmul.f32 %v5781_v61, %v615_v15 }
 0x4fc   :  { %v617_v21 = vpop.permute.xlu0 %616 }
 0x4fd   :  { %v621_v35 = vmul.f32 %v5783_v5, %v617_v21 }
 0x56b   :  { %v635_v28 = vpop.permute.xlu1 %634 }
 0x56c   :  { %v640_v31 = vadd.f32 %v635_v28, %v620_v17 }
 0x56d   :  { %v637_v37 = vpop.permute.xlu0 %636 }
 0x56e   :  { %5784 = vtanh.f32 %v640_v31  ;;  %v641_v39 = vadd.f32 %v637_v37, %v621_v35 }
 0x570   :  { %5786 = vtanh.f32 %v641_v39 }
 0x578   :  { %v5785_v41 = vpop.eup %5784 }
 0x579   :  { %646 = vrot.lane.b32.xlu1 %v5785_v41, %s6490_s22 }
 0x57a   :  { %v5787_v43 = vpop.eup %5786 }
 0x57b   :  { %648 = vrot.lane.b32.xlu0 %v5787_v43, %s6490_s22 }
 0x57f   :  { %666 = vrot.lane.b32.xlu0 %v640_v31, %s6501_s16 }
 0x5eb   :  { %v647_v45 = vpop.permute.xlu1 %646 }
 0x5ec   :  { %v652_v49 = vmul.f32 %v5781_v61, %v647_v45 }
 0x5ed   :  { %v649_v36 = vpop.permute.xlu0 %648 }
 0x5ee   :  { %v653_v51 = vmul.f32 %v5783_v5, %v649_v36 }
 0x5f0   :  { %v5466_v53 = vpack.i.bf16 %v653_v51, %v652_v49 }
 0x5f2   :  { %5467 = vrot.lane.b32.xlu1 %v5466_v53, %s6500_s5 }
 0x5f6   :  { %668 = vrot.lane.b32.xlu1 %v641_v39, %s6501_s16  ;;  %v667_v39 = vpop.permute.xlu0 %666 }
 0x5f7   :  { %v6908_v45 = vsel %vm170_vm5, %v667_v39, %v6859_v47 }
 0x664   :  { %v5468_v63 = vpop.permute.xlu1 %5467 }
 0x665   :  { %v5470_v23 = vunpack.i.h.bf16 %v5468_v63  ;;  %v5469_v9 = vunpack.i.l.bf16 %v5468_v63 }
 0x667   :  { %v6885_v61 = vsel %vm171_vm4, %v5470_v23, %v6842_v22  ;;  %v6890_v5 = vsel %vm170_vm5, %v5469_v9, %v6838_v13 }
 0x668   :  { %v674_v11 = vpack.c.bf16 %v6885_v61, %v6890_v5  ;;  %v669_v43 = vpop.permute.xlu1 %668 }
 0x66a   :  { %5208 = vmatmul.mubr.msk.bf16.vlgmr.msra.gmra.mrb[4].mxu1 %vm283_vm1, %v674_v11 }
 0x66b   :  { %5212 = vmatpush3.bf16.msra.mxu1 %v6692_v6  ;;  %5215 = vmatprep.mubr.msk.bf16.mxu1 %vm6499_vm0, %v8449_v1 }
 0x66c   :  { %5213 = vmatprep.subr.bf16.mxu1 %v8449_v1 }
 0x66f   :  { %5214 = vmatpush3.bf16.msra.mxu1 %v6698_v8 }
 0x670   :  { %5219 = vmatprep.subr.bf16.mxu1 %v8449_v1 }
 0x73d   :  { %v712_v15 = vpop.f32.mrb[4].mxu1 }
 0x73e   :  { %v719_v17 = vadd.f32 %v712_v15, %v6761_v40  ;;  %v5209_v21 = vpop.f32.mrb[5].mxu1  ;;  %v6915_v40 = vsel %vm171_vm4, %v669_v43, %v6865_v32 }
 0x73f   :  { %v715_v28 = vpop.f32.mrb[6].mxu1 }
 0x740   :  { %5788 = vtanh.f32 %v719_v17  ;;  %v720_v31 = vadd.f32 %v715_v28, %v6766_v44  ;;  %v5210_v35 = vpop.f32.mrb[7].mxu1  ;;  %v4944_v44 = vmul.f32 -1.442695, %v719_v17 }
 0x742   :  { %5790 = vtanh.f32 %v720_v31  ;;  %v4945_v36 = vmul.f32 -1.442695, %v720_v31 }
 0x743   :  { %5792 = vpow2.f32 %v4944_v44 }
 0x744   :  { %5794 = vpow2.f32 %v4945_v36 }
 0x74a   :  { %v5789_v37 = vpop.eup %5788 }
 0x74b   :  { %747 = vrot.lane.b32.xlu0 %v5789_v37, %s6490_s22 }
 0x74c   :  { %v5791_v41 = vpop.eup %5790 }
 0x74d   :  { %749 = vrot.lane.b32.xlu1 %v5791_v41, %s6490_s22  ;;  %v5793_v49 = vpop.eup %5792 }
 0x74e   :  { %v5795_v51 = vpop.eup %5794  ;;  %v727_v53 = vadd.f32 1.0, %v5793_v49 }
 0x74f   :  { %737 = vrot.lane.b32.xlu0 %v6908_v45, %s6500_s5  ;;  %v728_v47 = vadd.f32 1.0, %v5795_v51 }
 0x750   :  { %5796 = vrcp.f32 %v727_v53 }
 0x751   :  { %739 = vrot.lane.b32.xlu1 %v6915_v40, %s6500_s5  ;;  %5798 = vrcp.f32 %v728_v47 }
 0x75a   :  { %v5797_v63 = vpop.eup %5796 }
 0x75b   :  { %v5799_v11 = vpop.eup %5798 }
 0x7bd   :  { %v748_v23 = vpop.permute.xlu0 %747 }
 0x7be   :  { %v753_v9 = vmul.f32 %v5797_v63, %v748_v23  ;;  %v6926_v23 = vld [vmem:[#allocation5 + $0x28] sm:$0xff] }
 0x7bf   :  { %v750_v15 = vpop.permute.xlu1 %749  ;;  %vm173_vm6 = vcmp.gt.f32.partialorder %v6926_v23, 0.5 }
 0x7c0   :  { %757 = vrot.lane.b32.xlu0 %v753_v9, %s6500_s5  ;;  %v754_v32 = vmul.f32 %v5799_v11, %v750_v15  ;;  %v6928_v9 = vld [vmem:[#allocation5 + $0x20] sm:$0xff] }
 0x7c1   :  { %v738_v17 = vpop.permute.xlu0 %737  ;;  %vm172_vm7 = vcmp.gt.f32.partialorder %v6928_v9, 0.5 }
 0x7c2   :  { %759 = vrot.lane.b32.xlu1 %v754_v32, %s6500_s5  ;;  %v743_v21 = vmul.f32 %v5797_v63, %v738_v17 }
 0x7c3   :  { %v740_v28 = vpop.permute.xlu1 %739 }
 0x7c4   :  { %v744_v37 = vmul.f32 %v5799_v11, %v740_v28 }
 0x832   :  { %v758_v31 = vpop.permute.xlu0 %757 }
 0x833   :  { %v763_v35 = vadd.f32 %v758_v31, %v743_v21 }
 0x834   :  { %v760_v39 = vpop.permute.xlu1 %759 }
 0x835   :  { %5800 = vtanh.f32 %v763_v35  ;;  %v764_v41 = vadd.f32 %v760_v39, %v744_v37 }
 0x837   :  { %5802 = vtanh.f32 %v764_v41 }
 0x83f   :  { %v5801_v43 = vpop.eup %5800 }
 0x840   :  { %769 = vrot.lane.b32.xlu0 %v5801_v43, %s6490_s22 }
 0x841   :  { %v5803_v44 = vpop.eup %5802 }
 0x842   :  { %771 = vrot.lane.b32.xlu1 %v5803_v44, %s6490_s22 }
 0x846   :  { %789 = vrot.lane.b32.xlu1 %v763_v35, %s6501_s16 }
 0x8b2   :  { %v770_v36 = vpop.permute.xlu0 %769 }
 0x8b3   :  { %v775_v51 = vmul.f32 %v5797_v63, %v770_v36 }
 0x8b4   :  { %v772_v49 = vpop.permute.xlu1 %771 }
 0x8b5   :  { %v776_v53 = vmul.f32 %v5799_v11, %v772_v49 }
 0x8b7   :  { %v5471_v47 = vpack.i.bf16 %v776_v53, %v775_v51 }
 0x8b8   :  { %v790_v44 = vpop.permute.xlu1 %789 }
 0x8b9   :  { %5472 = vrot.lane.b32.xlu0 %v5471_v47, %s6500_s5  ;;  %v6958_v51 = vsel %vm172_vm7, %v790_v44, %v6908_v45 }
 0x8bd   :  { %791 = vrot.lane.b32.xlu0 %v764_v41, %s6501_s16 }
 0x92b   :  { %v5473_v15 = vpop.permute.xlu0 %5472 }
 0x92c   :  { %v5475_v32 = vunpack.i.h.bf16 %v5473_v15  ;;  %v5474_v17 = vunpack.i.l.bf16 %v5473_v15 }
 0x92e   :  { %v6935_v63 = vsel %vm173_vm6, %v5475_v32, %v6885_v61  ;;  %v6940_v11 = vsel %vm172_vm7, %v5474_v17, %v6890_v5 }
 0x92f   :  { %v797_v21 = vpack.c.bf16 %v6935_v63, %v6940_v11  ;;  %v792_v49 = vpop.permute.xlu0 %791 }
 0x931   :  { %5216 = vmatmul.mubr.msk.bf16.vlgmr.msra.gmra.mrb[8].mxu1 %vm283_vm1, %v797_v21 }
 0x932   :  { %5220 = vmatpush3.bf16.msra.mxu1 %v6692_v6  ;;  %5223 = vmatprep.mubr.msk.bf16.mxu1 %vm6499_vm0, %v8449_v1 }
 0x933   :  { %5221 = vmatprep.subr.bf16.mxu1 %v8449_v1 }
 0x936   :  { %5222 = vmatpush3.bf16.msra.mxu1 %v6698_v8 }
 0x937   :  { %5227 = vmatprep.subr.bf16.mxu1 %v8449_v1 }
 0xa04   :  { %v835_v28 = vpop.f32.mrb[8].mxu1 }
 0xa05   :  { %v842_v31 = vadd.f32 %v835_v28, %v6771_v48  ;;  %v5217_v35 = vpop.f32.mrb[9].mxu1  ;;  %v6965_v48 = vsel %vm173_vm6, %v792_v49, %v6915_v40 }
 0xa06   :  { %v838_v37 = vpop.f32.mrb[10].mxu1 }
 0xa07   :  { %5804 = vtanh.f32 %v842_v31  ;;  %v843_v39 = vadd.f32 %v838_v37, %v6776_v52  ;;  %v5218_v41 = vpop.f32.mrb[11].mxu1  ;;  %v4947_v52 = vmul.f32 -1.442695, %v842_v31 }
 0xa09   :  { %5806 = vtanh.f32 %v843_v39  ;;  %v4948_v53 = vmul.f32 -1.442695, %v843_v39 }
 0xa0a   :  { %5808 = vpow2.f32 %v4947_v52 }
 0xa0b   :  { %5810 = vpow2.f32 %v4948_v53 }
 0xa11   :  { %v5805_v43 = vpop.eup %5804 }
 0xa12   :  { %870 = vrot.lane.b32.xlu1 %v5805_v43, %s6490_s22 }
 0xa13   :  { %v5807_v36 = vpop.eup %5806 }
 0xa14   :  { %872 = vrot.lane.b32.xlu0 %v5807_v36, %s6490_s22  ;;  %v5809_v47 = vpop.eup %5808 }
 0xa15   :  { %v5811_v15 = vpop.eup %5810  ;;  %v850_v32 = vadd.f32 1.0, %v5809_v47 }
 0xa16   :  { %860 = vrot.lane.b32.xlu1 %v6958_v51, %s6500_s5  ;;  %v851_v45 = vadd.f32 1.0, %v5811_v15 }
 0xa17   :  { %5812 = vrcp.f32 %v850_v32 }
 0xa18   :  { %862 = vrot.lane.b32.xlu0 %v6965_v48, %s6500_s5  ;;  %5814 = vrcp.f32 %v851_v45 }
 0xa21   :  { %v5813_v17 = vpop.eup %5812 }
 0xa22   :  { %v5815_v35 = vpop.eup %5814 }
 0xa84   :  { %v871_v21 = vpop.permute.xlu1 %870 }
 0xa85   :  { %v876_v28 = vmul.f32 %v5813_v17, %v871_v21 }
 0xa86   :  { %v873_v37 = vpop.permute.xlu0 %872 }
 0xa87   :  { %880 = vrot.lane.b32.xlu1 %v876_v28, %s6500_s5  ;;  %v877_v40 = vmul.f32 %v5815_v35, %v873_v37  ;;  %v6976_v37 = vld [vmem:[#allocation5 + $0x38] sm:$0xff] }
 0xa88   :  { %v861_v31 = vpop.permute.xlu1 %860  ;;  %vm175_vm8 = vcmp.gt.f32.partialorder %v6976_v37, 0.5 }
 0xa89   :  { %882 = vrot.lane.b32.xlu0 %v877_v40, %s6500_s5  ;;  %v866_v39 = vmul.f32 %v5813_v17, %v861_v31  ;;  %v6978_v40 = vld [vmem:[#allocation5 + $0x30] sm:$0xff] }
 0xa8a   :  { %v863_v41 = vpop.permute.xlu0 %862  ;;  %vm174_vm9 = vcmp.gt.f32.partialorder %v6978_v40, 0.5 }
 0xa8b   :  { %v867_v36 = vmul.f32 %v5815_v35, %v863_v41 }
 0xaf9   :  { %v881_v43 = vpop.permute.xlu1 %880 }
 0xafa   :  { %v886_v44 = vadd.f32 %v881_v43, %v866_v39 }
 0xafb   :  { %v883_v49 = vpop.permute.xlu0 %882 }
 0xafc   :  { %5816 = vtanh.f32 %v886_v44  ;;  %v887_v52 = vadd.f32 %v883_v49, %v867_v36 }
 0xafe   :  { %5818 = vtanh.f32 %v887_v52 }
 0xb06   :  { %v5817_v53 = vpop.eup %5816 }
 0xb07   :  { %892 = vrot.lane.b32.xlu1 %v5817_v53, %s6490_s22 }
 0xb08   :  { %v5819_v47 = vpop.eup %5818 }
 0xb09   :  { %894 = vrot.lane.b32.xlu0 %v5819_v47, %s6490_s22 }
 0xb0d   :  { %912 = vrot.lane.b32.xlu0 %v886_v44, %s6501_s16 }
 0xb79   :  { %v893_v15 = vpop.permute.xlu1 %892 }
 0xb7a   :  { %v898_v45 = vmul.f32 %v5813_v17, %v893_v15 }
 0xb7b   :  { %v895_v32 = vpop.permute.xlu0 %894 }
 0xb7c   :  { %v899_v21 = vmul.f32 %v5815_v35, %v895_v32 }
 0xb7e   :  { %v5476_v28 = vpack.i.bf16 %v899_v21, %v898_v45 }
 0xb7f   :  { %v913_v15 = vpop.permute.xlu0 %912 }
 0xb80   :  { %5477 = vrot.lane.b32.xlu1 %v5476_v28, %s6500_s5 }
 0xb84   :  { %914 = vrot.lane.b32.xlu1 %v887_v52, %s6501_s16 }
 0xbf2   :  { %v5478_v31 = vpop.permute.xlu1 %5477 }
 0xbf3   :  { %v5480_v39 = vunpack.i.h.bf16 %v5478_v31  ;;  %v5479_v41 = vunpack.i.l.bf16 %v5478_v31 }
 0xbf5   :  { %v6985_v17 = vsel %vm175_vm8, %v5480_v39, %v6935_v63  ;;  %v6990_v35 = vsel %vm174_vm9, %v5479_v41, %v6940_v11 }
 0xbf6   :  { %v920_v43 = vpack.c.bf16 %v6985_v17, %v6990_v35  ;;  %v915_v45 = vpop.permute.xlu1 %914 }
 0xbf8   :  { %5224 = vmatmul.mubr.msk.bf16.vlgmr.msra.gmra.mrb[12].mxu1 %vm283_vm1, %v920_v43 }
 0xbf9   :  { %5228 = vmatpush3.bf16.msra.mxu1 %v6692_v6  ;;  %5231 = vmatprep.mubr.msk.bf16.mxu1 %vm6499_vm0, %v8449_v1 }
 0xbfa   :  { %5229 = vmatprep.subr.bf16.mxu1 %v8449_v1 }
 0xbfd   :  { %5230 = vmatpush3.bf16.msra.mxu1 %v6698_v8  ;;  %v7008_v8 = vsel %vm174_vm9, %v913_v15, %v6958_v51 }
 0xbfe   :  { %5235 = vmatprep.subr.bf16.mxu1 %v8449_v1 }
 0xccb   :  { %v958_v44 = vpop.f32.mrb[12].mxu1 }
 0xccc   :  { %v965_v36 = vadd.f32 %v958_v44, %v6781_v56  ;;  %v5225_v49 = vpop.f32.mrb[13].mxu1  ;;  %v7015_v56 = vsel %vm175_vm8, %v915_v45, %v6965_v48 }
 0xccd   :  { %v961_v52 = vpop.f32.mrb[14].mxu1 }
 0xcce   :  { %5820 = vtanh.f32 %v965_v36  ;;  %v966_v53 = vadd.f32 %v961_v52, %v6786_v60  ;;  %v5226_v47 = vpop.f32.mrb[15].mxu1  ;;  %v4950_v60 = vmul.f32 -1.442695, %v965_v36 }
 0xcd0   :  { %5822 = vtanh.f32 %v966_v53  ;;  %v4951_v21 = vmul.f32 -1.442695, %v966_v53 }
 0xcd1   :  { %5824 = vpow2.f32 %v4950_v60 }
 0xcd2   :  { %5826 = vpow2.f32 %v4951_v21 }
 0xcd8   :  { %v5821_v6 = vpop.eup %5820 }
 0xcd9   :  { %993 = vrot.lane.b32.xlu0 %v5821_v6, %s6490_s22 }
 0xcda   :  { %v5823_v32 = vpop.eup %5822 }
 0xcdb   :  { %995 = vrot.lane.b32.xlu1 %v5823_v32, %s6490_s22  ;;  %v5825_v28 = vpop.eup %5824 }
 0xcdc   :  { %v5827_v31 = vpop.eup %5826  ;;  %v973_v39 = vadd.f32 1.0, %v5825_v28 }
 0xcdd   :  { %983 = vrot.lane.b32.xlu0 %v7008_v8, %s6500_s5  ;;  %v974_v51 = vadd.f32 1.0, %v5827_v31 }
 0xcde   :  { %5828 = vrcp.f32 %v973_v39 }
 0xcdf   :  { %985 = vrot.lane.b32.xlu1 %v7015_v56, %s6500_s5  ;;  %5830 = vrcp.f32 %v974_v51 }
 0xce8   :  { %v5829_v41 = vpop.eup %5828 }
 0xce9   :  { %v5831_v49 = vpop.eup %5830 }
 0xd4b   :  { %v994_v43 = vpop.permute.xlu0 %993 }
 0xd4c   :  { %v999_v44 = vmul.f32 %v5829_v41, %v994_v43 }
 0xd4d   :  { %v996_v52 = vpop.permute.xlu1 %995 }
 0xd4e   :  { %1003 = vrot.lane.b32.xlu0 %v999_v44, %s6500_s5  ;;  %v1000_v48 = vmul.f32 %v5831_v49, %v996_v52  ;;  %v7026_v52 = vld [vmem:[#allocation5 + $0x48] sm:$0xff] }
 0xd4f   :  { %v984_v36 = vpop.permute.xlu0 %983  ;;  %vm177_vm10 = vcmp.gt.f32.partialorder %v7026_v52, 0.5 }
 0xd50   :  { %1005 = vrot.lane.b32.xlu1 %v1000_v48, %s6500_s5  ;;  %v989_v53 = vmul.f32 %v5829_v41, %v984_v36  ;;  %v7028_v48 = vld [vmem:[#allocation5 + $0x40] sm:$0xff] }
 0xd51   :  { %v986_v47 = vpop.permute.xlu1 %985  ;;  %vm176_vm11 = vcmp.gt.f32.partialorder %v7028_v48, 0.5 }
 0xd52   :  { %v990_v32 = vmul.f32 %v5831_v49, %v986_v47 }
 0xdc0   :  { %v1004_v6 = vpop.permute.xlu0 %1003 }
 0xdc1   :  { %v1009_v15 = vadd.f32 %v1004_v6, %v989_v53 }
 0xdc2   :  { %v1006_v45 = vpop.permute.xlu1 %1005 }
 0xdc3   :  { %5832 = vtanh.f32 %v1009_v15  ;;  %v1010_v60 = vadd.f32 %v1006_v45, %v990_v32  ;;  %v7051_v32 = vld [vmem:[#allocation8 + $0x8] sm:$0xff]  }
 0xdc5   :  { %5834 = vtanh.f32 %v1010_v60 }
 0xdcd   :  { %v5833_v21 = vpop.eup %5832 }
 0xdce   :  { %1015 = vrot.lane.b32.xlu0 %v5833_v21, %s6490_s22 }
 0xdcf   :  { %v5835_v28 = vpop.eup %5834 }
 0xdd0   :  { %1017 = vrot.lane.b32.xlu1 %v5835_v28, %s6490_s22 }
 0xdd4   :  { %1035 = vrot.lane.b32.xlu1 %v1009_v15, %s6501_s16  ;;  %v7045_v15 = vld [vmem:[#allocation8] sm:$0xff]  }
 0xe40   :  { %v1016_v31 = vpop.permute.xlu0 %1015 }
 0xe41   :  { %v1021_v51 = vmul.f32 %v5829_v41, %v1016_v31 }
 0xe42   :  { %v1018_v39 = vpop.permute.xlu1 %1017 }
 0xe43   :  { %v1022_v43 = vmul.f32 %v5831_v49, %v1018_v39 }
 0xe45   :  { %v5481_v44 = vpack.i.bf16 %v1022_v43, %v1021_v51 }
 0xe46   :  { %v1036_v43 = vpop.permute.xlu1 %1035 }
 0xe47   :  { %5482 = vrot.lane.b32.xlu0 %v5481_v44, %s6500_s5 }
 0xe4b   :  { %1037 = vrot.lane.b32.xlu0 %v1010_v60, %s6501_s16 }
 0xeb9   :  { %v5483_v36 = vpop.permute.xlu0 %5482 }
 0xeba   :  { %v5485_v53 = vunpack.i.h.bf16 %v5483_v36  ;;  %v5484_v47 = vunpack.i.l.bf16 %v5483_v36 }
 0xebc   :  { %v7035_v41 = vsel %vm177_vm10, %v5485_v53, %v6985_v17  ;;  %v7040_v49 = vsel %vm176_vm11, %v5484_v47, %v6990_v35  ;;  %v7062_v53 = vsel %vm176_vm11, %v1036_v43, %v7008_v8 }
 0xebd   :  { %v1043_v6 = vpack.c.bf16 %v7035_v41, %v7040_v49  ;;  %v1038_v36 = vpop.permute.xlu0 %1037 }
 0xebf   :  { %5232 = vmatmul.mubr.msk.bf16.vlgmr.msra.gmra.mrb[16].mxu1 %vm283_vm1, %v1043_v6 }
 0xec0   :  { %5236 = vmatpush3.bf16.msra.mxu1 %v7045_v15  ;;  %5239 = vmatprep.mubr.msk.bf16.mxu1 %vm6499_vm0, %v8449_v1 }
 0xec1   :  { %5237 = vmatprep.subr.bf16.mxu1 %v8449_v1 }
 0xec4   :  { %5238 = vmatpush3.bf16.msra.mxu1 %v7051_v32 }
 0xec5   :  { %5243 = vmatprep.subr.bf16.mxu1 %v8449_v1 }
 0xf92   :  { %v1081_v45 = vpop.f32.mrb[16].mxu1 }
 0xf93   :  { %v1088_v60 = vadd.f32 %v1081_v45, %v6791_v2  ;;  %v5233_v21 = vpop.f32.mrb[17].mxu1  ;;  %v7069_v2 = vsel %vm177_vm10, %v1038_v36, %v7015_v56 }
 0xf94   :  { %v1084_v28 = vpop.f32.mrb[18].mxu1 }
 0xf95   :  { %5836 = vtanh.f32 %v1088_v60  ;;  %v1089_v31 = vadd.f32 %v1084_v28, %v6796_v7  ;;  %v5234_v39 = vpop.f32.mrb[19].mxu1  ;;  %v4953_v7 = vmul.f32 -1.442695, %v1088_v60 }
 0xf97   :  { %5838 = vtanh.f32 %v1089_v31  ;;  %v4954_v47 = vmul.f32 -1.442695, %v1089_v31 }
 0xf98   :  { %5840 = vpow2.f32 %v4953_v7 }
 0xf99   :  { %5842 = vpow2.f32 %v4954_v47 }
 0xf9f   :  { %v5837_v51 = vpop.eup %5836 }
 0xfa0   :  { %1116 = vrot.lane.b32.xlu1 %v5837_v51, %s6490_s22 }
 0xfa1   :  { %v5839_v44 = vpop.eup %5838 }
 0xfa2   :  { %1118 = vrot.lane.b32.xlu0 %v5839_v44, %s6490_s22  ;;  %v5841_v6 = vpop.eup %5840 }
 0xfa3   :  { %v5843_v45 = vpop.eup %5842  ;;  %v1096_v21 = vadd.f32 1.0, %v5841_v6 }
 0xfa4   :  { %1106 = vrot.lane.b32.xlu1 %v7062_v53, %s6500_s5  ;;  %v1097_v8 = vadd.f32 1.0, %v5843_v45 }
 0xfa5   :  { %5844 = vrcp.f32 %v1096_v21 }
 0xfa6   :  { %1108 = vrot.lane.b32.xlu0 %v7069_v2, %s6500_s5  ;;  %5846 = vrcp.f32 %v1097_v8 }
 0xfaf   :  { %v5845_v28 = vpop.eup %5844 }
 0xfb0   :  { %v5847_v43 = vpop.eup %5846 }
0x1012   :  { %v1117_v39 = vpop.permute.xlu1 %1116 }
0x1013   :  { %v1122_v51 = vmul.f32 %v5845_v28, %v1117_v39 }
0x1014   :  { %v1119_v44 = vpop.permute.xlu0 %1118 }
0x1015   :  { %1126 = vrot.lane.b32.xlu1 %v1122_v51, %s6500_s5  ;;  %v1123_v56 = vmul.f32 %v5847_v43, %v1119_v44 }
0x1016   :  { %v1107_v60 = vpop.permute.xlu1 %1106 }
0x1017   :  { %1128 = vrot.lane.b32.xlu0 %v1123_v56, %s6500_s5  ;;  %v1112_v31 = vmul.f32 %v5845_v28, %v1107_v60 }
0x1018   :  { %v1109_v36 = vpop.permute.xlu0 %1108 }
0x1019   :  { %v1113_v20 = vmul.f32 %v5847_v43, %v1109_v36 }
0x1087   :  { %v1127_v7 = vpop.permute.xlu1 %1126 }
0x1088   :  { %v1132_v47 = vadd.f32 %v1127_v7, %v1112_v31  ;;  %v7080_v31 = vld [vmem:[#allocation5 + $0x58] sm:$0xff] }
0x1089   :  { %v1129_v6 = vpop.permute.xlu0 %1128  ;;  %vm179_vm12 = vcmp.gt.f32.partialorder %v7080_v31, 0.5 }
0x108a   :  { %5848 = vtanh.f32 %v1132_v47  ;;  %v1133_v45 = vadd.f32 %v1129_v6, %v1113_v20  ;;  %v7082_v20 = vld [vmem:[#allocation5 + $0x50] sm:$0xff] }
0x108b   :  { %vm178_vm13 = vcmp.gt.f32.partialorder %v7082_v20, 0.5 }
0x108c   :  { %5850 = vtanh.f32 %v1133_v45 }
0x1094   :  { %v5849_v21 = vpop.eup %5848 }
0x1095   :  { %1138 = vrot.lane.b32.xlu1 %v5849_v21, %s6490_s22 }
0x1096   :  { %v5851_v8 = vpop.eup %5850 }
0x1097   :  { %1140 = vrot.lane.b32.xlu0 %v5851_v8, %s6490_s22 }
0x109b   :  { %1158 = vrot.lane.b32.xlu0 %v1132_v47, %s6501_s16 }
0x1107   :  { %v1139_v39 = vpop.permute.xlu1 %1138 }
0x1108   :  { %v1144_v44 = vmul.f32 %v5845_v28, %v1139_v39 }
0x1109   :  { %v1141_v51 = vpop.permute.xlu0 %1140 }
0x110a   :  { %v1145_v56 = vmul.f32 %v5847_v43, %v1141_v51 }
0x110c   :  { %v5486_v60 = vpack.i.bf16 %v1145_v56, %v1144_v44 }
0x110e   :  { %5487 = vrot.lane.b32.xlu1 %v5486_v60, %s6500_s5  ;;  %v1159_v60 = vpop.permute.xlu0 %1158 }
0x1112   :  { %1160 = vrot.lane.b32.xlu1 %v1133_v45, %s6501_s16 }
0x1180   :  { %v5488_v36 = vpop.permute.xlu1 %5487 }
0x1181   :  { %v5490_v7 = vunpack.i.h.bf16 %v5488_v36  ;;  %v5489_v6 = vunpack.i.l.bf16 %v5488_v36 }
0x1183   :  { %v7089_v28 = vsel %vm179_vm12, %v5490_v7, %v7035_v41  ;;  %v7094_v43 = vsel %vm178_vm13, %v5489_v6, %v7040_v49 }
0x1184   :  { %v1166_v47 = vpack.c.bf16 %v7089_v28, %v7094_v43  ;;  %v1161_v36 = vpop.permute.xlu1 %1160 }
0x1185   :  { %v7123_v7 = vsel %vm179_vm12, %v1161_v36, %v7069_v2 }
0x1186   :  { %5240 = vmatmul.mubr.msk.bf16.vlgmr.msra.gmra.mrb[20].mxu1 %vm283_vm1, %v1166_v47  ;;  %8483 = vst [vmem:[#allocation26_spill] sm:$0xff] %v7123_v7 }
0x1187   :  { %5244 = vmatpush3.bf16.msra.mxu1 %v7045_v15  ;;  %5247 = vmatprep.mubr.msk.bf16.mxu1 %vm6499_vm0, %v8449_v1 }
0x1188   :  { %5245 = vmatprep.subr.bf16.mxu1 %v8449_v1 }
0x118b   :  { %5246 = vmatpush3.bf16.msra.mxu1 %v7051_v32 }
0x118c   :  { %5259 = vmatprep.subr.bf16.mxu1 %v8449_v1 }
0x1259   :  { %v1204_v45 = vpop.f32.mrb[20].mxu1 }
0x125a   :  { %v1211_v21 = vadd.f32 %v1204_v45, %v6801_v12  ;;  %v5241_v8 = vpop.f32.mrb[21].mxu1  ;;  %v4963_v45 = vmul.f32 -1.442695, %v6817_v59 }
0x125b   :  { %v1207_v39 = vpop.f32.mrb[22].mxu1  ;;  %v4964_v8 = vmul.f32 -1.442695, %v6819_v3 }
0x125c   :  { %5852 = vtanh.f32 %v1211_v21  ;;  %v1212_v51 = vadd.f32 %v1207_v39, %v6806_v16  ;;  %v5242_v44 = vpop.f32.mrb[23].mxu1  ;;  %v7116_v16 = vsel %vm178_vm13, %v1159_v60, %v7062_v53  ;;  %v4956_v6 = vmul.f32 -1.442695, %v1211_v21 }
0x125d   :  { %8482 = vst [vmem:[#allocation25_spill] sm:$0xff] %v7116_v16 }
0x125e   :  { %5854 = vtanh.f32 %v1212_v51  ;;  %v4957_v47 = vmul.f32 -1.442695, %v1212_v51 }
0x125f   :  { %5856 = vtanh.f32 %v6817_v59 }
0x1260   :  { %5858 = vtanh.f32 %v6819_v3 }
0x1261   :  { %5860 = vpow2.f32 %v4956_v6 }
0x1262   :  { %5862 = vpow2.f32 %v4957_v47 }
0x1263   :  { %5864 = vpow2.f32 %v4963_v45 }
0x1264   :  { %5866 = vpow2.f32 %v4964_v8 }
0x1266   :  { %v5853_v15 = vpop.eup %5852 }
0x1267   :  { %1239 = vrot.lane.b32.xlu0 %v5853_v15, %s6490_s22 }
0x1268   :  { %v5855_v32 = vpop.eup %5854 }
0x1269   :  { %v5857_v56 = vpop.eup %5856  ;;  %1241 = vrot.lane.b32.xlu1 %v5855_v32, %s6490_s22 }
0x126a   :  { %v5859_v12 = vpop.eup %5858 }
0x126b   :  { %1489 = vrot.lane.b32.xlu0 %v5857_v56, %s6490_s22  ;;  %v5861_v53 = vpop.eup %5860 }
0x126c   :  { %v5863_v39 = vpop.eup %5862  ;;  %v1219_v44 = vadd.f32 1.0, %v5861_v53 }
0x126d   :  { %1491 = vrot.lane.b32.xlu1 %v5859_v12, %s6490_s22  ;;  %v5865_v15 = vpop.eup %5864  ;;  %v1220_v32 = vadd.f32 1.0, %v5863_v39 }
0x126e   :  { %v5867_v2 = vpop.eup %5866  ;;  %v1477_v56 = vadd.f32 1.0, %v5865_v15  ;;  %5868 = vrcp.f32 %v1219_v44 }
0x126f   :  { %1229 = vrot.lane.b32.xlu0 %v7116_v16, %s6500_s5  ;;  %v1478_v60 = vadd.f32 1.0, %v5867_v2  ;;  %5870 = vrcp.f32 %v1220_v32 }
0x1270   :  { %5872 = vrcp.f32 %v1477_v56 }
0x1271   :  { %1231 = vrot.lane.b32.xlu1 %v7123_v7, %s6500_s5  ;;  %5874 = vrcp.f32 %v1478_v60 }
0x1278   :  { %v5869_v21 = vpop.eup %5868 }
0x1279   :  { %v5871_v12 = vpop.eup %5870 }
0x127a   :  { %v5873_v36 = vpop.eup %5872 }
0x127b   :  { %v5875_v8 = vpop.eup %5874 }
0x12d9   :  { %v1240_v59 = vpop.permute.xlu0 %1239 }
0x12da   :  { %v1245_v51 = vmul.f32 %v5869_v21, %v1240_v59 }
0x12db   :  { %v1242_v3 = vpop.permute.xlu1 %1241 }
0x12dc   :  { %1249 = vrot.lane.b32.xlu0 %v1245_v51, %s6500_s5  ;;  %v1246_v6 = vmul.f32 %v5871_v12, %v1242_v3  ;;  %v1485_v51 = vmul.f32 0.0, %v5873_v36 }
0x12dd   :  { %v1490_v47 = vpop.permute.xlu0 %1489 }
0x12de   :  { %v1495_v45 = vmul.f32 %v5873_v36, %v1490_v47  ;;  %1251 = vrot.lane.b32.xlu1 %v1246_v6, %s6500_s5 }
0x12df   :  { %v1492_v53 = vpop.permute.xlu1 %1491 }
0x12e0   :  { %1499 = vrot.lane.b32.xlu0 %v1495_v45, %s6500_s5  ;;  %v1496_v39 = vmul.f32 %v5875_v8, %v1492_v53  ;;  %v1486_v45 = vmul.f32 0.0, %v5875_v8 }
0x12e1   :  { %v1230_v44 = vpop.permute.xlu0 %1229 }
0x12e2   :  { %1501 = vrot.lane.b32.xlu1 %v1496_v39, %s6500_s5  ;;  %v1235_v15 = vmul.f32 %v5869_v21, %v1230_v44 }
0x12e3   :  { %v1232_v32 = vpop.permute.xlu1 %1231 }
0x12e4   :  { %v1236_v60 = vmul.f32 %v5871_v12, %v1232_v32 }
0x134e   :  { %v1250_v2 = vpop.permute.xlu0 %1249 }
0x134f   :  { %v7133_v56 = vadd.f32 %v1250_v2, %v1235_v15 }
0x1350   :  { %v1252_v59 = vpop.permute.xlu1 %1251 }
0x1351   :  { %8484 = vst [vmem:[#allocation27_spill] sm:$0xff] %v7133_v56  ;;  %5876 = vtanh.f32 %v7133_v56  ;;  %v7136_v3 = vadd.f32 %v1252_v59, %v1236_v60 }
0x1352   :  { %v1500_v6 = vpop.permute.xlu0 %1499 }
0x1353   :  { %8485 = vst [vmem:[#allocation28_spill] sm:$0xff] %v7136_v3  ;;  %v1505_v47 = vadd.f32 %v1500_v6, %v1485_v51  ;;  %5878 = vtanh.f32 %v7136_v3 }
0x1354   :  { %v1502_v53 = vpop.permute.xlu1 %1501 }
0x1355   :  { %5880 = vtanh.f32 %v1505_v47  ;;  %v1506_v39 = vadd.f32 %v1502_v53, %v1486_v45 }
0x1357   :  { %5882 = vtanh.f32 %v1506_v39 }
0x135b   :  { %v5877_v44 = vpop.eup %5876 }
0x135c   :  { %1261 = vrot.lane.b32.xlu0 %v5877_v44, %s6490_s22 }
0x135d   :  { %v5879_v15 = vpop.eup %5878 }
0x135e   :  { %1263 = vrot.lane.b32.xlu1 %v5879_v15, %s6490_s22  ;;  %v7147_v15 = vld [vmem:[#allocation5 + $0x60] sm:$0xff] }
0x135f   :  { %v5881_v32 = vpop.eup %5880  ;;  %vm180_vm14 = vcmp.gt.f32.partialorder %v7147_v15, 0.5 }
0x1360   :  { %1511 = vrot.lane.b32.xlu0 %v5881_v32, %s6490_s22  ;;  %v7149_v32 = vld [vmem:[#allocation5 + $0x68] sm:$0xff] }
0x1361   :  { %v5883_v2 = vpop.eup %5882  ;;  %vm8474_vm15 = vcmp.gt.f32.partialorder %v7149_v32, 0.5 }
0x1362   :  { %1513 = vrot.lane.b32.xlu1 %v5883_v2, %s6490_s22 }
0x13ce   :  { %v1262_v60 = vpop.permute.xlu0 %1261 }
0x13cf   :  { %v1267_v51 = vmul.f32 %v5869_v21, %v1262_v60 }
0x13d0   :  { %v1264_v59 = vpop.permute.xlu1 %1263 }
0x13d1   :  { %v1268_v6 = vmul.f32 %v5871_v12, %v1264_v59  ;;  %v7171_v59 = vld [vmem:[#allocation10] sm:$0xff]  }
0x13d2   :  { %v1512_v27 = vpop.permute.xlu0 %1511 }
0x13d3   :  { %v5491_v0 = vpack.i.bf16 %v1268_v6, %v1267_v51  ;;  %v1517_v53 = vmul.f32 %v5873_v36, %v1512_v27  ;;  %v7163_v36 = vld [vmem:[#allocation5 + $0x78] sm:$0xff]  ;;  %v8490_v51 = vmov 0.0  }
0x13d4   :  { %v1514_v45 = vpop.permute.xlu1 %1513  ;;  %8488 = vst [vmem:[#allocation31_spill] sm:$0xff] %v7163_v36  ;;  %vm8466_vm3 = vcmp.gt.f32.partialorder %v7163_v36, 0.5 }
0x13d5   :  { %v1518_v1 = vmul.f32 %v5875_v8, %v1514_v45  ;;  %5492 = vrot.lane.b32.xlu0 %v5491_v0, %s6500_s5 }
0x13d7   :  { %v5496_v44 = vpack.i.bf16 %v1518_v1, %v1517_v53  ;;  %v7186_v53 = vld [vmem:[#allocation10 + $0x8] sm:$0xff]  }
0x13d9   :  { %1531 = vrot.lane.b32.xlu0 %v1505_v47, %s6501_s16  ;;  %5497 = vrot.lane.b32.xlu1 %v5496_v44, %s6500_s5 }
0x13dd   :  { %1533 = vrot.lane.b32.xlu1 %v1506_v39, %s6501_s16  ;;  %v7167_v39 = vld [vmem:[#allocation5 + $0x70] sm:$0xff] }
0x13de   :  { %8489 = vst [vmem:[#allocation32_spill] sm:$0xff] %v7167_v39  ;;  %vm8465_vm2 = vcmp.gt.f32.partialorder %v7167_v39, 0.5 }
0x1447   :  { %v5493_v21 = vpop.permute.xlu0 %5492 }
0x1448   :  { %v5495_v27 = vunpack.i.h.bf16 %v5493_v21  ;;  %v5494_v12 = vunpack.i.l.bf16 %v5493_v21 }
0x144a   :  { %v7156_v0 = vsel %vm8474_vm15, %v5495_v27, %v7089_v28  ;;  %v7161_v1 = vsel %vm180_vm14, %v5494_v12, %v7094_v43 }
0x144b   :  { %8486 = vst [vmem:[#allocation29_spill] sm:$0xff] %v7156_v0  ;;  %8487 = vst [vmem:[#allocation30_spill] sm:$0xff] %v7161_v1  ;;  %v1289_v8 = vpack.c.bf16 %v7156_v0, %v7161_v1  ;;  %v5498_v47 = vpop.permute.xlu1 %5497  ;;  %v1532_v56 = vpop.permute.xlu0 %1531 }
0x144c   :  { %v5500_v2 = vunpack.i.h.bf16 %v5498_v47  ;;  %v5499_v60 = vunpack.i.l.bf16 %v5498_v47 }
0x144d   :  { %5248 = vmatmul.mubr.msk.bf16.vlgmr.msra.gmra.mrb[24].mxu1 %vm283_vm1, %v1289_v8 }
0x144e   :  { %5260 = vmatpush3.bf16.msra.mxu1 %v7171_v59  ;;  %5263 = vmatprep.mubr.msk.bf16.mxu1 %vm6499_vm0, %v8490_v51  ;;  %v7180_v6 = vsel %vm8466_vm3, %v5500_v2, 0.0  ;;  %v7184_v45 = vsel %vm8465_vm2, %v5499_v60, 0.0 }
0x144f   :  { %5261 = vmatprep.subr.bf16.mxu1 %v8490_v51  ;;  %v1539_v44 = vpack.c.bf16 %v7180_v6, %v7184_v45 }
0x1452   :  { %5262 = vmatpush3.bf16.msra.mxu1 %v7186_v53 }
0x1453   :  { %5275 = vmatprep.subr.bf16.mxu1 %v8490_v51 }
0x1455   :  { %5264 = vmatmul.mubr.msk.bf16.vlgmr.msra.gmra.mrb[28].mxu1 %vm283_vm1, %v1539_v44 }
0x1456   :  { %5276 = vmatpush3.bf16.msra.mxu1 %v7171_v59  ;;  %5279 = vmatprep.mubr.msk.bf16.mxu1 %vm6499_vm0, %v8490_v51 }
0x1457   :  { %5277 = vmatprep.subr.bf16.mxu1 %v8490_v51 }
0x145a   :  { %5278 = vmatpush3.bf16.msra.mxu1 %v7186_v53 }
0x145b   :  { %5291 = vmatprep.subr.bf16.mxu1 %v8490_v51 }
0x1520   :  { %v1327_v21 = vpop.f32.mrb[24].mxu1 }
0x1521   :  { %v7200_v27 = vadd.f32 %v1327_v21, %v6811_v24  ;;  %v5249_v12 = vpop.f32.mrb[25].mxu1  ;;  %v1534_v21 = vpop.permute.xlu1 %1533 }
0x1522   :  { %v1330_v8 = vpop.f32.mrb[26].mxu1 }
0x1523   :  { %v7203_v47 = vadd.f32 %v1330_v8, %v6813_v33  ;;  %v5250_v2 = vpop.f32.mrb[27].mxu1  ;;  %v7211_v33 = vsel %vm8465_vm2, %v1532_v56, 0.0  ;;  %vm8496_vm2 = vcmp.gt.f32.partialorder %v6830_v26, 0.5 }
0x1528   :  { %v1577_v60 = vpop.f32.mrb[28].mxu1 }
0x1529   :  { %v1584_v44 = vadd.f32 %v1577_v60, %v6804_v14  ;;  %v5265_v7 = vpop.f32.mrb[29].mxu1  ;;  %v7217_v14 = vsel %vm8466_vm3, %v1534_v21, 0.0  ;;  %vm8497_vm3 = vcmp.gt.f32.partialorder %v6832_v30, 0.5 }
0x152a   :  { %v1580_v16 = vpop.f32.mrb[30].mxu1 }
0x152b   :  { %5884 = vtanh.f32 %v1584_v44  ;;  %v1585_v3 = vadd.f32 %v1580_v16, %v6809_v18  ;;  %v5266_v1 = vpop.f32.mrb[31].mxu1  ;;  %v4966_v18 = vmul.f32 -1.442695, %v1584_v44 }
0x152d   :  { %5886 = vtanh.f32 %v1585_v3  ;;  %v4967_v16 = vmul.f32 -1.442695, %v1585_v3 }
0x152e   :  { %5888 = vpow2.f32 %v4966_v18 }
0x152f   :  { %5890 = vpow2.f32 %v4967_v16 }
0x1535   :  { %v5885_v0 = vpop.eup %5884 }
0x1536   :  { %1612 = vrot.lane.b32.xlu0 %v5885_v0, %s6490_s22 }
0x1537   :  { %v5887_v24 = vpop.eup %5886 }
0x1538   :  { %1614 = vrot.lane.b32.xlu1 %v5887_v24, %s6490_s22  ;;  %v5889_v7 = vpop.eup %5888 }
0x1539   :  { %v5891_v0 = vpop.eup %5890  ;;  %v1592_v1 = vadd.f32 1.0, %v5889_v7 }
0x153a   :  { %1602 = vrot.lane.b32.xlu0 %v7211_v33, %s6500_s5  ;;  %v1593_v12 = vadd.f32 1.0, %v5891_v0 }
0x153b   :  { %5892 = vrcp.f32 %v1592_v1 }
0x153c   :  { %1604 = vrot.lane.b32.xlu1 %v7217_v14, %s6500_s5  ;;  %5894 = vrcp.f32 %v1593_v12 }
0x1545   :  { %v5893_v56 = vpop.eup %5892 }
0x1546   :  { %v5895_v60 = vpop.eup %5894 }
0x15a8   :  { %v1613_v8 = vpop.permute.xlu0 %1612 }
0x15a9   :  { %v1618_v2 = vmul.f32 %v5893_v56, %v1613_v8 }
0x15aa   :  { %v1615_v24 = vpop.permute.xlu1 %1614 }
0x15ab   :  { %1622 = vrot.lane.b32.xlu0 %v1618_v2, %s6500_s5  ;;  %v1619_v21 = vmul.f32 %v5895_v60, %v1615_v24 }
0x15ac   :  { %v1603_v44 = vpop.permute.xlu0 %1602 }
0x15ad   :  { %1624 = vrot.lane.b32.xlu1 %v1619_v21, %s6500_s5  ;;  %v1608_v3 = vmul.f32 %v5893_v56, %v1603_v44 }
0x15ae   :  { %v1605_v18 = vpop.permute.xlu1 %1604 }
0x15af   :  { %v1609_v36 = vmul.f32 %v5895_v60, %v1605_v18 }
0x161d   :  { %v1623_v16 = vpop.permute.xlu0 %1622 }
0x161e   :  { %v1628_v39 = vadd.f32 %v1623_v16, %v1608_v3 }
0x161f   :  { %v1625_v7 = vpop.permute.xlu1 %1624 }
0x1620   :  { %5896 = vtanh.f32 %v1628_v39  ;;  %v1629_v0 = vadd.f32 %v1625_v7, %v1609_v36 }
0x1622   :  { %5898 = vtanh.f32 %v1629_v0 }
0x162a   :  { %v5897_v1 = vpop.eup %5896 }
0x162b   :  { %1634 = vrot.lane.b32.xlu0 %v5897_v1, %s6490_s22 }
0x162c   :  { %v5899_v12 = vpop.eup %5898 }
0x162d   :  { %1636 = vrot.lane.b32.xlu1 %v5899_v12, %s6490_s22 }
0x1631   :  { %1654 = vrot.lane.b32.xlu1 %v1628_v39, %s6501_s16 }
0x169d   :  { %v1635_v8 = vpop.permute.xlu0 %1634 }
0x169e   :  { %v1640_v24 = vmul.f32 %v5893_v56, %v1635_v8 }
0x169f   :  { %v1637_v2 = vpop.permute.xlu1 %1636 }
0x16a0   :  { %v1641_v21 = vmul.f32 %v5895_v60, %v1637_v2 }
0x16a2   :  { %v5501_v44 = vpack.i.bf16 %v1641_v21, %v1640_v24 }
0x16a3   :  { %v1655_v24 = vpop.permute.xlu1 %1654 }
0x16a4   :  { %5502 = vrot.lane.b32.xlu0 %v5501_v44, %s6500_s5 }
0x16a8   :  { %1656 = vrot.lane.b32.xlu0 %v1629_v0, %s6501_s16 }
0x1716   :  { %v5503_v3 = vpop.permute.xlu0 %5502 }
0x1717   :  { %v5505_v36 = vunpack.i.h.bf16 %v5503_v3  ;;  %v5504_v18 = vunpack.i.l.bf16 %v5503_v3  ;;  %v7254_v3 = vsel %vm180_vm14, %v1655_v24, %v7211_v33 }
0x1719   :  { %v7231_v16 = vsel %vm8474_vm15, %v5505_v36, %v7180_v6  ;;  %v7236_v39 = vsel %vm180_vm14, %v5504_v18, %v7184_v45 }
0x171a   :  { %v1662_v56 = vpack.c.bf16 %v7231_v16, %v7236_v39  ;;  %v1657_v44 = vpop.permute.xlu0 %1656 }
0x171c   :  { %5272 = vmatmul.mubr.msk.bf16.vlgmr.msra.gmra.mrb[40].mxu0 %vm283_vm1, %v1662_v56 }
0x171d   :  { %5284 = vmatpush3.bf16.msra.mxu0 %v7171_v59  ;;  %5287 = vmatprep.mubr.msk.bf16.mxu0 %vm6499_vm0, %v8490_v51 }
0x171e   :  { %5285 = vmatprep.subr.bf16.mxu0 %v8490_v51 }
0x1721   :  { %5286 = vmatpush3.bf16.msra.mxu0 %v7186_v53 }
0x1722   :  { %5299 = vmatprep.subr.bf16.mxu0 %v8490_v51 }
0x17ef   :  { %v1700_v60 = vpop.f32.mrb[40].mxu0 }
0x17f0   :  { %v1707_v7 = vadd.f32 %v1700_v60, %v6794_v4  ;;  %v5273_v0 = vpop.f32.mrb[41].mxu0  ;;  %v7261_v4 = vsel %vm8474_vm15, %v1657_v44, %v7217_v14  ;;  %vm8501_vm15 = vcmp.gt.f32.partialorder %v6832_v30, 0.5 }
0x17f1   :  { %v1703_v1 = vpop.f32.mrb[42].mxu0 }
0x17f2   :  { %5900 = vtanh.f32 %v1707_v7  ;;  %v1708_v12 = vadd.f32 %v1703_v1, %v6799_v10  ;;  %v5274_v8 = vpop.f32.mrb[43].mxu0  ;;  %v4969_v10 = vmul.f32 -1.442695, %v1707_v7 }
0x17f4   :  { %5902 = vtanh.f32 %v1708_v12  ;;  %v4970_v36 = vmul.f32 -1.442695, %v1708_v12 }
0x17f5   :  { %5904 = vpow2.f32 %v4969_v10 }
0x17f6   :  { %5906 = vpow2.f32 %v4970_v36 }
0x17fc   :  { %v5901_v2 = vpop.eup %5900 }
0x17fd   :  { %1735 = vrot.lane.b32.xlu1 %v5901_v2, %s6490_s22 }
0x17fe   :  { %v5903_v21 = vpop.eup %5902 }
0x17ff   :  { %1737 = vrot.lane.b32.xlu0 %v5903_v21, %s6490_s22  ;;  %v5905_v18 = vpop.eup %5904 }
0x1800   :  { %v5907_v56 = vpop.eup %5906  ;;  %v1715_v60 = vadd.f32 1.0, %v5905_v18 }
0x1801   :  { %1725 = vrot.lane.b32.xlu1 %v7254_v3, %s6500_s5  ;;  %v1716_v33 = vadd.f32 1.0, %v5907_v56 }
0x1802   :  { %5908 = vrcp.f32 %v1715_v60 }
0x1803   :  { %1727 = vrot.lane.b32.xlu0 %v7261_v4, %s6500_s5  ;;  %5910 = vrcp.f32 %v1716_v33 }
0x180c   :  { %v5909_v0 = vpop.eup %5908 }
0x180d   :  { %v5911_v2 = vpop.eup %5910 }
0x186f   :  { %v1736_v1 = vpop.permute.xlu1 %1735 }
0x1870   :  { %v1741_v8 = vmul.f32 %v5909_v0, %v1736_v1 }
0x1871   :  { %v1738_v24 = vpop.permute.xlu0 %1737 }
0x1872   :  { %1745 = vrot.lane.b32.xlu1 %v1741_v8, %s6500_s5  ;;  %v1742_v14 = vmul.f32 %v5911_v2, %v1738_v24 }
0x1873   :  { %v1726_v7 = vpop.permute.xlu1 %1725 }
0x1874   :  { %1747 = vrot.lane.b32.xlu0 %v1742_v14, %s6500_s5  ;;  %v1731_v12 = vmul.f32 %v5909_v0, %v1726_v7 }
0x1875   :  { %v1728_v21 = vpop.permute.xlu0 %1727 }
0x1876   :  { %v1732_v36 = vmul.f32 %v5911_v2, %v1728_v21 }
0x18e4   :  { %v1746_v44 = vpop.permute.xlu1 %1745 }
0x18e5   :  { %v1751_v10 = vadd.f32 %v1746_v44, %v1731_v12 }
0x18e6   :  { %v1748_v18 = vpop.permute.xlu0 %1747 }
0x18e7   :  { %5912 = vtanh.f32 %v1751_v10  ;;  %v1752_v56 = vadd.f32 %v1748_v18, %v1732_v36 }
0x18e9   :  { %5914 = vtanh.f32 %v1752_v56 }
0x18f1   :  { %v5913_v60 = vpop.eup %5912 }
0x18f2   :  { %1757 = vrot.lane.b32.xlu1 %v5913_v60, %s6490_s22 }
0x18f3   :  { %v5915_v33 = vpop.eup %5914 }
0x18f4   :  { %1759 = vrot.lane.b32.xlu0 %v5915_v33, %s6490_s22 }
0x18f8   :  { %1777 = vrot.lane.b32.xlu0 %v1751_v10, %s6501_s16 }
0x1964   :  { %v1758_v1 = vpop.permute.xlu1 %1757 }
0x1965   :  { %v1763_v24 = vmul.f32 %v5909_v0, %v1758_v1 }
0x1966   :  { %v1760_v8 = vpop.permute.xlu0 %1759 }
0x1967   :  { %v1764_v14 = vmul.f32 %v5911_v2, %v1760_v8 }
0x1969   :  { %v5506_v7 = vpack.i.bf16 %v1764_v14, %v1763_v24 }
0x196a   :  { %v1778_v24 = vpop.permute.xlu0 %1777 }
0x196b   :  { %5507 = vrot.lane.b32.xlu1 %v5506_v7, %s6500_s5  ;;  %v7297_v7 = vsel %vm178_vm13, %v1778_v24, %v7254_v3 }
0x196f   :  { %1779 = vrot.lane.b32.xlu1 %v1752_v56, %s6501_s16 }
0x19dd   :  { %v5508_v12 = vpop.permute.xlu1 %5507 }
0x19de   :  { %v5510_v21 = vunpack.i.h.bf16 %v5508_v12  ;;  %v5509_v44 = vunpack.i.l.bf16 %v5508_v12 }
0x19e0   :  { %v7275_v36 = vsel %vm179_vm12, %v5510_v21, %v7231_v16  ;;  %v7280_v10 = vsel %vm178_vm13, %v5509_v44, %v7236_v39 }
0x19e1   :  { %v1785_v0 = vpack.c.bf16 %v7275_v36, %v7280_v10  ;;  %v1780_v12 = vpop.permute.xlu1 %1779 }
0x19e3   :  { %5280 = vmatmul.mubr.msk.bf16.vlgmr.msra.gmra.mrb[32].mxu1 %vm283_vm1, %v1785_v0 }
0x19e4   :  { %5292 = vmatpush3.bf16.msra.mxu1 %v7171_v59  ;;  %5295 = vmatprep.mubr.msk.bf16.mxu1 %vm6499_vm0, %v8490_v51 }
0x19e5   :  { %5293 = vmatprep.subr.bf16.mxu1 %v8490_v51 }
0x19e8   :  { %5294 = vmatpush3.bf16.msra.mxu1 %v7186_v53 }
0x19e9   :  { %5307 = vmatprep.subr.bf16.mxu1 %v8490_v51 }
0x1ab6   :  { %v1823_v2 = vpop.f32.mrb[32].mxu1 }
0x1ab7   :  { %v1830_v18 = vadd.f32 %v1823_v2, %v6784_v58  ;;  %v5281_v56 = vpop.f32.mrb[33].mxu1  ;;  %v7305_v58 = vsel %vm179_vm12, %v1780_v12, %v7261_v4 }
0x1ab8   :  { %v1826_v60 = vpop.f32.mrb[34].mxu1 }
0x1ab9   :  { %5916 = vtanh.f32 %v1830_v18  ;;  %v1831_v33 = vadd.f32 %v1826_v60, %v6789_v62  ;;  %v5282_v1 = vpop.f32.mrb[35].mxu1  ;;  %v4972_v62 = vmul.f32 -1.442695, %v1830_v18 }
0x1abb   :  { %5918 = vtanh.f32 %v1831_v33  ;;  %v4973_v21 = vmul.f32 -1.442695, %v1831_v33 }
0x1abc   :  { %5920 = vpow2.f32 %v4972_v62 }
0x1abd   :  { %5922 = vpow2.f32 %v4973_v21 }
0x1ac3   :  { %v5917_v8 = vpop.eup %5916 }
0x1ac4   :  { %1858 = vrot.lane.b32.xlu0 %v5917_v8, %s6490_s22 }
0x1ac5   :  { %v5919_v14 = vpop.eup %5918 }
0x1ac6   :  { %1860 = vrot.lane.b32.xlu1 %v5919_v14, %s6490_s22  ;;  %v5921_v3 = vpop.eup %5920 }
0x1ac7   :  { %v5923_v44 = vpop.eup %5922  ;;  %v1838_v0 = vadd.f32 1.0, %v5921_v3 }
0x1ac8   :  { %1848 = vrot.lane.b32.xlu0 %v7297_v7, %s6500_s5  ;;  %v1839_v2 = vadd.f32 1.0, %v5923_v44 }
0x1ac9   :  { %5924 = vrcp.f32 %v1838_v0 }
0x1aca   :  { %1850 = vrot.lane.b32.xlu1 %v7305_v58, %s6500_s5  ;;  %5926 = vrcp.f32 %v1839_v2 }
0x1ad3   :  { %v5925_v56 = vpop.eup %5924 }
0x1ad4   :  { %v5927_v8 = vpop.eup %5926 }
0x1b36   :  { %v1859_v60 = vpop.permute.xlu0 %1858 }
0x1b37   :  { %v1864_v1 = vmul.f32 %v5925_v56, %v1859_v60 }
0x1b38   :  { %v1861_v24 = vpop.permute.xlu1 %1860 }
0x1b39   :  { %1868 = vrot.lane.b32.xlu0 %v1864_v1, %s6500_s5  ;;  %v1865_v4 = vmul.f32 %v5927_v8, %v1861_v24 }
0x1b3a   :  { %v1849_v18 = vpop.permute.xlu0 %1848 }
0x1b3b   :  { %1870 = vrot.lane.b32.xlu1 %v1865_v4, %s6500_s5  ;;  %v1854_v33 = vmul.f32 %v5925_v56, %v1849_v18 }
0x1b3c   :  { %v1851_v14 = vpop.permute.xlu1 %1850 }
0x1b3d   :  { %v1855_v21 = vmul.f32 %v5927_v8, %v1851_v14 }
0x1bab   :  { %v1869_v12 = vpop.permute.xlu0 %1868 }
0x1bac   :  { %v1874_v62 = vadd.f32 %v1869_v12, %v1854_v33 }
0x1bad   :  { %v1871_v3 = vpop.permute.xlu1 %1870 }
0x1bae   :  { %5928 = vtanh.f32 %v1874_v62  ;;  %v1875_v44 = vadd.f32 %v1871_v3, %v1855_v21 }
0x1bb0   :  { %5930 = vtanh.f32 %v1875_v44 }
0x1bb8   :  { %v5929_v0 = vpop.eup %5928 }
0x1bb9   :  { %1880 = vrot.lane.b32.xlu0 %v5929_v0, %s6490_s22 }
0x1bba   :  { %v5931_v2 = vpop.eup %5930 }
0x1bbb   :  { %1882 = vrot.lane.b32.xlu1 %v5931_v2, %s6490_s22 }
0x1bbf   :  { %1900 = vrot.lane.b32.xlu1 %v1874_v62, %s6501_s16 }
0x1c2b   :  { %v1881_v60 = vpop.permute.xlu0 %1880 }
0x1c2c   :  { %v1886_v24 = vmul.f32 %v5925_v56, %v1881_v60 }
0x1c2d   :  { %v1883_v1 = vpop.permute.xlu1 %1882 }
0x1c2e   :  { %v1887_v4 = vmul.f32 %v5927_v8, %v1883_v1 }
0x1c30   :  { %v5511_v18 = vpack.i.bf16 %v1887_v4, %v1886_v24 }
0x1c31   :  { %v1901_v24 = vpop.permute.xlu1 %1900 }
0x1c32   :  { %5512 = vrot.lane.b32.xlu0 %v5511_v18, %s6500_s5  ;;  %v7340_v18 = vsel %vm176_vm11, %v1901_v24, %v7297_v7 }
0x1c36   :  { %1902 = vrot.lane.b32.xlu0 %v1875_v44, %s6501_s16 }
0x1ca4   :  { %v5513_v33 = vpop.permute.xlu0 %5512 }
0x1ca5   :  { %v5515_v14 = vunpack.i.h.bf16 %v5513_v33  ;;  %v5514_v12 = vunpack.i.l.bf16 %v5513_v33 }
0x1ca7   :  { %v7319_v21 = vsel %vm177_vm10, %v5515_v14, %v7275_v36  ;;  %v7324_v62 = vsel %vm176_vm11, %v5514_v12, %v7280_v10 }
0x1ca8   :  { %v1908_v56 = vpack.c.bf16 %v7319_v21, %v7324_v62  ;;  %v1903_v33 = vpop.permute.xlu0 %1902 }
0x1caa   :  { %5288 = vmatmul.mubr.msk.bf16.vlgmr.msra.gmra.mrb[44].mxu0 %vm283_vm1, %v1908_v56 }
0x1cab   :  { %5300 = vmatpush3.bf16.msra.mxu0 %v7171_v59  ;;  %5303 = vmatprep.mubr.msk.bf16.mxu0 %vm6499_vm0, %v8490_v51 }
0x1cac   :  { %5301 = vmatprep.subr.bf16.mxu0 %v8490_v51 }
0x1caf   :  { %5302 = vmatpush3.bf16.msra.mxu0 %v7186_v53 }
0x1d7d   :  { %v1946_v8 = vpop.f32.mrb[44].mxu0 }
0x1d7e   :  { %v1953_v3 = vadd.f32 %v1946_v8, %v6774_v50  ;;  %v5289_v44 = vpop.f32.mrb[45].mxu0  ;;  %v7348_v50 = vsel %vm177_vm10, %v1903_v33, %v7305_v58 }
0x1d7f   :  { %v1949_v0 = vpop.f32.mrb[46].mxu0 }
0x1d80   :  { %5932 = vtanh.f32 %v1953_v3  ;;  %v1954_v2 = vadd.f32 %v1949_v0, %v6779_v54  ;;  %v5290_v60 = vpop.f32.mrb[47].mxu0  ;;  %v4975_v54 = vmul.f32 -1.442695, %v1953_v3 }
0x1d82   :  { %5934 = vtanh.f32 %v1954_v2  ;;  %v4976_v14 = vmul.f32 -1.442695, %v1954_v2 }
0x1d83   :  { %5936 = vpow2.f32 %v4975_v54 }
0x1d84   :  { %5938 = vpow2.f32 %v4976_v14 }
0x1d8a   :  { %v5933_v1 = vpop.eup %5932 }
0x1d8b   :  { %1981 = vrot.lane.b32.xlu1 %v5933_v1, %s6490_s22 }
0x1d8c   :  { %v5935_v4 = vpop.eup %5934 }
0x1d8d   :  { %1983 = vrot.lane.b32.xlu0 %v5935_v4, %s6490_s22  ;;  %v5937_v7 = vpop.eup %5936 }
0x1d8e   :  { %v5939_v12 = vpop.eup %5938  ;;  %v1961_v56 = vadd.f32 1.0, %v5937_v7 }
0x1d8f   :  { %1971 = vrot.lane.b32.xlu1 %v7340_v18, %s6500_s5  ;;  %v1962_v8 = vadd.f32 1.0, %v5939_v12 }
0x1d90   :  { %5940 = vrcp.f32 %v1961_v56 }
0x1d91   :  { %1973 = vrot.lane.b32.xlu0 %v7348_v50, %s6500_s5  ;;  %5942 = vrcp.f32 %v1962_v8 }
0x1d9a   :  { %v5941_v44 = vpop.eup %5940 }
0x1d9b   :  { %v5943_v1 = vpop.eup %5942 }
0x1dfd   :  { %v1982_v0 = vpop.permute.xlu1 %1981 }
0x1dfe   :  { %v1987_v60 = vmul.f32 %v5941_v44, %v1982_v0 }
0x1dff   :  { %v1984_v24 = vpop.permute.xlu0 %1983 }
0x1e00   :  { %1991 = vrot.lane.b32.xlu1 %v1987_v60, %s6500_s5  ;;  %v1988_v58 = vmul.f32 %v5943_v1, %v1984_v24 }
0x1e01   :  { %v1972_v3 = vpop.permute.xlu1 %1971 }
0x1e02   :  { %1993 = vrot.lane.b32.xlu0 %v1988_v58, %s6500_s5  ;;  %v1977_v2 = vmul.f32 %v5941_v44, %v1972_v3 }
0x1e03   :  { %v1974_v4 = vpop.permute.xlu0 %1973 }
0x1e04   :  { %v1978_v14 = vmul.f32 %v5943_v1, %v1974_v4 }
0x1e72   :  { %v1992_v33 = vpop.permute.xlu1 %1991 }
0x1e73   :  { %v1997_v54 = vadd.f32 %v1992_v33, %v1977_v2 }
0x1e74   :  { %v1994_v7 = vpop.permute.xlu0 %1993 }
0x1e75   :  { %5944 = vtanh.f32 %v1997_v54  ;;  %v1998_v12 = vadd.f32 %v1994_v7, %v1978_v14 }
0x1e77   :  { %5946 = vtanh.f32 %v1998_v12 }
0x1e7f   :  { %v5945_v56 = vpop.eup %5944 }
0x1e80   :  { %2003 = vrot.lane.b32.xlu1 %v5945_v56, %s6490_s22 }
0x1e81   :  { %v5947_v8 = vpop.eup %5946 }
0x1e82   :  { %2005 = vrot.lane.b32.xlu0 %v5947_v8, %s6490_s22 }
0x1e86   :  { %2023 = vrot.lane.b32.xlu0 %v1997_v54, %s6501_s16 }
0x1ef2   :  { %v2004_v0 = vpop.permute.xlu1 %2003 }
0x1ef3   :  { %v2009_v24 = vmul.f32 %v5941_v44, %v2004_v0 }
0x1ef4   :  { %v2006_v60 = vpop.permute.xlu0 %2005 }
0x1ef5   :  { %v2010_v58 = vmul.f32 %v5943_v1, %v2006_v60 }
0x1ef7   :  { %v5516_v3 = vpack.i.bf16 %v2010_v58, %v2009_v24 }
0x1ef8   :  { %v2024_v60 = vpop.permute.xlu0 %2023 }
0x1ef9   :  { %5517 = vrot.lane.b32.xlu1 %v5516_v3, %s6500_s5 }
0x1efd   :  { %2025 = vrot.lane.b32.xlu1 %v1998_v12, %s6501_s16 }
0x1f6b   :  { %v5518_v2 = vpop.permute.xlu1 %5517 }
0x1f6c   :  { %v5520_v4 = vunpack.i.h.bf16 %v5518_v2  ;;  %v5519_v33 = vunpack.i.l.bf16 %v5518_v2 }
0x1f6e   :  { %v7362_v14 = vsel %vm175_vm8, %v5520_v4, %v7319_v21  ;;  %v7367_v54 = vsel %vm174_vm9, %v5519_v33, %v7324_v62 }
0x1f6f   :  { %v2031_v44 = vpack.c.bf16 %v7362_v14, %v7367_v54  ;;  %v2026_v58 = vpop.permute.xlu1 %2025 }
0x1f71   :  { %5296 = vmatmul.mubr.msk.bf16.vlgmr.msra.gmra.mrb[36].mxu1 %vm283_vm1, %v2031_v44 }
0x1f72   :  { %5308 = vmatpush3.bf16.msra.mxu1 %v7171_v59  ;;  %5311 = vmatprep.mubr.msk.bf16.mxu1 %vm6499_vm0, %v8490_v51 }
0x1f73   :  { %5309 = vmatprep.subr.bf16.mxu1 %v8490_v51 }
0x1f76   :  { %5310 = vmatpush3.bf16.msra.mxu1 %v7186_v53  ;;  %v7384_v53 = vsel %vm174_vm9, %v2024_v60, %v7340_v18 }
0x1f77   :  { %5315 = vmatprep.subr.bf16.mxu1 %v8490_v51 }
0x2044   :  { %v2069_v1 = vpop.f32.mrb[36].mxu1 }
0x2045   :  { %v2076_v7 = vadd.f32 %v2069_v1, %v6764_v42  ;;  %v5297_v12 = vpop.f32.mrb[37].mxu1  ;;  %v7392_v42 = vsel %vm175_vm8, %v2026_v58, %v7348_v50 }
0x2046   :  { %v2072_v56 = vpop.f32.mrb[38].mxu1 }
0x2047   :  { %5948 = vtanh.f32 %v2076_v7  ;;  %v2077_v8 = vadd.f32 %v2072_v56, %v6769_v46  ;;  %v5298_v0 = vpop.f32.mrb[39].mxu1  ;;  %v4978_v46 = vmul.f32 -1.442695, %v2076_v7 }
0x2049   :  { %5950 = vtanh.f32 %v2077_v8  ;;  %v4979_v3 = vmul.f32 -1.442695, %v2077_v8 }
0x204a   :  { %5952 = vpow2.f32 %v4978_v46 }
0x204b   :  { %5954 = vpow2.f32 %v4979_v3 }
0x2051   :  { %v5949_v59 = vpop.eup %5948 }
0x2052   :  { %2104 = vrot.lane.b32.xlu0 %v5949_v59, %s6490_s22 }
0x2053   :  { %v5951_v24 = vpop.eup %5950 }
0x2054   :  { %2106 = vrot.lane.b32.xlu1 %v5951_v24, %s6490_s22  ;;  %v5953_v18 = vpop.eup %5952 }
0x2055   :  { %v5955_v2 = vpop.eup %5954  ;;  %v2084_v4 = vadd.f32 1.0, %v5953_v18 }
0x2056   :  { %2094 = vrot.lane.b32.xlu0 %v7384_v53, %s6500_s5  ;;  %v2085_v33 = vadd.f32 1.0, %v5955_v2 }
0x2057   :  { %5956 = vrcp.f32 %v2084_v4 }
0x2058   :  { %2096 = vrot.lane.b32.xlu1 %v7392_v42, %s6500_s5  ;;  %5958 = vrcp.f32 %v2085_v33 }
0x2061   :  { %v5957_v44 = vpop.eup %5956 }
0x2062   :  { %v5959_v56 = vpop.eup %5958 }
0x20c4   :  { %v2105_v1 = vpop.permute.xlu0 %2104 }
0x20c5   :  { %v2110_v12 = vmul.f32 %v5957_v44, %v2105_v1 }
0x20c6   :  { %v2107_v0 = vpop.permute.xlu1 %2106 }
0x20c7   :  { %2114 = vrot.lane.b32.xlu0 %v2110_v12, %s6500_s5  ;;  %v2111_v50 = vmul.f32 %v5959_v56, %v2107_v0 }
0x20c8   :  { %v2095_v7 = vpop.permute.xlu0 %2094 }
0x20c9   :  { %2116 = vrot.lane.b32.xlu1 %v2111_v50, %s6500_s5  ;;  %v2100_v8 = vmul.f32 %v5957_v44, %v2095_v7 }
0x20ca   :  { %v2097_v59 = vpop.permute.xlu1 %2096 }
0x20cb   :  { %v2101_v58 = vmul.f32 %v5959_v56, %v2097_v59 }
0x2139   :  { %v2115_v60 = vpop.permute.xlu0 %2114 }
0x213a   :  { %v2120_v24 = vadd.f32 %v2115_v60, %v2100_v8 }
0x213b   :  { %v2117_v46 = vpop.permute.xlu1 %2116 }
0x213c   :  { %5960 = vtanh.f32 %v2120_v24  ;;  %v2121_v3 = vadd.f32 %v2117_v46, %v2101_v58 }
0x213e   :  { %5962 = vtanh.f32 %v2121_v3 }
0x2146   :  { %v5961_v18 = vpop.eup %5960 }
0x2147   :  { %2126 = vrot.lane.b32.xlu0 %v5961_v18, %s6490_s22 }
0x2148   :  { %v5963_v2 = vpop.eup %5962 }
0x2149   :  { %2128 = vrot.lane.b32.xlu1 %v5963_v2, %s6490_s22 }
0x214d   :  { %2146 = vrot.lane.b32.xlu1 %v2120_v24, %s6501_s16 }
0x21b9   :  { %v2127_v4 = vpop.permute.xlu0 %2126 }
0x21ba   :  { %v2132_v1 = vmul.f32 %v5957_v44, %v2127_v4 }
0x21bb   :  { %v2129_v33 = vpop.permute.xlu1 %2128 }
0x21bc   :  { %v2133_v12 = vmul.f32 %v5959_v56, %v2129_v33  ;;  %v8491_v56 = vmov 0  }
0x21be   :  { %v5521_v0 = vpack.i.bf16 %v2133_v12, %v2132_v1 }
0x21bf   :  { %v2147_v33 = vpop.permute.xlu1 %2146 }
0x21c0   :  { %5522 = vrot.lane.b32.xlu0 %v5521_v0, %s6500_s5  ;;  %v7423_v12 = vsel %vm172_vm7, %v2147_v33, %v7384_v53 }
0x21c4   :  { %2148 = vrot.lane.b32.xlu0 %v2121_v3, %s6501_s16 }
0x2232   :  { %v5523_v50 = vpop.permute.xlu0 %5522 }
0x2233   :  { %v5525_v7 = vunpack.i.h.bf16 %v5523_v50  ;;  %v5524_v8 = vunpack.i.l.bf16 %v5523_v50 }
0x2235   :  { %v7406_v59 = vsel %vm173_vm6, %v5525_v7, %v7362_v14  ;;  %v7411_v60 = vsel %vm172_vm7, %v5524_v8, %v7367_v54 }
0x2236   :  { %v2154_v44 = vpack.c.bf16 %v7406_v59, %v7411_v60  ;;  %v2149_v0 = vpop.permute.xlu0 %2148 }
0x2238   :  { %5304 = vmatmul.mubr.msk.bf16.vlgmr.msra.gmra.mrb[48].mxu0 %vm283_vm1, %v2154_v44 }
0x2239   :  { %2605 = vmatprep.mubr.bf16.mxu0 %v8491_v56 }
0x230b   :  { %v2192_v24 = vpop.f32.mrb[48].mxu0 }
0x230c   :  { %v2199_v58 = vadd.f32 %v2192_v24, %v6754_v34  ;;  %v5305_v46 = vpop.f32.mrb[49].mxu0  ;;  %v7431_v34 = vsel %vm173_vm6, %v2149_v0, %v7392_v42 }
0x230d   :  { %v2195_v3 = vpop.f32.mrb[50].mxu0 }
0x230e   :  { %5964 = vtanh.f32 %v2199_v58  ;;  %v2200_v18 = vadd.f32 %v2195_v3, %v6759_v38  ;;  %v5306_v2 = vpop.f32.mrb[51].mxu0  ;;  %v4981_v38 = vmul.f32 -1.442695, %v2199_v58 }
0x2310   :  { %5966 = vtanh.f32 %v2200_v18  ;;  %v4982_v50 = vmul.f32 -1.442695, %v2200_v18 }
0x2311   :  { %5968 = vpow2.f32 %v4981_v38 }
0x2312   :  { %5970 = vpow2.f32 %v4982_v50 }
0x2318   :  { %v5965_v4 = vpop.eup %5964 }
0x2319   :  { %2227 = vrot.lane.b32.xlu1 %v5965_v4, %s6490_s22 }
0x231a   :  { %v5967_v1 = vpop.eup %5966 }
0x231b   :  { %2229 = vrot.lane.b32.xlu0 %v5967_v1, %s6490_s22  ;;  %v5969_v53 = vpop.eup %5968 }
0x231c   :  { %v5971_v7 = vpop.eup %5970  ;;  %v2207_v8 = vadd.f32 1.0, %v5969_v53 }
0x231d   :  { %2217 = vrot.lane.b32.xlu1 %v7423_v12, %s6500_s5  ;;  %v2208_v44 = vadd.f32 1.0, %v5971_v7 }
0x231e   :  { %5972 = vrcp.f32 %v2207_v8 }
0x231f   :  { %2219 = vrot.lane.b32.xlu0 %v7431_v34, %s6500_s5  ;;  %5974 = vrcp.f32 %v2208_v44 }
0x2328   :  { %v5973_v24 = vpop.eup %5972 }
0x2329   :  { %v5975_v2 = vpop.eup %5974 }
0x238b   :  { %v2228_v46 = vpop.permute.xlu1 %2227 }
0x238c   :  { %v2233_v3 = vmul.f32 %v5973_v24, %v2228_v46 }
0x238d   :  { %v2230_v4 = vpop.permute.xlu0 %2229 }
0x238e   :  { %2237 = vrot.lane.b32.xlu1 %v2233_v3, %s6500_s5  ;;  %v2234_v42 = vmul.f32 %v5975_v2, %v2230_v4 }
0x238f   :  { %v2218_v58 = vpop.permute.xlu1 %2217 }
0x2390   :  { %2239 = vrot.lane.b32.xlu0 %v2234_v42, %s6500_s5  ;;  %v2223_v18 = vmul.f32 %v5973_v24, %v2218_v58 }
0x2391   :  { %v2220_v33 = vpop.permute.xlu0 %2219 }
0x2392   :  { %v2224_v38 = vmul.f32 %v5975_v2, %v2220_v33 }
0x2400   :  { %v2238_v1 = vpop.permute.xlu1 %2237 }
0x2401   :  { %v2243_v0 = vadd.f32 %v2238_v1, %v2223_v18 }
0x2402   :  { %v2240_v50 = vpop.permute.xlu0 %2239 }
0x2403   :  { %5976 = vtanh.f32 %v2243_v0  ;;  %v2244_v53 = vadd.f32 %v2240_v50, %v2224_v38 }
0x2405   :  { %5978 = vtanh.f32 %v2244_v53 }
0x240d   :  { %v5977_v7 = vpop.eup %5976 }
0x240e   :  { %2249 = vrot.lane.b32.xlu1 %v5977_v7, %s6490_s22 }
0x240f   :  { %v5979_v8 = vpop.eup %5978 }
0x2410   :  { %2251 = vrot.lane.b32.xlu0 %v5979_v8, %s6490_s22 }
0x2414   :  { %2269 = vrot.lane.b32.xlu0 %v2243_v0, %s6501_s16 }
0x2480   :  { %v2250_v44 = vpop.permute.xlu1 %2249 }
0x2481   :  { %v2255_v3 = vmul.f32 %v5973_v24, %v2250_v44 }
0x2482   :  { %v2252_v46 = vpop.permute.xlu0 %2251 }
0x2483   :  { %v2256_v4 = vmul.f32 %v5975_v2, %v2252_v46 }
0x2485   :  { %v5526_v42 = vpack.i.bf16 %v2256_v4, %v2255_v3 }
0x2486   :  { %v2270_v46 = vpop.permute.xlu0 %2269 }
0x2487   :  { %5527 = vrot.lane.b32.xlu1 %v5526_v42, %s6500_s5  ;;  %v7463_v4 = vsel %vm170_vm5, %v2270_v46, %v7423_v12 }
0x2488   :  { %8492 = vst [vmem:[#allocation33_spill] sm:$0xff] %v7463_v4 }
0x248b   :  { %2271 = vrot.lane.b32.xlu1 %v2244_v53, %s6501_s16 }
0x24f9   :  { %v5528_v58 = vpop.permute.xlu1 %5527 }
0x24fa   :  { %v5530_v18 = vunpack.i.h.bf16 %v5528_v58  ;;  %v5529_v33 = vunpack.i.l.bf16 %v5528_v58 }
0x24fc   :  { %v7445_v1 = vsel %vm171_vm4, %v5530_v18, %v7406_v59  ;;  %v7450_v0 = vsel %vm170_vm5, %v5529_v33, %v7411_v60 }
0x24fd   :  { %v2277_v24 = vpack.c.bf16 %v7445_v1, %v7450_v0  ;;  %v2272_v42 = vpop.permute.xlu1 %2271 }
0x24ff   :  { %5312 = vmatmul.mubr.msk.bf16.vlgmr.msra.gmra.mrb[40].mxu1 %vm283_vm1, %v2277_v24 }
0x2500   :  { %5319 = vmatprep.mubr.msk.bf16.mxu1 %vm6499_vm0, %v8490_v51 }
0x25d2   :  { %v2315_v2 = vpop.f32.mrb[40].mxu1 }
0x25d3   :  { %v2322_v38 = vadd.f32 %v2315_v2, %v6743_v25  ;;  %v5313_v50 = vpop.f32.mrb[41].mxu1  ;;  %v7471_v25 = vsel %vm171_vm4, %v2272_v42, %v7431_v34 }
0x25d4   :  { %v2318_v53 = vpop.f32.mrb[42].mxu1  ;;  %8493 = vst [vmem:[#allocation34_spill] sm:$0xff] %v7471_v25 }
0x25d5   :  { %5980 = vtanh.f32 %v2322_v38  ;;  %v2323_v7 = vadd.f32 %v2318_v53, %v6747_v29  ;;  %v5314_v8 = vpop.f32.mrb[43].mxu1  ;;  %v4984_v29 = vmul.f32 -1.442695, %v2322_v38 }
0x25d7   :  { %5982 = vtanh.f32 %v2323_v7  ;;  %v4985_v58 = vmul.f32 -1.442695, %v2323_v7 }
0x25d8   :  { %5984 = vpow2.f32 %v4984_v29 }
0x25d9   :  { %5986 = vpow2.f32 %v4985_v58 }
0x25df   :  { %v5981_v44 = vpop.eup %5980 }
0x25e0   :  { %2350 = vrot.lane.b32.xlu0 %v5981_v44, %s6490_s22 }
0x25e1   :  { %v5983_v3 = vpop.eup %5982 }
0x25e2   :  { %2352 = vrot.lane.b32.xlu1 %v5983_v3, %s6490_s22  ;;  %v5985_v12 = vpop.eup %5984 }
0x25e3   :  { %v5987_v18 = vpop.eup %5986  ;;  %v2330_v33 = vadd.f32 1.0, %v5985_v12 }
0x25e4   :  { %2340 = vrot.lane.b32.xlu0 %v7463_v4, %s6500_s5  ;;  %v2331_v24 = vadd.f32 1.0, %v5987_v18 }
0x25e5   :  { %5988 = vrcp.f32 %v2330_v33 }
0x25e6   :  { %2342 = vrot.lane.b32.xlu1 %v7471_v25, %s6500_s5  ;;  %5990 = vrcp.f32 %v2331_v24 }
0x25ef   :  { %v5989_v2 = vpop.eup %5988 }
0x25f0   :  { %v5991_v8 = vpop.eup %5990 }
0x2652   :  { %v2351_v50 = vpop.permute.xlu0 %2350 }
0x2653   :  { %v2356_v53 = vmul.f32 %v5989_v2, %v2351_v50  ;;  %v5724_v50 = vld [vmem:[#allocation11] ss:$8 sps:$4 sm:$0xff]  }
0x2654   :  { %v2353_v44 = vpop.permute.xlu1 %2352 }
0x2655   :  { %2360 = vrot.lane.b32.xlu0 %v2356_v53, %s6500_s5  ;;  %v2357_v34 = vmul.f32 %v5991_v8, %v2353_v44  ;;  %v5726_v53 = vld [vmem:[#allocation11 + $0x4] ss:$8 sps:$4 sm:$0xff]  }
0x2656   :  { %v2341_v38 = vpop.permute.xlu0 %2340  ;;  %2573 = vmatprep.subr.bf16.mxu0 %v5726_v53  ;;  %v5736_v53 = vld [vmem:[#allocation11 + $0x34] ss:$8 sps:$4 sm:$0xff]  }
0x2657   :  { %2362 = vrot.lane.b32.xlu1 %v2357_v34, %s6500_s5  ;;  %v2346_v7 = vmul.f32 %v5989_v2, %v2341_v38  ;;  %v5729_v34 = vld [vmem:[#allocation11 + $0x14] ss:$8 sps:$4 sm:$0xff]   ;;  %v7490_v38 = vld [vmem:[%s8439_s7] sm:$0xff]   ;;  %2574 = vmatpush1.bf16.msra.mxu0 %v5724_v50  ;;  %v7498_v50 = vld [vmem:[%s8439_s7 + $0x8] sm:$0xff]  }
0x2658   :  { %v2343_v46 = vpop.permute.xlu1 %2342  ;;  %2575 = vmatprep.subr.bf16.mxu0 %v5729_v34  ;;  %5316 = vmatpush3.bf16.msra.mxu1 %v7490_v38 }
0x2659   :  { %v2347_v29 = vmul.f32 %v5991_v8, %v2343_v46  ;;  %v5727_v46 = vld [vmem:[#allocation11 + $0x10] ss:$8 sps:$4 sm:$0xff]   ;;  %5317 = vmatprep.subr.bf16.mxu1 %v8490_v51 }
0x265b   :  { %2576 = vmatpush1.bf16.msra.mxu0 %v5727_v46 }
0x265c   :  { %5318 = vmatpush3.bf16.msra.mxu1 %v7498_v50 }
0x265d   :  { %5323 = vmatprep.subr.bf16.mxu1 %v8490_v51 }
0x265f   :  { %5320 = vmatmul.mubr.bf16.vlgmr.msra.gmra.mrb[44].mxu1 %v8491_v56 }
0x2660   :  { %5324 = vmatpush3.bf16.msra.mxu1 %v7490_v38  ;;  %5327 = vmatprep.mubr.msk.bf16.mxu1 %vm6499_vm0, %v8490_v51 }
0x2661   :  { %5325 = vmatprep.subr.bf16.mxu1 %v8490_v51 }
0x2664   :  { %5326 = vmatpush3.bf16.msra.mxu1 %v7498_v50 }
0x2665   :  { %5331 = vmatprep.subr.bf16.mxu1 %v8490_v51 }
0x26c7   :  { %v2361_v3 = vpop.permute.xlu0 %2360 }
0x26c8   :  { %v7477_v42 = vadd.f32 %v2361_v3, %v2346_v7 }
0x26c9   :  { %v2363_v58 = vpop.permute.xlu1 %2362 }
0x26ca   :  { %8494 = vst [vmem:[#allocation35_spill] sm:$0xff] %v7477_v42  ;;  %5992 = vtanh.f32 %v7477_v42  ;;  %v7480_v12 = vadd.f32 %v2363_v58, %v2347_v29  ;;  %v5732_v58 = vld [vmem:[#allocation11 + $0x24] ss:$8 sps:$4 sm:$0xff]  }
0x26cb   :  { %2577 = vmatprep.subr.bf16.mxu0 %v5732_v58 }
0x26cc   :  { %8495 = vst [vmem:[#allocation36_spill] sm:$0xff] %v7480_v12  ;;  %5994 = vtanh.f32 %v7480_v12 }
0x26d4   :  { %v5993_v33 = vpop.eup %5992 }
0x26d5   :  { %2372 = vrot.lane.b32.xlu0 %v5993_v33, %s6490_s22 }
0x26d6   :  { %v5995_v24 = vpop.eup %5994 }
0x26d7   :  { %2374 = vrot.lane.b32.xlu1 %v5995_v24, %s6490_s22  ;;  %v5730_v24 = vld [vmem:[#allocation11 + $0x20] ss:$8 sps:$4 sm:$0xff]  }
0x26d8   :  { %2578 = vmatpush1.bf16.msra.mxu0 %v5730_v24 }
0x26d9   :  { %2579 = vmatprep.subr.bf16.mxu0 %v5736_v53 }
0x2747   :  { %v2373_v44 = vpop.permute.xlu0 %2372 }
0x2748   :  { %v2378_v3 = vmul.f32 %v5989_v2, %v2373_v44  ;;  %v5734_v2 = vld [vmem:[#allocation11 + $0x30] ss:$8 sps:$4 sm:$0xff]  }
0x2749   :  { %v2375_v7 = vpop.permute.xlu1 %2374  ;;  %2580 = vmatpush1.bf16.msra.mxu0 %v5734_v2 }
0x274a   :  { %v2379_v29 = vmul.f32 %v5991_v8, %v2375_v7  ;;  %5387 = vmatprep.subr.bf16.mxu0 %v8490_v51 }
0x274c   :  { %v5531_v33 = vpack.i.bf16 %v2379_v29, %v2378_v3 }
0x274e   :  { %5532 = vrot.lane.b32.xlu0 %v5531_v33, %s6500_s5 }
0x27c0   :  { %v5533_v8 = vpop.permute.xlu0 %5532 }
0x27c1   :  { %v5535_v44 = vunpack.i.h.bf16 %v5533_v8  ;;  %v5534_v34 = vunpack.i.l.bf16 %v5533_v8  ;;  %v2736_v8 = vpop.f32.mrb[44].mxu1 }
0x27c3   :  { %v2389_v7 = vsel %vm8496_vm2, %v5535_v44, %v7445_v1  ;;  %v2388_v46 = vsel %vm8497_vm3, %v5534_v34, %v7450_v0  ;;  %vm2548_vm2 = vcmask 523264   ;;  %v5321_v44 = vpop.f32.mrb[45].mxu1  ;;  %vm8500_vm3 = vcmp.gt.f32.partialorder %v6830_v26, 0.5 }
0x27c4   :  { %v5536_v3 = vpack.i.bf16 %v2389_v7, %v2388_v46  ;;  %v2739_v34 = vpop.f32.mrb[46].mxu1  ;;  %v2496_v46 = vld [vmem:[%s8441_s9] sm:$0x3] }
0x27c5   :  { %v5322_v7 = vpop.f32.mrb[47].mxu1 }
0x27c6   :  { %5537 = vrot.lane.b32.xlu1 %v5536_v3, %s6500_s5 }
0x2838   :  { %v7517_v29 = vpop.permute.xlu1 %5537 }
0x2839   :  { %8498 = vst [vmem:[#allocation37_spill] sm:$0xff] %v7517_v29  ;;  %v8467_v58 = vunpack.i.h.bf16 %v7517_v29  ;;  %v8468_v33 = vunpack.i.l.bf16 %v7517_v29 }
0x283b   :  { %v2465_v24 = vsel %vm283_vm1, %v6842_v22, %v8467_v58  ;;  %v2464_v53 = vsel %vm283_vm1, %v6838_v13, %v8468_v33  ;;  %v8499_v22 = vsub.s32 0, %v6732_v19 }
0x283c   :  { %v2480_v2 = vpack.c.bf16 %v2465_v24, %v2464_v53 }
0x283d   :  { %v7536_v3 = vrot.slane %v2496_v46, %v8499_v22 }
0x283e   :  { %4994 = vmatmul.mubr.msk.bf16.vlgmr.msra.gmra.mrb[52].mxu0 %vm2548_vm2, %v2480_v2 }
0x283f   :  { %2615 = vmatprep.mubr.bf16.mxu0 %v8491_v56 }
0x2911   :  { %v2607_v58 = vpop.f32.mrb[52].mxu0 }
0x2912   :  { %v2608_v13 = vadd.f32 %v2607_v58, %v7536_v3  ;;  %v7539_v24 = vpop.f32.mrb[53].mxu0 }
0x2913   :  { %v2611_v53 = vpop.f32.mrb[54].mxu0 }
0x2914   :  { %v2743_v2 = vadd.f32 %v2736_v8, %v2608_v13  ;;  %v2612_v33 = vadd.f32 %v2611_v53, %v7536_v3  ;;  %v7542_v44 = vpop.f32.mrb[55].mxu0 }
0x2916   :  { %5996 = vtanh.f32 %v2743_v2  ;;  %v2744_v7 = vadd.f32 %v2739_v34, %v2612_v33  ;;  %v5004_v46 = vmul.f32 -1.442695, %v2743_v2 }
0x2918   :  { %5998 = vtanh.f32 %v2744_v7  ;;  %v5005_v22 = vmul.f32 -1.442695, %v2744_v7 }
0x2919   :  { %6000 = vpow2.f32 %v5004_v46 }
0x291a   :  { %6002 = vpow2.f32 %v5005_v22 }
0x2920   :  { %v5997_v18 = vpop.eup %5996 }
0x2921   :  { %2763 = vrot.lane.b32.xlu0 %v5997_v18, %s6490_s22 }
0x2922   :  { %v5999_v29 = vpop.eup %5998 }
0x2923   :  { %2765 = vrot.lane.b32.xlu1 %v5999_v29, %s6490_s22  ;;  %v6001_v58 = vpop.eup %6000 }
0x2924   :  { %v6003_v4 = vpop.eup %6002  ;;  %v2751_v8 = vadd.f32 1.0, %v6001_v58 }
0x2925   :  { %v2752_v13 = vadd.f32 1.0, %v6003_v4 }
0x2926   :  { %6004 = vrcp.f32 %v2751_v8 }
0x2927   :  { %6006 = vrcp.f32 %v2752_v13 }
0x2930   :  { %v6005_v53 = vpop.eup %6004 }
0x2931   :  { %v6007_v34 = vpop.eup %6006  ;;  %v2759_v29 = vmul.f32 0.0, %v6005_v53 }
0x2932   :  { %v2760_v46 = vmul.f32 0.0, %v6007_v34 }
0x2993   :  { %v2764_v25 = vpop.permute.xlu0 %2763 }
0x2994   :  { %v2769_v33 = vmul.f32 %v6005_v53, %v2764_v25  ;;  %v5541_v25 = vpack.i.bf16 %v7445_v1, %v7450_v0 }
0x2995   :  { %v2766_v42 = vpop.permute.xlu1 %2765 }
0x2996   :  { %2773 = vrot.lane.b32.xlu0 %v2769_v33, %s6500_s5  ;;  %v2770_v18 = vmul.f32 %v6007_v34, %v2766_v42 }
0x2998   :  { %2775 = vrot.lane.b32.xlu1 %v2770_v18, %s6500_s5 }
0x2a08   :  { %v2774_v2 = vpop.permute.xlu0 %2773 }
0x2a09   :  { %v2779_v7 = vadd.f32 %v2774_v2, %v2759_v29 }
0x2a0a   :  { %v2776_v22 = vpop.permute.xlu1 %2775 }
0x2a0b   :  { %6008 = vtanh.f32 %v2779_v7  ;;  %v2780_v58 = vadd.f32 %v2776_v22, %v2760_v46 }
0x2a0d   :  { %6010 = vtanh.f32 %v2780_v58 }
0x2a15   :  { %v6009_v4 = vpop.eup %6008 }
0x2a16   :  { %2785 = vrot.lane.b32.xlu0 %v6009_v4, %s6490_s22 }
0x2a17   :  { %v6011_v8 = vpop.eup %6010 }
0x2a18   :  { %2787 = vrot.lane.b32.xlu1 %v6011_v8, %s6490_s22 }
0x2a1a   :  { %5542 = vrot.lane.b32.xlu0 %v5541_v25, %s6500_s5 }
0x2a1e   :  { %2805 = vrot.lane.b32.xlu0 %v2779_v7, %s6501_s16 }
0x2a88   :  { %v2786_v42 = vpop.permute.xlu0 %2785 }
0x2a89   :  { %v2791_v33 = vmul.f32 %v6005_v53, %v2786_v42 }
0x2a8a   :  { %v2788_v13 = vpop.permute.xlu1 %2787 }
0x2a8b   :  { %v2792_v18 = vmul.f32 %v6007_v34, %v2788_v13 }
0x2a8c   :  { %v5543_v29 = vpop.permute.xlu0 %5542 }
0x2a8d   :  { %v5545_v2 = vunpack.i.h.bf16 %v5543_v29  ;;  %v5544_v46 = vunpack.i.l.bf16 %v5543_v29  ;;  %v5546_v22 = vpack.i.bf16 %v2792_v18, %v2791_v33 }
0x2a8f   :  { %v2467_v4 = vsel %vm283_vm1, %v6885_v61, %v5545_v2  ;;  %v2466_v1 = vsel %vm283_vm1, %v6890_v5, %v5544_v46  ;;  %5547 = vrot.lane.b32.xlu1 %v5546_v22, %s6500_s5 }
0x2a90   :  { %v2481_v0 = vpack.c.bf16 %v2467_v4, %v2466_v1 }
0x2a92   :  { %4995 = vmatmul.mubr.msk.bf16.gmra.mrb[56].mxu0 %vm2548_vm2, %v2481_v0 }
0x2a93   :  { %2625 = vmatprep.mubr.bf16.mxu0 %v8491_v56  ;;  %2807 = vrot.lane.b32.xlu1 %v2780_v58, %s6501_s16 }
0x2b01   :  { %v5548_v53 = vpop.permute.xlu1 %5547 }
0x2b02   :  { %v5550_v34 = vunpack.i.h.bf16 %v5548_v53  ;;  %v5549_v7 = vunpack.i.l.bf16 %v5548_v53  ;;  %v2806_v53 = vpop.permute.xlu0 %2805 }
0x2b04   :  { %v7564_v8 = vsel %vm8500_vm3, %v5550_v34, 0.0  ;;  %v7568_v61 = vsel %vm8501_vm15, %v5549_v7, 0.0  ;;  %v7588_v7 = vsel %vm8501_vm15, %v2806_v53, 0.0  ;;  %vm8508_vm15 = vcmp.gt.f32.partialorder %v7149_v32, 0.5 }
0x2b05   :  { %v2813_v5 = vpack.c.bf16 %v7564_v8, %v7568_v61 }
0x2b07   :  { %5328 = vmatmul.mubr.msk.bf16.vlgmr.msra.gmra.mrb[48].mxu1 %vm283_vm1, %v2813_v5  ;;  %v2808_v5 = vpop.permute.xlu1 %2807 }
0x2b08   :  { %5332 = vmatpush3.bf16.msra.mxu1 %v7490_v38  ;;  %5335 = vmatprep.mubr.msk.bf16.mxu1 %vm6499_vm0, %v8490_v51 }
0x2b09   :  { %5333 = vmatprep.subr.bf16.mxu1 %v8490_v51 }
0x2b0c   :  { %5334 = vmatpush3.bf16.msra.mxu1 %v7498_v50 }
0x2b0d   :  { %5339 = vmatprep.subr.bf16.mxu1 %v8490_v51 }
0x2b65   :  { %v2617_v58 = vpop.f32.mrb[56].mxu0 }
0x2b66   :  { %v7579_v25 = vpop.f32.mrb[57].mxu0  ;;  %v2618_v33 = vadd.f32 %v2617_v58, %v7536_v3  ;;  %v7595_v58 = vsel %vm8500_vm3, %v2808_v5, 0.0  ;;  %vm8509_vm3 = vmmov %vm8508_vm15 }
0x2b67   :  { %v2621_v42 = vpop.f32.mrb[58].mxu0 }
0x2b68   :  { %v7581_v13 = vpop.f32.mrb[59].mxu0  ;;  %v2622_v29 = vadd.f32 %v2621_v42, %v7536_v3 }
0x2bda   :  { %v2851_v18 = vpop.f32.mrb[48].mxu1 }
0x2bdb   :  { %v2858_v2 = vadd.f32 %v2851_v18, %v2618_v33  ;;  %v5329_v46 = vpop.f32.mrb[49].mxu1 }
0x2bdc   :  { %v2854_v22 = vpop.f32.mrb[50].mxu1 }
0x2bdd   :  { %6012 = vtanh.f32 %v2858_v2  ;;  %v2859_v4 = vadd.f32 %v2854_v22, %v2622_v29  ;;  %v5330_v1 = vpop.f32.mrb[51].mxu1  ;;  %v5007_v42 = vmul.f32 -1.442695, %v2858_v2 }
0x2bdf   :  { %6014 = vtanh.f32 %v2859_v4  ;;  %v5008_v33 = vmul.f32 -1.442695, %v2859_v4 }
0x2be0   :  { %6016 = vpow2.f32 %v5007_v42 }
0x2be1   :  { %6018 = vpow2.f32 %v5008_v33 }
0x2be7   :  { %v6013_v0 = vpop.eup %6012 }
0x2be8   :  { %2886 = vrot.lane.b32.xlu0 %v6013_v0, %s6490_s22 }
0x2be9   :  { %v6015_v34 = vpop.eup %6014 }
0x2bea   :  { %2888 = vrot.lane.b32.xlu1 %v6015_v34, %s6490_s22  ;;  %v6017_v18 = vpop.eup %6016 }
0x2beb   :  { %v6019_v29 = vpop.eup %6018  ;;  %v2866_v46 = vadd.f32 1.0, %v6017_v18 }
0x2bec   :  { %2876 = vrot.lane.b32.xlu0 %v7588_v7, %s6500_s5  ;;  %v2867_v22 = vadd.f32 1.0, %v6019_v29 }
0x2bed   :  { %6020 = vrcp.f32 %v2866_v46 }
0x2bee   :  { %2878 = vrot.lane.b32.xlu1 %v7595_v58, %s6500_s5  ;;  %6022 = vrcp.f32 %v2867_v22 }
0x2bf7   :  { %v6021_v1 = vpop.eup %6020 }
0x2bf8   :  { %v6023_v34 = vpop.eup %6022 }
0x2c5a   :  { %v2887_v0 = vpop.permute.xlu0 %2886 }
0x2c5b   :  { %v2892_v53 = vmul.f32 %v6021_v1, %v2887_v0  ;;  %v5551_v0 = vpack.i.bf16 %v7406_v59, %v7411_v60 }
0x2c5c   :  { %v2889_v30 = vpop.permute.xlu1 %2888 }
0x2c5d   :  { %2896 = vrot.lane.b32.xlu0 %v2892_v53, %s6500_s5  ;;  %v2893_v5 = vmul.f32 %v6023_v34, %v2889_v30 }
0x2c5e   :  { %v2877_v2 = vpop.permute.xlu0 %2876 }
0x2c5f   :  { %2898 = vrot.lane.b32.xlu1 %v2893_v5, %s6500_s5  ;;  %v2882_v4 = vmul.f32 %v6021_v1, %v2877_v2 }
0x2c60   :  { %v2879_v42 = vpop.permute.xlu1 %2878 }
0x2c61   :  { %v2883_v12 = vmul.f32 %v6023_v34, %v2879_v42 }
0x2ccf   :  { %v2897_v33 = vpop.permute.xlu0 %2896 }
0x2cd0   :  { %v2902_v26 = vadd.f32 %v2897_v33, %v2882_v4 }
0x2cd1   :  { %v2899_v18 = vpop.permute.xlu1 %2898 }
0x2cd2   :  { %6024 = vtanh.f32 %v2902_v26  ;;  %v2903_v29 = vadd.f32 %v2899_v18, %v2883_v12 }
0x2cd4   :  { %6026 = vtanh.f32 %v2903_v29 }
0x2cdc   :  { %v6025_v46 = vpop.eup %6024 }
0x2cdd   :  { %2908 = vrot.lane.b32.xlu0 %v6025_v46, %s6490_s22 }
0x2cde   :  { %v6027_v22 = vpop.eup %6026 }
0x2cdf   :  { %2910 = vrot.lane.b32.xlu1 %v6027_v22, %s6490_s22 }
0x2ce1   :  { %5552 = vrot.lane.b32.xlu0 %v5551_v0, %s6500_s5 }
0x2ce5   :  { %2928 = vrot.lane.b32.xlu0 %v2902_v26, %s6501_s16 }
0x2d4f   :  { %v2909_v30 = vpop.permute.xlu0 %2908 }
0x2d50   :  { %v2914_v5 = vmul.f32 %v6021_v1, %v2909_v30 }
0x2d51   :  { %v2911_v53 = vpop.permute.xlu1 %2910 }
0x2d52   :  { %v2915_v2 = vmul.f32 %v6023_v34, %v2911_v53 }
0x2d53   :  { %v5553_v4 = vpop.permute.xlu0 %5552 }
0x2d54   :  { %v5555_v12 = vunpack.i.h.bf16 %v5553_v4  ;;  %v5554_v42 = vunpack.i.l.bf16 %v5553_v4  ;;  %v5556_v33 = vpack.i.bf16 %v2915_v2, %v2914_v5 }
0x2d56   :  { %v2469_v18 = vsel %vm283_vm1, %v6935_v63, %v5555_v12  ;;  %v2468_v59 = vsel %vm283_vm1, %v6940_v11, %v5554_v42  ;;  %5557 = vrot.lane.b32.xlu1 %v5556_v33, %s6500_s5 }
0x2d57   :  { %v2482_v60 = vpack.c.bf16 %v2469_v18, %v2468_v59  ;;  %v2929_v18 = vpop.permute.xlu0 %2928 }
0x2d59   :  { %4996 = vmatmul.mubr.msk.bf16.gmra.mrb[60].mxu0 %vm2548_vm2, %v2482_v60  ;;  %v7644_v60 = vsel %vm170_vm5, %v2929_v18, %v7588_v7 }
0x2d5a   :  { %2635 = vmatprep.mubr.bf16.mxu0 %v8491_v56  ;;  %2930 = vrot.lane.b32.xlu1 %v2903_v29, %s6501_s16 }
0x2dc8   :  { %v5558_v26 = vpop.permute.xlu1 %5557 }
0x2dc9   :  { %v5560_v1 = vunpack.i.h.bf16 %v5558_v26  ;;  %v5559_v34 = vunpack.i.l.bf16 %v5558_v26 }
0x2dcb   :  { %v7618_v46 = vsel %vm171_vm4, %v5560_v1, %v7564_v8  ;;  %v7623_v63 = vsel %vm170_vm5, %v5559_v34, %v7568_v61 }
0x2dcc   :  { %v2936_v11 = vpack.c.bf16 %v7618_v46, %v7623_v63  ;;  %v2931_v26 = vpop.permute.xlu1 %2930 }
0x2dcd   :  { %v7652_v1 = vsel %vm171_vm4, %v2931_v26, %v7595_v58 }
0x2dce   :  { %5336 = vmatmul.mubr.msk.bf16.vlgmr.msra.gmra.mrb[52].mxu1 %vm283_vm1, %v2936_v11 }
0x2dcf   :  { %5340 = vmatpush3.bf16.msra.mxu1 %v7490_v38  ;;  %5343 = vmatprep.mubr.msk.bf16.mxu1 %vm6499_vm0, %v8490_v51 }
0x2dd0   :  { %5341 = vmatprep.subr.bf16.mxu1 %v8490_v51 }
0x2dd3   :  { %5342 = vmatpush3.bf16.msra.mxu1 %v7498_v50 }
0x2dd4   :  { %5347 = vmatprep.subr.bf16.mxu1 %v8490_v51 }
0x2e2c   :  { %v2627_v8 = vpop.f32.mrb[60].mxu0 }
0x2e2d   :  { %v7634_v29 = vpop.f32.mrb[61].mxu0  ;;  %v2628_v0 = vadd.f32 %v2627_v8, %v7536_v3 }
0x2e2e   :  { %v2631_v61 = vpop.f32.mrb[62].mxu0 }
0x2e2f   :  { %v7636_v22 = vpop.f32.mrb[63].mxu0  ;;  %v2632_v53 = vadd.f32 %v2631_v61, %v7536_v3 }
0x2ea1   :  { %v2974_v30 = vpop.f32.mrb[52].mxu1 }
0x2ea2   :  { %v2981_v5 = vadd.f32 %v2974_v30, %v2628_v0  ;;  %v5337_v2 = vpop.f32.mrb[53].mxu1 }
0x2ea3   :  { %v2977_v4 = vpop.f32.mrb[54].mxu1 }
0x2ea4   :  { %6028 = vtanh.f32 %v2981_v5  ;;  %v2982_v12 = vadd.f32 %v2977_v4, %v2632_v53  ;;  %v5338_v42 = vpop.f32.mrb[55].mxu1  ;;  %v5010_v34 = vmul.f32 -1.442695, %v2981_v5 }
0x2ea6   :  { %6030 = vtanh.f32 %v2982_v12  ;;  %v5011_v11 = vmul.f32 -1.442695, %v2982_v12 }
0x2ea7   :  { %6032 = vpow2.f32 %v5010_v34 }
0x2ea8   :  { %6034 = vpow2.f32 %v5011_v11 }
0x2eae   :  { %v6029_v33 = vpop.eup %6028 }
0x2eaf   :  { %3009 = vrot.lane.b32.xlu0 %v6029_v33, %s6490_s22 }
0x2eb0   :  { %v6031_v59 = vpop.eup %6030 }
0x2eb1   :  { %3011 = vrot.lane.b32.xlu1 %v6031_v59, %s6490_s22  ;;  %v6033_v7 = vpop.eup %6032 }
0x2eb2   :  { %v6035_v8 = vpop.eup %6034  ;;  %v2989_v61 = vadd.f32 1.0, %v6033_v7 }
0x2eb3   :  { %2999 = vrot.lane.b32.xlu0 %v7644_v60, %s6500_s5  ;;  %v2990_v0 = vadd.f32 1.0, %v6035_v8 }
0x2eb4   :  { %6036 = vrcp.f32 %v2989_v61  ;;  %v5561_v61 = vpack.i.bf16 %v7362_v14, %v7367_v54 }
0x2eb5   :  { %3001 = vrot.lane.b32.xlu1 %v7652_v1, %s6500_s5  ;;  %6038 = vrcp.f32 %v2990_v0 }
0x2ebe   :  { %v6037_v30 = vpop.eup %6036 }
0x2ebf   :  { %v6039_v4 = vpop.eup %6038 }
0x2f21   :  { %v3010_v53 = vpop.permute.xlu0 %3009 }
0x2f22   :  { %v3015_v2 = vmul.f32 %v6037_v30, %v3010_v53 }
0x2f23   :  { %v3012_v42 = vpop.permute.xlu1 %3011 }
0x2f24   :  { %3019 = vrot.lane.b32.xlu0 %v3015_v2, %s6500_s5  ;;  %v3016_v58 = vmul.f32 %v6039_v4, %v3012_v42 }
0x2f25   :  { %v3000_v5 = vpop.permute.xlu0 %2999 }
0x2f26   :  { %3021 = vrot.lane.b32.xlu1 %v3016_v58, %s6500_s5  ;;  %v3005_v12 = vmul.f32 %v6037_v30, %v3000_v5 }
0x2f27   :  { %v3002_v33 = vpop.permute.xlu1 %3001 }
0x2f28   :  { %v3006_v26 = vmul.f32 %v6039_v4, %v3002_v33 }
0x2f96   :  { %v3020_v18 = vpop.permute.xlu0 %3019 }
0x2f97   :  { %v3025_v59 = vadd.f32 %v3020_v18, %v3005_v12 }
0x2f98   :  { %v3022_v34 = vpop.permute.xlu1 %3021 }
0x2f99   :  { %6040 = vtanh.f32 %v3025_v59  ;;  %v3026_v11 = vadd.f32 %v3022_v34, %v3006_v26 }
0x2f9b   :  { %6042 = vtanh.f32 %v3026_v11 }
0x2fa3   :  { %v6041_v7 = vpop.eup %6040 }
0x2fa4   :  { %3031 = vrot.lane.b32.xlu0 %v6041_v7, %s6490_s22 }
0x2fa5   :  { %v6043_v8 = vpop.eup %6042 }
0x2fa6   :  { %3033 = vrot.lane.b32.xlu1 %v6043_v8, %s6490_s22 }
0x2fa8   :  { %5562 = vrot.lane.b32.xlu0 %v5561_v61, %s6500_s5 }
0x2fac   :  { %3051 = vrot.lane.b32.xlu0 %v3025_v59, %s6501_s16 }
0x3016   :  { %v3032_v0 = vpop.permute.xlu0 %3031 }
0x3017   :  { %v3037_v2 = vmul.f32 %v6037_v30, %v3032_v0 }
0x3018   :  { %v3034_v53 = vpop.permute.xlu1 %3033 }
0x3019   :  { %v3038_v42 = vmul.f32 %v6039_v4, %v3034_v53 }
0x301a   :  { %v5563_v58 = vpop.permute.xlu0 %5562 }
0x301b   :  { %v5565_v5 = vunpack.i.h.bf16 %v5563_v58  ;;  %v5564_v12 = vunpack.i.l.bf16 %v5563_v58  ;;  %v5566_v33 = vpack.i.bf16 %v3038_v42, %v3037_v2 }
0x301d   :  { %v2471_v18 = vsel %vm283_vm1, %v6985_v17, %v5565_v5  ;;  %v2470_v14 = vsel %vm283_vm1, %v6990_v35, %v5564_v12  ;;  %5567 = vrot.lane.b32.xlu1 %v5566_v33, %s6500_s5 }
0x301e   :  { %v2483_v54 = vpack.c.bf16 %v2471_v18, %v2470_v14  ;;  %v3052_v12 = vpop.permute.xlu0 %3051 }
0x301f   :  { %v7701_v18 = vsel %vm172_vm7, %v3052_v12, %v7644_v60 }
0x3020   :  { %4997 = vmatmul.mubr.msk.bf16.gmra.mrb[64].mxu0 %vm2548_vm2, %v2483_v54 }
0x3021   :  { %2645 = vmatprep.mubr.bf16.mxu0 %v8491_v56  ;;  %3053 = vrot.lane.b32.xlu1 %v3026_v11, %s6501_s16 }
0x308f   :  { %v5568_v30 = vpop.permute.xlu1 %5567 }
0x3090   :  { %v5570_v4 = vunpack.i.h.bf16 %v5568_v30  ;;  %v5569_v59 = vunpack.i.l.bf16 %v5568_v30 }
0x3092   :  { %v7675_v26 = vsel %vm173_vm6, %v5570_v4, %v7618_v46  ;;  %v7680_v17 = vsel %vm172_vm7, %v5569_v59, %v7623_v63 }
0x3093   :  { %v3059_v35 = vpack.c.bf16 %v7675_v26, %v7680_v17  ;;  %v3054_v14 = vpop.permute.xlu1 %3053 }
0x3094   :  { %v7709_v54 = vsel %vm173_vm6, %v3054_v14, %v7652_v1 }
0x3095   :  { %5344 = vmatmul.mubr.msk.bf16.vlgmr.msra.gmra.mrb[56].mxu1 %vm283_vm1, %v3059_v35 }
0x3096   :  { %5348 = vmatpush3.bf16.msra.mxu1 %v7490_v38  ;;  %5351 = vmatprep.mubr.msk.bf16.mxu1 %vm6499_vm0, %v8490_v51 }
0x3097   :  { %5349 = vmatprep.subr.bf16.mxu1 %v8490_v51 }
0x309a   :  { %5350 = vmatpush3.bf16.msra.mxu1 %v7498_v50 }
0x309b   :  { %5355 = vmatprep.subr.bf16.mxu1 %v8490_v51 }
0x30f3   :  { %v2637_v46 = vpop.f32.mrb[64].mxu0 }
0x30f4   :  { %v7691_v34 = vpop.f32.mrb[65].mxu0  ;;  %v2638_v7 = vadd.f32 %v2637_v46, %v7536_v3 }
0x30f5   :  { %v2641_v63 = vpop.f32.mrb[66].mxu0 }
0x30f6   :  { %v7693_v11 = vpop.f32.mrb[67].mxu0  ;;  %v2642_v61 = vadd.f32 %v2641_v63, %v7536_v3 }
0x3168   :  { %v3097_v8 = vpop.f32.mrb[56].mxu1 }
0x3169   :  { %v3104_v0 = vadd.f32 %v3097_v8, %v2638_v7  ;;  %v5345_v53 = vpop.f32.mrb[57].mxu1 }
0x316a   :  { %v3100_v2 = vpop.f32.mrb[58].mxu1 }
0x316b   :  { %6044 = vtanh.f32 %v3104_v0  ;;  %v3105_v42 = vadd.f32 %v3100_v2, %v2642_v61  ;;  %v5346_v58 = vpop.f32.mrb[59].mxu1  ;;  %v5013_v30 = vmul.f32 -1.442695, %v3104_v0 }
0x316d   :  { %6046 = vtanh.f32 %v3105_v42  ;;  %v5014_v4 = vmul.f32 -1.442695, %v3105_v42 }
0x316e   :  { %6048 = vpow2.f32 %v5013_v30 }
0x316f   :  { %6050 = vpow2.f32 %v5014_v4 }
0x3175   :  { %v6045_v5 = vpop.eup %6044 }
0x3176   :  { %3132 = vrot.lane.b32.xlu0 %v6045_v5, %s6490_s22 }
0x3177   :  { %v6047_v33 = vpop.eup %6046 }
0x3178   :  { %3134 = vrot.lane.b32.xlu1 %v6047_v33, %s6490_s22  ;;  %v6049_v60 = vpop.eup %6048 }
0x3179   :  { %v6051_v59 = vpop.eup %6050  ;;  %v3112_v35 = vadd.f32 1.0, %v6049_v60  ;;  %v5571_v60 = vpack.i.bf16 %v7319_v21, %v7324_v62 }
0x317a   :  { %3122 = vrot.lane.b32.xlu0 %v7701_v18, %s6500_s5  ;;  %v3113_v46 = vadd.f32 1.0, %v6051_v59 }
0x317b   :  { %6052 = vrcp.f32 %v3112_v35 }
0x317c   :  { %3124 = vrot.lane.b32.xlu1 %v7709_v54, %s6500_s5  ;;  %6054 = vrcp.f32 %v3113_v46 }
0x3185   :  { %v6053_v63 = vpop.eup %6052 }
0x3186   :  { %v6055_v61 = vpop.eup %6054 }
0x31e8   :  { %v3133_v7 = vpop.permute.xlu0 %3132 }
0x31e9   :  { %v3138_v8 = vmul.f32 %v6053_v63, %v3133_v7 }
0x31ea   :  { %v3135_v53 = vpop.permute.xlu1 %3134 }
0x31eb   :  { %3142 = vrot.lane.b32.xlu0 %v3138_v8, %s6500_s5  ;;  %v3139_v1 = vmul.f32 %v6055_v61, %v3135_v53 }
0x31ec   :  { %v3123_v0 = vpop.permute.xlu0 %3122 }
0x31ed   :  { %3144 = vrot.lane.b32.xlu1 %v3139_v1, %s6500_s5  ;;  %v3128_v2 = vmul.f32 %v6053_v63, %v3123_v0 }
0x31ee   :  { %v3125_v42 = vpop.permute.xlu1 %3124 }
0x31ef   :  { %v3129_v12 = vmul.f32 %v6055_v61, %v3125_v42 }
0x325d   :  { %v3143_v58 = vpop.permute.xlu0 %3142 }
0x325e   :  { %v3148_v5 = vadd.f32 %v3143_v58, %v3128_v2 }
0x325f   :  { %v3145_v33 = vpop.permute.xlu1 %3144 }
0x3260   :  { %6056 = vtanh.f32 %v3148_v5  ;;  %v3149_v14 = vadd.f32 %v3145_v33, %v3129_v12 }
0x3262   :  { %6058 = vtanh.f32 %v3149_v14 }
0x326a   :  { %v6057_v30 = vpop.eup %6056 }
0x326b   :  { %3154 = vrot.lane.b32.xlu0 %v6057_v30, %s6490_s22 }
0x326c   :  { %v6059_v4 = vpop.eup %6058 }
0x326d   :  { %3156 = vrot.lane.b32.xlu1 %v6059_v4, %s6490_s22 }
0x326f   :  { %5572 = vrot.lane.b32.xlu0 %v5571_v60, %s6500_s5 }
0x3273   :  { %3174 = vrot.lane.b32.xlu0 %v3148_v5, %s6501_s16 }
0x32dd   :  { %v3155_v59 = vpop.permute.xlu0 %3154 }
0x32de   :  { %v3160_v46 = vmul.f32 %v6053_v63, %v3155_v59 }
0x32df   :  { %v3157_v35 = vpop.permute.xlu1 %3156 }
0x32e0   :  { %v3161_v7 = vmul.f32 %v6055_v61, %v3157_v35 }
0x32e1   :  { %v5573_v8 = vpop.permute.xlu0 %5572 }
0x32e2   :  { %v5575_v53 = vunpack.i.h.bf16 %v5573_v8  ;;  %v5574_v1 = vunpack.i.l.bf16 %v5573_v8  ;;  %v5576_v0 = vpack.i.bf16 %v3161_v7, %v3160_v46 }
0x32e4   :  { %v2473_v2 = vsel %vm283_vm1, %v7035_v41, %v5575_v53  ;;  %v2472_v21 = vsel %vm283_vm1, %v7040_v49, %v5574_v1  ;;  %5577 = vrot.lane.b32.xlu1 %v5576_v0, %s6500_s5 }
0x32e5   :  { %v2484_v62 = vpack.c.bf16 %v2473_v2, %v2472_v21  ;;  %v3175_v8 = vpop.permute.xlu0 %3174 }
0x32e6   :  { %v7758_v1 = vsel %vm174_vm9, %v3175_v8, %v7701_v18 }
0x32e7   :  { %4998 = vmatmul.mubr.msk.bf16.gmra.mrb[68].mxu0 %vm2548_vm2, %v2484_v62 }
0x32e8   :  { %2655 = vmatprep.mubr.bf16.mxu0 %v8491_v56  ;;  %3176 = vrot.lane.b32.xlu1 %v3149_v14, %s6501_s16 }
0x3356   :  { %v5578_v63 = vpop.permute.xlu1 %5577 }
0x3357   :  { %v5580_v61 = vunpack.i.h.bf16 %v5578_v63  ;;  %v5579_v42 = vunpack.i.l.bf16 %v5578_v63 }
0x3359   :  { %v7732_v58 = vsel %vm175_vm8, %v5580_v61, %v7675_v26  ;;  %v7737_v41 = vsel %vm174_vm9, %v5579_v42, %v7680_v17 }
0x335a   :  { %v3182_v49 = vpack.c.bf16 %v7732_v58, %v7737_v41  ;;  %v3177_v0 = vpop.permute.xlu1 %3176 }
0x335b   :  { %v7766_v2 = vsel %vm175_vm8, %v3177_v0, %v7709_v54 }
0x335c   :  { %5352 = vmatmul.mubr.msk.bf16.vlgmr.msra.gmra.mrb[60].mxu1 %vm283_vm1, %v3182_v49 }
0x335d   :  { %5356 = vmatpush3.bf16.msra.mxu1 %v7490_v38  ;;  %5359 = vmatprep.mubr.msk.bf16.mxu1 %vm6499_vm0, %v8490_v51 }
0x335e   :  { %5357 = vmatprep.subr.bf16.mxu1 %v8490_v51 }
0x3361   :  { %5358 = vmatpush3.bf16.msra.mxu1 %v7498_v50 }
0x3362   :  { %5363 = vmatprep.subr.bf16.mxu1 %v8490_v51 }
0x33ba   :  { %v2647_v26 = vpop.f32.mrb[68].mxu0 }
0x33bb   :  { %v7748_v5 = vpop.f32.mrb[69].mxu0  ;;  %v2648_v33 = vadd.f32 %v2647_v26, %v7536_v3 }
0x33bc   :  { %v2651_v17 = vpop.f32.mrb[70].mxu0 }
0x33bd   :  { %v7750_v12 = vpop.f32.mrb[71].mxu0  ;;  %v2652_v30 = vadd.f32 %v2651_v17, %v7536_v3 }
0x342f   :  { %v3220_v14 = vpop.f32.mrb[60].mxu1 }
0x3430   :  { %v3227_v4 = vadd.f32 %v3220_v14, %v2648_v33  ;;  %v5353_v60 = vpop.f32.mrb[61].mxu1 }
0x3431   :  { %v3223_v59 = vpop.f32.mrb[62].mxu1 }
0x3432   :  { %6060 = vtanh.f32 %v3227_v4  ;;  %v3228_v35 = vadd.f32 %v3223_v59, %v2652_v30  ;;  %v5354_v46 = vpop.f32.mrb[63].mxu1  ;;  %v5016_v21 = vmul.f32 -1.442695, %v3227_v4 }
0x3434   :  { %6062 = vtanh.f32 %v3228_v35  ;;  %v5017_v62 = vmul.f32 -1.442695, %v3228_v35 }
0x3435   :  { %6064 = vpow2.f32 %v5016_v21  ;;  %v5581_v21 = vpack.i.bf16 %v7275_v36, %v7280_v10 }
0x3436   :  { %6066 = vpow2.f32 %v5017_v62 }
0x343c   :  { %v6061_v7 = vpop.eup %6060 }
0x343d   :  { %3255 = vrot.lane.b32.xlu0 %v6061_v7, %s6490_s22 }
0x343e   :  { %v6063_v53 = vpop.eup %6062 }
0x343f   :  { %3257 = vrot.lane.b32.xlu1 %v6063_v53, %s6490_s22  ;;  %v6065_v18 = vpop.eup %6064 }
0x3440   :  { %v6067_v63 = vpop.eup %6066  ;;  %v3235_v61 = vadd.f32 1.0, %v6065_v18 }
0x3441   :  { %3245 = vrot.lane.b32.xlu0 %v7758_v1, %s6500_s5  ;;  %v3236_v42 = vadd.f32 1.0, %v6067_v63 }
0x3442   :  { %6068 = vrcp.f32 %v3235_v61 }
0x3443   :  { %3247 = vrot.lane.b32.xlu1 %v7766_v2, %s6500_s5  ;;  %6070 = vrcp.f32 %v3236_v42 }
0x344c   :  { %v6069_v49 = vpop.eup %6068 }
0x344d   :  { %v6071_v33 = vpop.eup %6070 }
0x34af   :  { %v3256_v26 = vpop.permute.xlu0 %3255 }
0x34b0   :  { %v3261_v17 = vmul.f32 %v6069_v49, %v3256_v26 }
0x34b1   :  { %v3258_v14 = vpop.permute.xlu1 %3257 }
0x34b2   :  { %3265 = vrot.lane.b32.xlu0 %v3261_v17, %s6500_s5  ;;  %v3262_v54 = vmul.f32 %v6071_v33, %v3258_v14 }
0x34b3   :  { %v3246_v30 = vpop.permute.xlu0 %3245 }
0x34b4   :  { %3267 = vrot.lane.b32.xlu1 %v3262_v54, %s6500_s5  ;;  %v3251_v4 = vmul.f32 %v6069_v49, %v3246_v30 }
0x34b5   :  { %v3248_v60 = vpop.permute.xlu1 %3247 }
0x34b6   :  { %v3252_v46 = vmul.f32 %v6071_v33, %v3248_v60 }
0x3524   :  { %v3266_v59 = vpop.permute.xlu0 %3265 }
0x3525   :  { %v3271_v35 = vadd.f32 %v3266_v59, %v3251_v4 }
0x3526   :  { %v3268_v7 = vpop.permute.xlu1 %3267 }
0x3527   :  { %6072 = vtanh.f32 %v3271_v35  ;;  %v3272_v8 = vadd.f32 %v3268_v7, %v3252_v46 }
0x3529   :  { %6074 = vtanh.f32 %v3272_v8 }
0x3531   :  { %v6073_v53 = vpop.eup %6072 }
0x3532   :  { %3277 = vrot.lane.b32.xlu0 %v6073_v53, %s6490_s22 }
0x3533   :  { %v6075_v0 = vpop.eup %6074 }
0x3534   :  { %3279 = vrot.lane.b32.xlu1 %v6075_v0, %s6490_s22 }
0x3536   :  { %5582 = vrot.lane.b32.xlu0 %v5581_v21, %s6500_s5 }
0x353a   :  { %3297 = vrot.lane.b32.xlu0 %v3271_v35, %s6501_s16 }
0x35a4   :  { %v3278_v62 = vpop.permute.xlu0 %3277 }
0x35a5   :  { %v3283_v63 = vmul.f32 %v6069_v49, %v3278_v62 }
0x35a6   :  { %v3280_v18 = vpop.permute.xlu1 %3279 }
0x35a7   :  { %v3284_v61 = vmul.f32 %v6071_v33, %v3280_v18 }
0x35a8   :  { %v5583_v42 = vpop.permute.xlu0 %5582 }
0x35a9   :  { %v5585_v26 = vunpack.i.h.bf16 %v5583_v42  ;;  %v5584_v17 = vunpack.i.l.bf16 %v5583_v42  ;;  %v5586_v14 = vpack.i.bf16 %v3284_v61, %v3283_v63 }
0x35ab   :  { %v2475_v54 = vsel %vm283_vm1, %v7089_v28, %v5585_v26  ;;  %v2474_v36 = vsel %vm283_vm1, %v7094_v43, %v5584_v17  ;;  %5587 = vrot.lane.b32.xlu1 %v5586_v14, %s6500_s5 }
0x35ac   :  { %v2485_v10 = vpack.c.bf16 %v2475_v54, %v2474_v36  ;;  %v3298_v62 = vpop.permute.xlu0 %3297 }
0x35ad   :  { %v7815_v63 = vsel %vm176_vm11, %v3298_v62, %v7758_v1  ;;  %v8502_v62 = vld [vmem:[#allocation27_spill] sm:$0xff] }
0x35ae   :  { %4999 = vmatmul.mubr.msk.bf16.gmra.mrb[72].mxu0 %vm2548_vm2, %v2485_v10 }
0x35af   :  { %2665 = vmatprep.mubr.bf16.mxu0 %v8491_v56  ;;  %3299 = vrot.lane.b32.xlu1 %v3272_v8, %s6501_s16 }
0x361d   :  { %v5588_v49 = vpop.permute.xlu1 %5587 }
0x361e   :  { %v5590_v33 = vunpack.i.h.bf16 %v5588_v49  ;;  %v5589_v30 = vunpack.i.l.bf16 %v5588_v49 }
0x3620   :  { %v7789_v4 = vsel %vm177_vm10, %v5590_v33, %v7732_v58  ;;  %v7794_v28 = vsel %vm176_vm11, %v5589_v30, %v7737_v41 }
0x3621   :  { %v3305_v43 = vpack.c.bf16 %v7789_v4, %v7794_v28  ;;  %v3300_v61 = vpop.permute.xlu1 %3299 }
0x3622   :  { %v7823_v42 = vsel %vm177_vm10, %v3300_v61, %v7766_v2 }
0x3623   :  { %5360 = vmatmul.mubr.msk.bf16.vlgmr.msra.gmra.mrb[64].mxu1 %vm283_vm1, %v3305_v43 }
0x3624   :  { %5364 = vmatpush3.bf16.msra.mxu1 %v7490_v38  ;;  %5367 = vmatprep.mubr.msk.bf16.mxu1 %vm6499_vm0, %v8490_v51 }
0x3625   :  { %5365 = vmatprep.subr.bf16.mxu1 %v8490_v51 }
0x3628   :  { %5366 = vmatpush3.bf16.msra.mxu1 %v7498_v50 }
0x3629   :  { %5371 = vmatprep.subr.bf16.mxu1 %v8490_v51 }
0x3681   :  { %v2657_v58 = vpop.f32.mrb[72].mxu0 }
0x3682   :  { %v7805_v60 = vpop.f32.mrb[73].mxu0  ;;  %v2658_v35 = vadd.f32 %v2657_v58, %v7536_v3 }
0x3683   :  { %v2661_v41 = vpop.f32.mrb[74].mxu0 }
0x3684   :  { %v7807_v59 = vpop.f32.mrb[75].mxu0  ;;  %v2662_v38 = vadd.f32 %v2661_v41, %v7536_v3 }
0x36f6   :  { %v3343_v46 = vpop.f32.mrb[64].mxu1 }
0x36f7   :  { %v3350_v7 = vadd.f32 %v3343_v46, %v2658_v35  ;;  %v5361_v8 = vpop.f32.mrb[65].mxu1 }
0x36f8   :  { %v3346_v53 = vpop.f32.mrb[66].mxu1 }
0x36f9   :  { %6076 = vtanh.f32 %v3350_v7  ;;  %v3351_v0 = vadd.f32 %v3346_v53, %v2662_v38  ;;  %v5362_v21 = vpop.f32.mrb[67].mxu1  ;;  %v5019_v26 = vmul.f32 -1.442695, %v3350_v7 }
0x36fb   :  { %6078 = vtanh.f32 %v3351_v0  ;;  %v5020_v17 = vmul.f32 -1.442695, %v3351_v0 }
0x36fc   :  { %6080 = vpow2.f32 %v5019_v26 }
0x36fd   :  { %6082 = vpow2.f32 %v5020_v17 }
0x3703   :  { %v6077_v50 = vpop.eup %6076 }
0x3704   :  { %3378 = vrot.lane.b32.xlu0 %v6077_v50, %s6490_s22  ;;  %v5591_v50 = vpack.i.bf16 %v7231_v16, %v7236_v39  ;;  %v8504_v39 = vld [vmem:[#allocation30_spill] sm:$0xff] }
0x3705   :  { %v6079_v18 = vpop.eup %6078 }
0x3706   :  { %3380 = vrot.lane.b32.xlu1 %v6079_v18, %s6490_s22  ;;  %v6081_v1 = vpop.eup %6080 }
0x3707   :  { %v6083_v14 = vpop.eup %6082  ;;  %v3358_v54 = vadd.f32 1.0, %v6081_v1 }
0x3708   :  { %3368 = vrot.lane.b32.xlu0 %v7815_v63, %s6500_s5  ;;  %v3359_v36 = vadd.f32 1.0, %v6083_v14 }
0x3709   :  { %6084 = vrcp.f32 %v3358_v54 }
0x370a   :  { %3370 = vrot.lane.b32.xlu1 %v7823_v42, %s6500_s5  ;;  %6086 = vrcp.f32 %v3359_v36 }
0x3713   :  { %v6085_v10 = vpop.eup %6084 }
0x3714   :  { %v6087_v30 = vpop.eup %6086 }
0x3776   :  { %v3379_v49 = vpop.permute.xlu0 %3378 }
0x3777   :  { %v3384_v33 = vmul.f32 %v6085_v10, %v3379_v49  ;;  %v8503_v49 = vld [vmem:[#allocation29_spill] sm:$0xff] }
0x3778   :  { %v3381_v43 = vpop.permute.xlu1 %3380 }
0x3779   :  { %3388 = vrot.lane.b32.xlu0 %v3384_v33, %s6500_s5  ;;  %v3385_v2 = vmul.f32 %v6087_v30, %v3381_v43 }
0x377a   :  { %v3369_v58 = vpop.permute.xlu0 %3368 }
0x377b   :  { %3390 = vrot.lane.b32.xlu1 %v3385_v2, %s6500_s5  ;;  %v3374_v41 = vmul.f32 %v6085_v10, %v3369_v58 }
0x377c   :  { %v3371_v35 = vpop.permute.xlu1 %3370 }
0x377d   :  { %v3375_v7 = vmul.f32 %v6087_v30, %v3371_v35 }
0x37eb   :  { %v3389_v46 = vpop.permute.xlu0 %3388 }
0x37ec   :  { %v3394_v38 = vadd.f32 %v3389_v46, %v3374_v41 }
0x37ed   :  { %v3391_v8 = vpop.permute.xlu1 %3390 }
0x37ee   :  { %6088 = vtanh.f32 %v3394_v38  ;;  %v3395_v53 = vadd.f32 %v3391_v8, %v3375_v7 }
0x37f0   :  { %6090 = vtanh.f32 %v3395_v53 }
0x37f8   :  { %v6089_v0 = vpop.eup %6088 }
0x37f9   :  { %3400 = vrot.lane.b32.xlu0 %v6089_v0, %s6490_s22 }
0x37fa   :  { %v6091_v21 = vpop.eup %6090 }
0x37fb   :  { %3402 = vrot.lane.b32.xlu1 %v6091_v21, %s6490_s22 }
0x37fd   :  { %5592 = vrot.lane.b32.xlu0 %v5591_v50, %s6500_s5 }
0x3801   :  { %3420 = vrot.lane.b32.xlu0 %v3394_v38, %s6501_s16  ;;  %v6272_v38 = vld [vmem:[%s8439_s7] sm:$0xff]  }
0x3805   :  { %1281 = vrot.lane.b32.xlu0 %v8502_v62, %s6501_s16 }
0x386b   :  { %v3401_v18 = vpop.permute.xlu0 %3400 }
0x386c   :  { %v3406_v26 = vmul.f32 %v6085_v10, %v3401_v18  ;;  %v8505_v10 = vld [vmem:[#allocation28_spill] sm:$0xff] }
0x386d   :  { %v3403_v61 = vpop.permute.xlu1 %3402 }
0x386e   :  { %v3407_v17 = vmul.f32 %v6087_v30, %v3403_v61 }
0x386f   :  { %v5593_v1 = vpop.permute.xlu0 %5592 }
0x3870   :  { %v5595_v14 = vunpack.i.h.bf16 %v5593_v1  ;;  %v5594_v54 = vunpack.i.l.bf16 %v5593_v1  ;;  %v5596_v36 = vpack.i.bf16 %v3407_v17, %v3406_v26 }
0x3872   :  { %v2477_v16 = vsel %vm283_vm1, %v8503_v49, %v5595_v14  ;;  %v2476_v33 = vsel %vm283_vm1, %v8504_v39, %v5594_v54  ;;  %5597 = vrot.lane.b32.xlu1 %v5596_v36, %s6500_s5 }
0x3873   :  { %v2486_v43 = vpack.c.bf16 %v2477_v16, %v2476_v33  ;;  %v3421_v54 = vpop.permute.xlu0 %3420 }
0x3875   :  { %5000 = vmatmul.mubr.msk.bf16.gmra.mrb[76].mxu0 %vm2548_vm2, %v2486_v43  ;;  %v7884_v43 = vsel %vm178_vm13, %v3421_v54, %v7815_v63  ;;  %v8507_v63 = vld [vmem:[#allocation26_spill] sm:$0xff] }
0x3876   :  { %2675 = vmatprep.mubr.bf16.mxu0 %v8491_v56  ;;  %3422 = vrot.lane.b32.xlu1 %v3395_v53, %s6501_s16 }
0x387a   :  { %1283 = vrot.lane.b32.xlu1 %v8505_v10, %s6501_s16  ;;  %v1282_v10 = vpop.permute.xlu0 %1281 }
0x38e4   :  { %v5598_v30 = vpop.permute.xlu1 %5597 }
0x38e5   :  { %v5600_v2 = vunpack.i.h.bf16 %v5598_v30  ;;  %v5599_v58 = vunpack.i.l.bf16 %v5598_v30 }
0x38e7   :  { %v7850_v41 = vsel %vm179_vm12, %v5600_v2, %v7789_v4  ;;  %v7855_v35 = vsel %vm178_vm13, %v5599_v58, %v7794_v28  ;;  %v6273_v4 = vld [vmem:[%s8439_s7 + $0x8] sm:$0xff]   ;;  %v8506_v2 = vld [vmem:[#allocation25_spill] sm:$0xff] }
0x38e8   :  { %v3428_v46 = vpack.c.bf16 %v7850_v41, %v7855_v35  ;;  %v3423_v16 = vpop.permute.xlu1 %3422  ;;  %v7897_v58 = vsel %vm180_vm14, %v1282_v10, %v8506_v2 }
0x38e9   :  { %v7892_v30 = vsel %vm179_vm12, %v3423_v16, %v7823_v42 }
0x38ea   :  { %5368 = vmatmul.mubr.msk.bf16.vlgmr.msra.gmra.mrb[68].mxu1 %vm283_vm1, %v3428_v46 }
0x38eb   :  { %5372 = vmatpush3.bf16.msra.mxu1 %v6272_v38  ;;  %5375 = vmatprep.mubr.msk.bf16.mxu1 %vm6499_vm0, %v8490_v51 }
0x38ec   :  { %5373 = vmatprep.subr.bf16.mxu1 %v8490_v51  ;;  %v1284_v46 = vpop.permute.xlu1 %1283 }
0x38ed   :  { %v7906_v38 = vsel %vm8508_vm15, %v1284_v46, %v8507_v63 }
0x38ef   :  { %5374 = vmatpush3.bf16.msra.mxu1 %v6273_v4 }
0x38f0   :  { %5379 = vmatprep.subr.bf16.mxu1 %v8490_v51 }
0x3948   :  { %v2667_v28 = vpop.f32.mrb[76].mxu0 }
0x3949   :  { %v7870_v7 = vpop.f32.mrb[77].mxu0  ;;  %v2668_v0 = vadd.f32 %v2667_v28, %v7536_v3  ;;  %v4959_v28 = vmul.f32 -1.442695, %v7200_v27 }
0x394a   :  { %v2671_v8 = vpop.f32.mrb[78].mxu0 }
0x394b   :  { %v7872_v53 = vpop.f32.mrb[79].mxu0  ;;  %v2672_v50 = vadd.f32 %v2671_v8, %v7536_v3  ;;  %v4960_v8 = vmul.f32 -1.442695, %v7203_v47 }
0x39bd   :  { %v3466_v21 = vpop.f32.mrb[68].mxu1 }
0x39be   :  { %v3473_v62 = vadd.f32 %v3466_v21, %v2668_v0  ;;  %v5369_v18 = vpop.f32.mrb[69].mxu1 }
0x39bf   :  { %v3469_v61 = vpop.f32.mrb[70].mxu1 }
0x39c0   :  { %6092 = vtanh.f32 %v3473_v62  ;;  %v3474_v26 = vadd.f32 %v3469_v61, %v2672_v50  ;;  %v5370_v17 = vpop.f32.mrb[71].mxu1  ;;  %v5022_v42 = vmul.f32 -1.442695, %v3473_v62 }
0x39c2   :  { %6094 = vtanh.f32 %v3474_v26  ;;  %v5023_v4 = vmul.f32 -1.442695, %v3474_v26 }
0x39c3   :  { %6096 = vtanh.f32 %v7200_v27 }
0x39c4   :  { %6098 = vtanh.f32 %v7203_v47 }
0x39c5   :  { %6100 = vpow2.f32 %v5022_v42 }
0x39c6   :  { %6102 = vpow2.f32 %v5023_v4 }
0x39c7   :  { %6104 = vpow2.f32 %v4959_v28 }
0x39c8   :  { %6106 = vpow2.f32 %v4960_v8 }
0x39ca   :  { %v6093_v1 = vpop.eup %6092 }
0x39cb   :  { %3501 = vrot.lane.b32.xlu0 %v6093_v1, %s6490_s22 }
0x39cc   :  { %v6095_v14 = vpop.eup %6094 }
0x39cd   :  { %v6097_v36 = vpop.eup %6096  ;;  %3503 = vrot.lane.b32.xlu1 %v6095_v14, %s6490_s22 }
0x39ce   :  { %v6099_v33 = vpop.eup %6098 }
0x39cf   :  { %1362 = vrot.lane.b32.xlu0 %v6097_v36, %s6490_s22  ;;  %v6101_v0 = vpop.eup %6100 }
0x39d0   :  { %v6103_v21 = vpop.eup %6102  ;;  %v3481_v50 = vadd.f32 1.0, %v6101_v0 }
0x39d1   :  { %1364 = vrot.lane.b32.xlu1 %v6099_v33, %s6490_s22  ;;  %v6105_v18 = vpop.eup %6104  ;;  %v3482_v61 = vadd.f32 1.0, %v6103_v21 }
0x39d2   :  { %v6107_v17 = vpop.eup %6106  ;;  %v1342_v1 = vadd.f32 1.0, %v6105_v18  ;;  %6108 = vrcp.f32 %v3481_v50 }
0x39d3   :  { %3491 = vrot.lane.b32.xlu0 %v7884_v43, %s6500_s5  ;;  %v1343_v14 = vadd.f32 1.0, %v6107_v17  ;;  %6110 = vrcp.f32 %v3482_v61 }
0x39d4   :  { %6112 = vrcp.f32 %v1342_v1 }
0x39d5   :  { %3493 = vrot.lane.b32.xlu1 %v7892_v30, %s6500_s5  ;;  %6114 = vrcp.f32 %v1343_v14 }
0x39d7   :  { %1352 = vrot.lane.b32.xlu0 %v7897_v58, %s6500_s5 }
0x39d9   :  { %1354 = vrot.lane.b32.xlu1 %v7906_v38, %s6500_s5 }
0x39dc   :  { %v6109_v62 = vpop.eup %6108 }
0x39dd   :  { %v6111_v54 = vpop.eup %6110 }
0x39de   :  { %v6113_v36 = vpop.eup %6112 }
0x39df   :  { %v6115_v2 = vpop.eup %6114 }
0x3a3d   :  { %v3502_v27 = vpop.permute.xlu0 %3501 }
0x3a3e   :  { %v3507_v26 = vmul.f32 %v6109_v62, %v3502_v27 }
0x3a3f   :  { %v3504_v47 = vpop.permute.xlu1 %3503 }
0x3a40   :  { %3511 = vrot.lane.b32.xlu0 %v3507_v26, %s6500_s5  ;;  %v3508_v16 = vmul.f32 %v6111_v54, %v3504_v47 }
0x3a41   :  { %v1363_v33 = vpop.permute.xlu0 %1362 }
0x3a42   :  { %v1368_v10 = vmul.f32 %v6113_v36, %v1363_v33  ;;  %3513 = vrot.lane.b32.xlu1 %v3508_v16, %s6500_s5 }
0x3a43   :  { %v1365_v46 = vpop.permute.xlu1 %1364 }
0x3a44   :  { %1372 = vrot.lane.b32.xlu0 %v1368_v10, %s6500_s5  ;;  %v1369_v63 = vmul.f32 %v6115_v2, %v1365_v46 }
0x3a45   :  { %v3492_v42 = vpop.permute.xlu0 %3491 }
0x3a46   :  { %1374 = vrot.lane.b32.xlu1 %v1369_v63, %s6500_s5  ;;  %v3497_v8 = vmul.f32 %v6109_v62, %v3492_v42 }
0x3a47   :  { %v3494_v4 = vpop.permute.xlu1 %3493 }
0x3a48   :  { %v3498_v18 = vmul.f32 %v6111_v54, %v3494_v4  ;;  %v7934_v4 = vld [vmem:[#allocation13] sm:$0xff]  }
0x3a49   :  { %v1353_v28 = vpop.permute.xlu0 %1352  ;;  %5388 = vmatpush3.bf16.msra.mxu0 %v7934_v4 }
0x3a4a   :  { %v1358_v61 = vmul.f32 %v6113_v36, %v1353_v28  ;;  %5389 = vmatprep.subr.bf16.mxu0 %v8490_v51 }
0x3a4b   :  { %v1355_v0 = vpop.permute.xlu1 %1354 }
0x3a4c   :  { %v1359_v26 = vmul.f32 %v6115_v2, %v1355_v0  ;;  %v7938_v0 = vld [vmem:[#allocation13 + $0x8] sm:$0xff]  }
0x3a4d   :  { %5390 = vmatpush3.bf16.msra.mxu0 %v7938_v0 }
0x3a4e   :  { %5403 = vmatprep.subr.bf16.mxu0 %v8490_v51 }
0x3ab2   :  { %v3512_v21 = vpop.permute.xlu0 %3511 }
0x3ab3   :  { %v7916_v50 = vadd.f32 %v3512_v21, %v3497_v8 }
0x3ab4   :  { %v3514_v17 = vpop.permute.xlu1 %3513 }
0x3ab5   :  { %6116 = vtanh.f32 %v7916_v50  ;;  %v7919_v1 = vadd.f32 %v3514_v17, %v3498_v18 }
0x3ab6   :  { %v1373_v14 = vpop.permute.xlu0 %1372 }
0x3ab7   :  { %v7921_v27 = vadd.f32 %v1373_v14, %v1358_v61  ;;  %6118 = vtanh.f32 %v7919_v1 }
0x3ab8   :  { %v1375_v47 = vpop.permute.xlu1 %1374 }
0x3ab9   :  { %6120 = vtanh.f32 %v7921_v27  ;;  %v7925_v16 = vadd.f32 %v1375_v47, %v1359_v26 }
0x3abb   :  { %6122 = vtanh.f32 %v7925_v16 }
0x3abf   :  { %v6117_v10 = vpop.eup %6116 }
0x3ac0   :  { %3523 = vrot.lane.b32.xlu0 %v6117_v10, %s6490_s22 }
0x3ac1   :  { %v6119_v46 = vpop.eup %6118 }
0x3ac2   :  { %3525 = vrot.lane.b32.xlu1 %v6119_v46, %s6490_s22  ;;  %v5611_v46 = vpack.i.bf16 %v7180_v6, %v7184_v45 }
0x3ac3   :  { %v6121_v63 = vpop.eup %6120 }
0x3ac4   :  { %1384 = vrot.lane.b32.xlu0 %v6121_v63, %s6490_s22 }
0x3ac5   :  { %v6123_v42 = vpop.eup %6122 }
0x3ac6   :  { %1386 = vrot.lane.b32.xlu1 %v6123_v42, %s6490_s22 }
0x3b32   :  { %v3524_v28 = vpop.permute.xlu0 %3523 }
0x3b33   :  { %v3529_v21 = vmul.f32 %v6109_v62, %v3524_v28 }
0x3b34   :  { %v3526_v8 = vpop.permute.xlu1 %3525 }
0x3b35   :  { %v3530_v18 = vmul.f32 %v6111_v54, %v3526_v8 }
0x3b36   :  { %v1385_v61 = vpop.permute.xlu0 %1384 }
0x3b37   :  { %v5601_v17 = vpack.i.bf16 %v3530_v18, %v3529_v21  ;;  %v1390_v26 = vmul.f32 %v6113_v36, %v1385_v61  ;;  %v8510_v61 = vld [vmem:[#allocation31_spill] sm:$0xff] }
0x3b38   :  { %v1387_v14 = vpop.permute.xlu1 %1386  ;;  %vm8511_vm15 = vcmp.gt.f32.partialorder %v8510_v61, 0.5 }
0x3b39   :  { %v1391_v47 = vmul.f32 %v6115_v2, %v1387_v14  ;;  %5602 = vrot.lane.b32.xlu0 %v5601_v17, %s6500_s5  ;;  %v8512_v17 = vld [vmem:[#allocation32_spill] sm:$0xff] }
0x3b3b   :  { %v5606_v10 = vpack.i.bf16 %v1391_v47, %v1390_v26 }
0x3b3d   :  { %5612 = vrot.lane.b32.xlu0 %v5611_v46, %s6500_s5  ;;  %5607 = vrot.lane.b32.xlu1 %v5606_v10, %s6500_s5 }
0x3bab   :  { %v5603_v62 = vpop.permute.xlu0 %5602 }
0x3bac   :  { %v5605_v54 = vunpack.i.h.bf16 %v5603_v62  ;;  %v5604_v63 = vunpack.i.l.bf16 %v5603_v62  ;;  %v6274_v62 = vld [vmem:[%s8441_s9] sm:$0x3] }
0x3bae   :  { %v7950_v42 = vsel %vm8509_vm3, %v5605_v54, %v7850_v41  ;;  %v7955_v36 = vsel %vm180_vm14, %v5604_v63, %v7855_v35  ;;  %vm8513_vm3 = vcmp.gt.f32.partialorder %v8512_v17, 0.5 }
0x3baf   :  { %v3551_v6 = vpack.c.bf16 %v7950_v42, %v7955_v36  ;;  %v5613_v45 = vpop.permute.xlu0 %5612  ;;  %v5608_v2 = vpop.permute.xlu1 %5607 }
0x3bb0   :  { %v5615_v28 = vunpack.i.h.bf16 %v5613_v45  ;;  %v5614_v8 = vunpack.i.l.bf16 %v5613_v45  ;;  %v5610_v21 = vunpack.i.h.bf16 %v5608_v2  ;;  %v5609_v18 = vunpack.i.l.bf16 %v5608_v2 }
0x3bb1   :  { %5376 = vmatmul.mubr.msk.bf16.vlgmr.msra.gmra.mrb[72].mxu1 %vm283_vm1, %v3551_v6 }
0x3bb2   :  { %v7963_v41 = vsel %vm8511_vm15, %v5610_v21, %v8503_v49  ;;  %v7968_v35 = vsel %vm8513_vm3, %v5609_v18, %v8504_v39  ;;  %5380 = vmatpush3.bf16.msra.mxu1 %v7934_v4  ;;  %5383 = vmatprep.mubr.msk.bf16.mxu1 %vm6499_vm0, %v8490_v51 }
0x3bb3   :  { %5381 = vmatprep.subr.bf16.mxu1 %v8490_v51  ;;  %v2478_v14 = vsel %vm283_vm1, %v7968_v35, %v5614_v8  ;;  %v2479_v26 = vsel %vm283_vm1, %v7963_v41, %v5615_v28 }
0x3bb4   :  { %v2487_v49 = vpack.c.bf16 %v2479_v26, %v2478_v14 }
0x3bb6   :  { %5001 = vmatmul.mubr.msk.bf16.gmra.mrb[80].mxu0 %vm2548_vm2, %v2487_v49  ;;  %5382 = vmatpush3.bf16.msra.mxu1 %v7938_v0 }
0x3bb7   :  { %5391 = vmatprep.mubr.msk.bf16.mxu0 %vm6499_vm0, %v8490_v51  ;;  %5395 = vmatprep.subr.bf16.mxu1 %v8490_v51 }
0x3bb9   :  { %5384 = vmatmul.mubr.bf16.vlgmr.msra.gmra.mrb[76].mxu1 %v8491_v56  ;;  %v8514_v56 = vsub.s32 1, %v6732_v19 }
0x3bba   :  { %5396 = vmatpush3.bf16.msra.mxu1 %v7934_v4  ;;  %5399 = vmatprep.mubr.msk.bf16.mxu1 %vm6499_vm0, %v8490_v51 }
0x3bbb   :  { %5397 = vmatprep.subr.bf16.mxu1 %v8490_v51  ;;  %v7995_v54 = vrot.slane %v6274_v62, %v8514_v56 }
0x3bbe   :  { %5398 = vmatpush3.bf16.msra.mxu1 %v7938_v0 }
0x3bbf   :  { %5411 = vmatprep.subr.bf16.mxu1 %v8490_v51 }
0x3c84   :  { %v3589_v39 = vpop.f32.mrb[72].mxu1 }
0x3c85   :  { %v5377_v47 = vpop.f32.mrb[73].mxu1 }
0x3c86   :  { %v3592_v10 = vpop.f32.mrb[74].mxu1 }
0x3c87   :  { %v5378_v46 = vpop.f32.mrb[75].mxu1 }
0x3c89   :  { %v2677_v63 = vpop.f32.mrb[80].mxu0 }
0x3c8a   :  { %v2678_v6 = vadd.f32 %v2677_v63, %v7536_v3  ;;  %v2679_v45 = vpop.f32.mrb[81].mxu0 }
0x3c8b   :  { %v2680_v2 = vadd.f32 %v2679_v45, %v7995_v54  ;;  %v2681_v28 = vpop.f32.mrb[82].mxu0 }
0x3c8c   :  { %v7999_v8 = vadd.f32 %v3589_v39, %v2678_v6  ;;  %v2682_v21 = vadd.f32 %v2681_v28, %v7536_v3  ;;  %v2683_v18 = vpop.f32.mrb[83].mxu0  ;;  %v3724_v14 = vpop.f32.mrb[76].mxu1 }
0x3c8d   :  { %v2684_v26 = vadd.f32 %v2683_v18, %v7995_v54  ;;  %v3731_v49 = vadd.f32 %v3724_v14, %v2680_v2  ;;  %v5385_v47 = vpop.f32.mrb[77].mxu1 }
0x3c8e   :  { %v8003_v19 = vadd.f32 %v3592_v10, %v2682_v21  ;;  %v3727_v46 = vpop.f32.mrb[78].mxu1 }
0x3c8f   :  { %6124 = vtanh.f32 %v3731_v49  ;;  %v3732_v62 = vadd.f32 %v3727_v46, %v2684_v26  ;;  %v5386_v56 = vpop.f32.mrb[79].mxu1  ;;  %v5029_v3 = vmul.f32 -1.442695, %v3731_v49 }
0x3c91   :  { %6126 = vtanh.f32 %v3732_v62  ;;  %v5030_v6 = vmul.f32 -1.442695, %v3732_v62 }
0x3c92   :  { %6128 = vpow2.f32 %v5029_v3 }
0x3c93   :  { %6130 = vpow2.f32 %v5030_v6 }
0x3c99   :  { %v6125_v63 = vpop.eup %6124 }
0x3c9a   :  { %3751 = vrot.lane.b32.xlu1 %v6125_v63, %s6490_s22 }
0x3c9b   :  { %v6127_v39 = vpop.eup %6126 }
0x3c9c   :  { %3753 = vrot.lane.b32.xlu0 %v6127_v39, %s6490_s22  ;;  %v6129_v45 = vpop.eup %6128 }
0x3c9d   :  { %v3739_v2 = vadd.f32 1.0, %v6129_v45  ;;  %v6131_v28 = vpop.eup %6130 }
0x3c9e   :  { %v3740_v10 = vadd.f32 1.0, %v6131_v28 }
0x3c9f   :  { %6132 = vrcp.f32 %v3739_v2 }
0x3ca0   :  { %6134 = vrcp.f32 %v3740_v10 }
0x3ca9   :  { %v6133_v21 = vpop.eup %6132 }
0x3caa   :  { %v6135_v26 = vpop.eup %6134  ;;  %v3747_v49 = vmul.f32 0.0, %v6133_v21 }
0x3cab   :  { %v3748_v63 = vmul.f32 0.0, %v6135_v26 }
0x3d0c   :  { %v3752_v18 = vpop.permute.xlu1 %3751 }
0x3d0d   :  { %v3757_v14 = vmul.f32 %v6133_v21, %v3752_v18 }
0x3d0e   :  { %v3754_v47 = vpop.permute.xlu0 %3753 }
0x3d0f   :  { %3761 = vrot.lane.b32.xlu1 %v3757_v14, %s6500_s5  ;;  %v3758_v46 = vmul.f32 %v6135_v26, %v3754_v47 }
0x3d11   :  { %3763 = vrot.lane.b32.xlu0 %v3758_v46, %s6500_s5 }
0x3d81   :  { %v3762_v56 = vpop.permute.xlu1 %3761 }
0x3d82   :  { %v3767_v62 = vadd.f32 %v3762_v56, %v3747_v49 }
0x3d83   :  { %v3764_v39 = vpop.permute.xlu0 %3763 }
0x3d84   :  { %6136 = vtanh.f32 %v3767_v62  ;;  %v3768_v3 = vadd.f32 %v3764_v39, %v3748_v63  ;;  %v2674_v39 = vadd.f32 %v7872_v53, %v7995_v54 }
0x3d86   :  { %6138 = vtanh.f32 %v3768_v3 }
0x3d8e   :  { %v6137_v6 = vpop.eup %6136 }
0x3d8f   :  { %3773 = vrot.lane.b32.xlu1 %v6137_v6, %s6490_s22 }
0x3d90   :  { %v6139_v45 = vpop.eup %6138 }
0x3d91   :  { %3775 = vrot.lane.b32.xlu0 %v6139_v45, %s6490_s22 }
0x3d95   :  { %3793 = vrot.lane.b32.xlu0 %v3767_v62, %s6501_s16 }
0x3e01   :  { %v3774_v2 = vpop.permute.xlu1 %3773 }
0x3e02   :  { %v3779_v10 = vmul.f32 %v6133_v21, %v3774_v2 }
0x3e03   :  { %v3776_v28 = vpop.permute.xlu0 %3775 }
0x3e04   :  { %v3780_v18 = vmul.f32 %v6135_v26, %v3776_v28  ;;  %v2670_v26 = vadd.f32 %v7870_v7, %v7995_v54 }
0x3e06   :  { %v5616_v14 = vpack.i.bf16 %v3780_v18, %v3779_v10 }
0x3e07   :  { %v3794_v18 = vpop.permute.xlu0 %3793 }
0x3e08   :  { %5617 = vrot.lane.b32.xlu1 %v5616_v14, %s6500_s5 }
0x3e0c   :  { %3795 = vrot.lane.b32.xlu1 %v3768_v3, %s6501_s16 }
0x3e7a   :  { %v5618_v47 = vpop.permute.xlu1 %5617 }
0x3e7b   :  { %v5620_v46 = vunpack.i.h.bf16 %v5618_v47  ;;  %v5619_v49 = vunpack.i.l.bf16 %v5618_v47 }
0x3e7d   :  { %v8016_v56 = vsel %vm8511_vm15, %v5620_v46, 0.0  ;;  %v8020_v63 = vsel %vm8513_vm3, %v5619_v49, 0.0  ;;  %vm8515_vm15 = vmmov %vm8513_vm3  ;;  %vm8516_vm3 = vcmp.gt.f32.partialorder %v8510_v61, 0.5 }
0x3e7e   :  { %v3801_v21 = vpack.c.bf16 %v8016_v56, %v8020_v63  ;;  %v8038_v47 = vsel %vm8515_vm15, %v3794_v18, 0.0  ;;  %v3796_v7 = vpop.permute.xlu1 %3795  ;;  %vm8517_vm15 = vcmp.gt.f32.partialorder %v7149_v32, 0.5 }
0x3e7f   :  { %v8045_v53 = vsel %vm8516_vm3, %v3796_v7, 0.0  ;;  %vm8518_vm3 = vmmov %vm8517_vm15 }
0x3e80   :  { %5392 = vmatmul.mubr.msk.bf16.vlgmr.msra.gmra.mrb[84].mxu0 %vm283_vm1, %v3801_v21 }
0x3e81   :  { %5404 = vmatpush3.bf16.msra.mxu0 %v7934_v4  ;;  %5407 = vmatprep.mubr.msk.bf16.mxu0 %vm6499_vm0, %v8490_v51 }
0x3e82   :  { %5405 = vmatprep.subr.bf16.mxu0 %v8490_v51 }
0x3e85   :  { %5406 = vmatpush3.bf16.msra.mxu0 %v7938_v0 }
0x3e86   :  { %5419 = vmatprep.subr.bf16.mxu0 %v8490_v51 }
0x3f53   :  { %v3839_v62 = vpop.f32.mrb[84].mxu0 }
0x3f54   :  { %v3846_v3 = vadd.f32 %v3839_v62, %v2670_v26  ;;  %v5393_v6 = vpop.f32.mrb[85].mxu0 }
0x3f55   :  { %v3842_v45 = vpop.f32.mrb[86].mxu0 }
0x3f56   :  { %6140 = vtanh.f32 %v3846_v3  ;;  %v3847_v2 = vadd.f32 %v3842_v45, %v2674_v39  ;;  %v5394_v28 = vpop.f32.mrb[87].mxu0  ;;  %v5032_v46 = vmul.f32 -1.442695, %v3846_v3 }
0x3f58   :  { %6142 = vtanh.f32 %v3847_v2  ;;  %v5033_v49 = vmul.f32 -1.442695, %v3847_v2 }
0x3f59   :  { %6144 = vpow2.f32 %v5032_v46 }
0x3f5a   :  { %6146 = vpow2.f32 %v5033_v49 }
0x3f60   :  { %v6141_v10 = vpop.eup %6140 }
0x3f61   :  { %3874 = vrot.lane.b32.xlu0 %v6141_v10, %s6490_s22 }
0x3f62   :  { %v6143_v14 = vpop.eup %6142 }
0x3f63   :  { %3876 = vrot.lane.b32.xlu1 %v6143_v14, %s6490_s22  ;;  %v6145_v21 = vpop.eup %6144 }
0x3f64   :  { %v6147_v26 = vpop.eup %6146  ;;  %v3854_v62 = vadd.f32 1.0, %v6145_v21 }
0x3f65   :  { %3864 = vrot.lane.b32.xlu0 %v8038_v47, %s6500_s5  ;;  %v3855_v39 = vadd.f32 1.0, %v6147_v26 }
0x3f66   :  { %6148 = vrcp.f32 %v3854_v62 }
0x3f67   :  { %3866 = vrot.lane.b32.xlu1 %v8045_v53, %s6500_s5  ;;  %6150 = vrcp.f32 %v3855_v39 }
0x3f70   :  { %v6149_v6 = vpop.eup %6148 }
0x3f71   :  { %v6151_v10 = vpop.eup %6150 }
0x3fd3   :  { %v3875_v45 = vpop.permute.xlu0 %3874 }
0x3fd4   :  { %v3880_v28 = vmul.f32 %v6149_v6, %v3875_v45 }
0x3fd5   :  { %v3877_v18 = vpop.permute.xlu1 %3876 }
0x3fd6   :  { %3884 = vrot.lane.b32.xlu0 %v3880_v28, %s6500_s5  ;;  %v3881_v14 = vmul.f32 %v6151_v10, %v3877_v18 }
0x3fd7   :  { %v3865_v3 = vpop.permute.xlu0 %3864 }
0x3fd8   :  { %3886 = vrot.lane.b32.xlu1 %v3881_v14, %s6500_s5  ;;  %v3870_v2 = vmul.f32 %v6149_v6, %v3865_v3 }
0x3fd9   :  { %v3867_v7 = vpop.permute.xlu1 %3866 }
0x3fda   :  { %v3871_v33 = vmul.f32 %v6151_v10, %v3867_v7 }
0x4048   :  { %v3885_v46 = vpop.permute.xlu0 %3884 }
0x4049   :  { %v3890_v49 = vadd.f32 %v3885_v46, %v3870_v2 }
0x404a   :  { %v3887_v21 = vpop.permute.xlu1 %3886 }
0x404b   :  { %6152 = vtanh.f32 %v3890_v49  ;;  %v3891_v26 = vadd.f32 %v3887_v21, %v3871_v33 }
0x404d   :  { %6154 = vtanh.f32 %v3891_v26 }
0x4055   :  { %v6153_v62 = vpop.eup %6152 }
0x4056   :  { %3896 = vrot.lane.b32.xlu0 %v6153_v62, %s6490_s22 }
0x4057   :  { %v6155_v39 = vpop.eup %6154 }
0x4058   :  { %3898 = vrot.lane.b32.xlu1 %v6155_v39, %s6490_s22 }
0x405c   :  { %3916 = vrot.lane.b32.xlu1 %v3890_v49, %s6501_s16 }
0x40c8   :  { %v3897_v45 = vpop.permute.xlu0 %3896 }
0x40c9   :  { %v3902_v18 = vmul.f32 %v6149_v6, %v3897_v45 }
0x40ca   :  { %v3899_v28 = vpop.permute.xlu1 %3898 }
0x40cb   :  { %v3903_v14 = vmul.f32 %v6151_v10, %v3899_v28  ;;  %v2664_v10 = vadd.f32 %v7807_v59, %v7995_v54 }
0x40cd   :  { %v5621_v3 = vpack.i.bf16 %v3903_v14, %v3902_v18 }
0x40ce   :  { %v3917_v18 = vpop.permute.xlu1 %3916 }
0x40cf   :  { %5622 = vrot.lane.b32.xlu0 %v5621_v3, %s6500_s5 }
0x40d3   :  { %3918 = vrot.lane.b32.xlu0 %v3891_v26, %s6501_s16 }
0x4141   :  { %v5623_v2 = vpop.permute.xlu0 %5622 }
0x4142   :  { %v5625_v33 = vunpack.i.h.bf16 %v5623_v2  ;;  %v5624_v7 = vunpack.i.l.bf16 %v5623_v2 }
0x4144   :  { %v8059_v46 = vsel %vm8517_vm15, %v5625_v33, %v8016_v56  ;;  %v8064_v49 = vsel %vm180_vm14, %v5624_v7, %v8020_v63  ;;  %v2660_v56 = vadd.f32 %v7805_v60, %v7995_v54  ;;  %v8083_v60 = vsel %vm180_vm14, %v3917_v18, %v8038_v47 }
0x4145   :  { %v3924_v6 = vpack.c.bf16 %v8059_v46, %v8064_v49  ;;  %v3919_v3 = vpop.permute.xlu0 %3918 }
0x4146   :  { %v8091_v59 = vsel %vm8518_vm3, %v3919_v3, %v8045_v53 }
0x4147   :  { %5400 = vmatmul.mubr.msk.bf16.vlgmr.msra.gmra.mrb[80].mxu1 %vm283_vm1, %v3924_v6 }
0x4148   :  { %5412 = vmatpush3.bf16.msra.mxu1 %v7934_v4  ;;  %5415 = vmatprep.mubr.msk.bf16.mxu1 %vm6499_vm0, %v8490_v51 }
0x4149   :  { %5413 = vmatprep.subr.bf16.mxu1 %v8490_v51 }
0x414c   :  { %5414 = vmatpush3.bf16.msra.mxu1 %v7938_v0 }
0x414d   :  { %5427 = vmatprep.subr.bf16.mxu1 %v8490_v51 }
0x421a   :  { %v3962_v63 = vpop.f32.mrb[80].mxu1 }
0x421b   :  { %v3969_v21 = vadd.f32 %v3962_v63, %v2660_v56  ;;  %v5401_v26 = vpop.f32.mrb[81].mxu1 }
0x421c   :  { %v3965_v62 = vpop.f32.mrb[82].mxu1 }
0x421d   :  { %6156 = vtanh.f32 %v3969_v21  ;;  %v3970_v39 = vadd.f32 %v3965_v62, %v2664_v10  ;;  %v5402_v45 = vpop.f32.mrb[83].mxu1  ;;  %v5035_v2 = vmul.f32 -1.442695, %v3969_v21 }
0x421f   :  { %6158 = vtanh.f32 %v3970_v39  ;;  %v5036_v33 = vmul.f32 -1.442695, %v3970_v39 }
0x4220   :  { %6160 = vpow2.f32 %v5035_v2 }
0x4221   :  { %6162 = vpow2.f32 %v5036_v33 }
0x4227   :  { %v6157_v28 = vpop.eup %6156 }
0x4228   :  { %3997 = vrot.lane.b32.xlu1 %v6157_v28, %s6490_s22 }
0x4229   :  { %v6159_v14 = vpop.eup %6158 }
0x422a   :  { %3999 = vrot.lane.b32.xlu0 %v6159_v14, %s6490_s22  ;;  %v6161_v47 = vpop.eup %6160 }
0x422b   :  { %v6163_v7 = vpop.eup %6162  ;;  %v3977_v6 = vadd.f32 1.0, %v6161_v47 }
0x422c   :  { %3987 = vrot.lane.b32.xlu1 %v8083_v60, %s6500_s5  ;;  %v3978_v56 = vadd.f32 1.0, %v6163_v7 }
0x422d   :  { %6164 = vrcp.f32 %v3977_v6 }
0x422e   :  { %3989 = vrot.lane.b32.xlu0 %v8091_v59, %s6500_s5  ;;  %6166 = vrcp.f32 %v3978_v56 }
0x4237   :  { %v6165_v63 = vpop.eup %6164 }
0x4238   :  { %v6167_v62 = vpop.eup %6166 }
0x429a   :  { %v3998_v10 = vpop.permute.xlu1 %3997 }
0x429b   :  { %v4003_v26 = vmul.f32 %v6165_v63, %v3998_v10 }
0x429c   :  { %v4000_v45 = vpop.permute.xlu0 %3999 }
0x429d   :  { %4007 = vrot.lane.b32.xlu1 %v4003_v26, %s6500_s5  ;;  %v4004_v53 = vmul.f32 %v6167_v62, %v4000_v45 }
0x429e   :  { %v3988_v21 = vpop.permute.xlu1 %3987 }
0x429f   :  { %4009 = vrot.lane.b32.xlu0 %v4004_v53, %s6500_s5  ;;  %v3993_v39 = vmul.f32 %v6165_v63, %v3988_v21 }
0x42a0   :  { %v3990_v28 = vpop.permute.xlu0 %3989 }
0x42a1   :  { %v3994_v3 = vmul.f32 %v6167_v62, %v3990_v28 }
0x430f   :  { %v4008_v18 = vpop.permute.xlu1 %4007 }
0x4310   :  { %v4013_v14 = vadd.f32 %v4008_v18, %v3993_v39 }
0x4311   :  { %v4010_v2 = vpop.permute.xlu0 %4009 }
0x4312   :  { %6168 = vtanh.f32 %v4013_v14  ;;  %v4014_v33 = vadd.f32 %v4010_v2, %v3994_v3 }
0x4314   :  { %6170 = vtanh.f32 %v4014_v33 }
0x431c   :  { %v6169_v47 = vpop.eup %6168 }
0x431d   :  { %4019 = vrot.lane.b32.xlu1 %v6169_v47, %s6490_s22 }
0x431e   :  { %v6171_v7 = vpop.eup %6170 }
0x431f   :  { %4021 = vrot.lane.b32.xlu0 %v6171_v7, %s6490_s22 }
0x4323   :  { %4039 = vrot.lane.b32.xlu0 %v4013_v14, %s6501_s16 }
0x438f   :  { %v4020_v6 = vpop.permute.xlu1 %4019 }
0x4390   :  { %v4025_v10 = vmul.f32 %v6165_v63, %v4020_v6 }
0x4391   :  { %v4022_v56 = vpop.permute.xlu0 %4021 }
0x4392   :  { %v4026_v26 = vmul.f32 %v6167_v62, %v4022_v56  ;;  %v2654_v62 = vadd.f32 %v7750_v12, %v7995_v54 }
0x4394   :  { %v5626_v45 = vpack.i.bf16 %v4026_v26, %v4025_v10 }
0x4395   :  { %v4040_v6 = vpop.permute.xlu0 %4039 }
0x4396   :  { %5627 = vrot.lane.b32.xlu1 %v5626_v45, %s6500_s5 }
0x439a   :  { %4041 = vrot.lane.b32.xlu1 %v4014_v33, %s6501_s16 }
0x4408   :  { %v5628_v53 = vpop.permute.xlu1 %5627 }
0x4409   :  { %v5630_v21 = vunpack.i.h.bf16 %v5628_v53  ;;  %v5629_v39 = vunpack.i.l.bf16 %v5628_v53 }
0x440b   :  { %v8105_v28 = vsel %vm179_vm12, %v5630_v21, %v8059_v46  ;;  %v8110_v18 = vsel %vm178_vm13, %v5629_v39, %v8064_v49  ;;  %v2650_v46 = vadd.f32 %v7748_v5, %v7995_v54  ;;  %v8129_v5 = vsel %vm178_vm13, %v4040_v6, %v8083_v60 }
0x440c   :  { %v4047_v63 = vpack.c.bf16 %v8105_v28, %v8110_v18  ;;  %v4042_v10 = vpop.permute.xlu1 %4041 }
0x440d   :  { %v8137_v12 = vsel %vm179_vm12, %v4042_v10, %v8091_v59 }
0x440e   :  { %5408 = vmatmul.mubr.msk.bf16.vlgmr.msra.gmra.mrb[88].mxu0 %vm283_vm1, %v4047_v63 }
0x440f   :  { %5420 = vmatpush3.bf16.msra.mxu0 %v7934_v4  ;;  %5423 = vmatprep.mubr.msk.bf16.mxu0 %vm6499_vm0, %v8490_v51 }
0x4410   :  { %5421 = vmatprep.subr.bf16.mxu0 %v8490_v51 }
0x4413   :  { %5422 = vmatpush3.bf16.msra.mxu0 %v7938_v0 }
0x4414   :  { %5435 = vmatprep.subr.bf16.mxu0 %v8490_v51 }
0x44e1   :  { %v4085_v49 = vpop.f32.mrb[88].mxu0 }
0x44e2   :  { %v4092_v14 = vadd.f32 %v4085_v49, %v2650_v46  ;;  %v5409_v3 = vpop.f32.mrb[89].mxu0 }
0x44e3   :  { %v4088_v2 = vpop.f32.mrb[90].mxu0 }
0x44e4   :  { %6172 = vtanh.f32 %v4092_v14  ;;  %v4093_v33 = vadd.f32 %v4088_v2, %v2654_v62  ;;  %v5410_v47 = vpop.f32.mrb[91].mxu0  ;;  %v5038_v26 = vmul.f32 -1.442695, %v4092_v14 }
0x44e6   :  { %6174 = vtanh.f32 %v4093_v33  ;;  %v5039_v45 = vmul.f32 -1.442695, %v4093_v33 }
0x44e7   :  { %6176 = vpow2.f32 %v5038_v26 }
0x44e8   :  { %6178 = vpow2.f32 %v5039_v45 }
0x44ee   :  { %v6173_v7 = vpop.eup %6172 }
0x44ef   :  { %4120 = vrot.lane.b32.xlu0 %v6173_v7, %s6490_s22 }
0x44f0   :  { %v6175_v56 = vpop.eup %6174 }
0x44f1   :  { %4122 = vrot.lane.b32.xlu1 %v6175_v56, %s6490_s22  ;;  %v6177_v20 = vpop.eup %6176 }
0x44f2   :  { %v6179_v60 = vpop.eup %6178  ;;  %v4100_v53 = vadd.f32 1.0, %v6177_v20 }
0x44f3   :  { %4110 = vrot.lane.b32.xlu0 %v8129_v5, %s6500_s5  ;;  %v4101_v21 = vadd.f32 1.0, %v6179_v60 }
0x44f4   :  { %6180 = vrcp.f32 %v4100_v53 }
0x44f5   :  { %4112 = vrot.lane.b32.xlu1 %v8137_v12, %s6500_s5  ;;  %6182 = vrcp.f32 %v4101_v21 }
0x44fe   :  { %v6181_v39 = vpop.eup %6180 }
0x44ff   :  { %v6183_v49 = vpop.eup %6182 }
0x4561   :  { %v4121_v63 = vpop.permute.xlu0 %4120 }
0x4562   :  { %v4126_v46 = vmul.f32 %v6181_v39, %v4121_v63 }
0x4563   :  { %v4123_v31 = vpop.permute.xlu1 %4122 }
0x4564   :  { %4130 = vrot.lane.b32.xlu0 %v4126_v46, %s6500_s5  ;;  %v4127_v59 = vmul.f32 %v6183_v49, %v4123_v31 }
0x4565   :  { %v4111_v62 = vpop.permute.xlu0 %4110 }
0x4566   :  { %4132 = vrot.lane.b32.xlu1 %v4127_v59, %s6500_s5  ;;  %v4116_v14 = vmul.f32 %v6181_v39, %v4111_v62 }
0x4567   :  { %v4113_v3 = vpop.permute.xlu1 %4112 }
0x4568   :  { %v4117_v47 = vmul.f32 %v6183_v49, %v4113_v3 }
0x45d6   :  { %v4131_v2 = vpop.permute.xlu0 %4130 }
0x45d7   :  { %v4136_v33 = vadd.f32 %v4131_v2, %v4116_v14 }
0x45d8   :  { %v4133_v7 = vpop.permute.xlu1 %4132 }
0x45d9   :  { %6184 = vtanh.f32 %v4136_v33  ;;  %v4137_v6 = vadd.f32 %v4133_v7, %v4117_v47 }
0x45db   :  { %6186 = vtanh.f32 %v4137_v6 }
0x45e3   :  { %v6185_v56 = vpop.eup %6184 }
0x45e4   :  { %4142 = vrot.lane.b32.xlu0 %v6185_v56, %s6490_s22 }
0x45e5   :  { %v6187_v10 = vpop.eup %6186 }
0x45e6   :  { %4144 = vrot.lane.b32.xlu1 %v6187_v10, %s6490_s22 }
0x45ea   :  { %4162 = vrot.lane.b32.xlu1 %v4136_v33, %s6501_s16 }
0x4656   :  { %v4143_v26 = vpop.permute.xlu0 %4142 }
0x4657   :  { %v4148_v20 = vmul.f32 %v6181_v39, %v4143_v26 }
0x4658   :  { %v4145_v45 = vpop.permute.xlu1 %4144 }
0x4659   :  { %v4149_v60 = vmul.f32 %v6183_v49, %v4145_v45 }
0x465b   :  { %v5631_v53 = vpack.i.bf16 %v4149_v60, %v4148_v20 }
0x465c   :  { %v4163_v7 = vpop.permute.xlu1 %4162 }
0x465d   :  { %5632 = vrot.lane.b32.xlu0 %v5631_v53, %s6500_s5 }
0x4661   :  { %4164 = vrot.lane.b32.xlu0 %v4137_v6, %s6501_s16 }
0x46cf   :  { %v5633_v21 = vpop.permute.xlu0 %5632 }
0x46d0   :  { %v5635_v63 = vunpack.i.h.bf16 %v5633_v21  ;;  %v5634_v46 = vunpack.i.l.bf16 %v5633_v21 }
0x46d2   :  { %v8151_v31 = vsel %vm177_vm10, %v5635_v63, %v8105_v28  ;;  %v8156_v59 = vsel %vm176_vm11, %v5634_v46, %v8110_v18  ;;  %v2640_v28 = vadd.f32 %v7691_v34, %v7995_v54  ;;  %v2644_v18 = vadd.f32 %v7693_v11, %v7995_v54 }
0x46d3   :  { %v4170_v39 = vpack.c.bf16 %v8151_v31, %v8156_v59  ;;  %v8174_v34 = vsel %vm176_vm11, %v4163_v7, %v8129_v5  ;;  %v4165_v56 = vpop.permute.xlu0 %4164 }
0x46d4   :  { %v8182_v11 = vsel %vm177_vm10, %v4165_v56, %v8137_v12 }
0x46d5   :  { %5416 = vmatmul.mubr.msk.bf16.vlgmr.msra.gmra.mrb[84].mxu1 %vm283_vm1, %v4170_v39 }
0x46d6   :  { %5428 = vmatpush3.bf16.msra.mxu1 %v7934_v4  ;;  %5431 = vmatprep.mubr.msk.bf16.mxu1 %vm6499_vm0, %v8490_v51 }
0x46d7   :  { %5429 = vmatprep.subr.bf16.mxu1 %v8490_v51 }
0x46da   :  { %5430 = vmatpush3.bf16.msra.mxu1 %v7938_v0 }
0x47a8   :  { %v4208_v49 = vpop.f32.mrb[84].mxu1 }
0x47a9   :  { %v4215_v62 = vadd.f32 %v4208_v49, %v2640_v28  ;;  %v5417_v14 = vpop.f32.mrb[85].mxu1 }
0x47aa   :  { %v4211_v3 = vpop.f32.mrb[86].mxu1 }
0x47ab   :  { %6188 = vtanh.f32 %v4215_v62  ;;  %v4216_v2 = vadd.f32 %v4211_v3, %v2644_v18  ;;  %v5418_v33 = vpop.f32.mrb[87].mxu1  ;;  %v5041_v10 = vmul.f32 -1.442695, %v4215_v62 }
0x47ad   :  { %6190 = vtanh.f32 %v4216_v2  ;;  %v5042_v26 = vmul.f32 -1.442695, %v4216_v2 }
0x47ae   :  { %6192 = vpow2.f32 %v5041_v10 }
0x47af   :  { %6194 = vpow2.f32 %v5042_v26 }
0x47b5   :  { %v6189_v47 = vpop.eup %6188 }
0x47b6   :  { %4243 = vrot.lane.b32.xlu1 %v6189_v47, %s6490_s22 }
0x47b7   :  { %v6191_v6 = vpop.eup %6190 }
0x47b8   :  { %4245 = vrot.lane.b32.xlu0 %v6191_v6, %s6490_s22  ;;  %v6193_v48 = vpop.eup %6192 }
0x47b9   :  { %v6195_v5 = vpop.eup %6194  ;;  %v4223_v45 = vadd.f32 1.0, %v6193_v48 }
0x47ba   :  { %4233 = vrot.lane.b32.xlu1 %v8174_v34, %s6500_s5  ;;  %v4224_v20 = vadd.f32 1.0, %v6195_v5 }
0x47bb   :  { %6196 = vrcp.f32 %v4223_v45 }
0x47bc   :  { %4235 = vrot.lane.b32.xlu0 %v8182_v11, %s6500_s5  ;;  %6198 = vrcp.f32 %v4224_v20 }
0x47c5   :  { %v6197_v60 = vpop.eup %6196 }
0x47c6   :  { %v6199_v63 = vpop.eup %6198 }
0x4828   :  { %v4244_v53 = vpop.permute.xlu1 %4243 }
0x4829   :  { %v4249_v21 = vmul.f32 %v6197_v60, %v4244_v53 }
0x482a   :  { %v4246_v52 = vpop.permute.xlu0 %4245 }
0x482b   :  { %4253 = vrot.lane.b32.xlu1 %v4249_v21, %s6500_s5  ;;  %v4250_v12 = vmul.f32 %v6199_v63, %v4246_v52 }
0x482c   :  { %v4234_v46 = vpop.permute.xlu1 %4233 }
0x482d   :  { %4255 = vrot.lane.b32.xlu0 %v4250_v12, %s6500_s5  ;;  %v4239_v39 = vmul.f32 %v6197_v60, %v4234_v46 }
0x482e   :  { %v4236_v28 = vpop.permute.xlu0 %4235 }
0x482f   :  { %v4240_v62 = vmul.f32 %v6199_v63, %v4236_v28 }
0x489d   :  { %v4254_v49 = vpop.permute.xlu1 %4253 }
0x489e   :  { %v4259_v18 = vadd.f32 %v4254_v49, %v4239_v39 }
0x489f   :  { %v4256_v14 = vpop.permute.xlu0 %4255 }
0x48a0   :  { %6200 = vtanh.f32 %v4259_v18  ;;  %v4260_v3 = vadd.f32 %v4256_v14, %v4240_v62 }
0x48a2   :  { %6202 = vtanh.f32 %v4260_v3 }
0x48aa   :  { %v6201_v2 = vpop.eup %6200 }
0x48ab   :  { %4265 = vrot.lane.b32.xlu1 %v6201_v2, %s6490_s22 }
0x48ac   :  { %v6203_v33 = vpop.eup %6202 }
0x48ad   :  { %4267 = vrot.lane.b32.xlu0 %v6203_v33, %s6490_s22 }
0x48b1   :  { %4285 = vrot.lane.b32.xlu0 %v4259_v18, %s6501_s16 }
0x491d   :  { %v4266_v47 = vpop.permute.xlu1 %4265 }
0x491e   :  { %v4271_v6 = vmul.f32 %v6197_v60, %v4266_v47 }
0x491f   :  { %v4268_v7 = vpop.permute.xlu0 %4267 }
0x4920   :  { %v4272_v56 = vmul.f32 %v6199_v63, %v4268_v7 }
0x4922   :  { %v5636_v10 = vpack.i.bf16 %v4272_v56, %v4271_v6 }
0x4923   :  { %v4286_v39 = vpop.permute.xlu0 %4285 }
0x4924   :  { %5637 = vrot.lane.b32.xlu1 %v5636_v10, %s6500_s5 }
0x4928   :  { %4287 = vrot.lane.b32.xlu1 %v4260_v3, %s6501_s16 }
0x4996   :  { %v5638_v26 = vpop.permute.xlu1 %5637 }
0x4997   :  { %v5640_v48 = vunpack.i.h.bf16 %v5638_v26  ;;  %v5639_v5 = vunpack.i.l.bf16 %v5638_v26 }
0x4999   :  { %v8196_v45 = vsel %vm175_vm8, %v5640_v48, %v8151_v31  ;;  %v8201_v20 = vsel %vm174_vm9, %v5639_v5, %v8156_v59  ;;  %v2630_v31 = vadd.f32 %v7634_v29, %v7995_v54  ;;  %v2634_v59 = vadd.f32 %v7636_v22, %v7995_v54 }
0x499a   :  { %v4293_v60 = vpack.c.bf16 %v8196_v45, %v8201_v20  ;;  %v8219_v29 = vsel %vm174_vm9, %v4286_v39, %v8174_v34 }
0x499c   :  { %5424 = vmatmul.mubr.msk.bf16.vlgmr.msra.gmra.mrb[92].mxu0 %vm283_vm1, %v4293_v60 }
0x499d   :  { %5436 = vmatpush3.bf16.msra.mxu0 %v7934_v4  ;;  %5439 = vmatprep.mubr.msk.bf16.mxu0 %vm6499_vm0, %v8490_v51  ;;  %vm8519_vm0 = vmmov %vm8518_vm3  ;;  %vm4706_vm3 = vcmask 785408  }
0x499e   :  { %5437 = vmatprep.subr.bf16.mxu0 %v8490_v51 }
0x49a1   :  { %5438 = vmatpush3.bf16.msra.mxu0 %v7938_v0  ;;  %v4288_v0 = vpop.permute.xlu1 %4287 }
0x49a2   :  { %v8227_v22 = vsel %vm175_vm8, %v4288_v0, %v8182_v11 }
0x4a6f   :  { %v4331_v53 = vpop.f32.mrb[92].mxu0 }
0x4a70   :  { %v4338_v21 = vadd.f32 %v4331_v53, %v2630_v31  ;;  %v5425_v63 = vpop.f32.mrb[93].mxu0 }
0x4a71   :  { %v4334_v52 = vpop.f32.mrb[94].mxu0 }
0x4a72   :  { %6204 = vtanh.f32 %v4338_v21  ;;  %v4339_v12 = vadd.f32 %v4334_v52, %v2634_v59  ;;  %v5426_v4 = vpop.f32.mrb[95].mxu0  ;;  %v5044_v28 = vmul.f32 -1.442695, %v4338_v21 }
0x4a74   :  { %6206 = vtanh.f32 %v4339_v12  ;;  %v5045_v49 = vmul.f32 -1.442695, %v4339_v12 }
0x4a75   :  { %6208 = vpow2.f32 %v5044_v28  ;;  %v2620_v28 = vadd.f32 %v7579_v25, %v7995_v54 }
0x4a76   :  { %6210 = vpow2.f32 %v5045_v49 }
0x4a7c   :  { %v6205_v46 = vpop.eup %6204 }
0x4a7d   :  { %4366 = vrot.lane.b32.xlu0 %v6205_v46, %s6490_s22 }
0x4a7e   :  { %v6207_v51 = vpop.eup %6206 }
0x4a7f   :  { %4368 = vrot.lane.b32.xlu1 %v6207_v51, %s6490_s22  ;;  %v6209_v40 = vpop.eup %6208 }
0x4a80   :  { %v6211_v34 = vpop.eup %6210  ;;  %v4346_v18 = vadd.f32 1.0, %v6209_v40  ;;  %v2624_v40 = vadd.f32 %v7581_v13, %v7995_v54 }
0x4a81   :  { %4356 = vrot.lane.b32.xlu0 %v8219_v29, %s6500_s5  ;;  %v4347_v62 = vadd.f32 1.0, %v6211_v34 }
0x4a82   :  { %6212 = vrcp.f32 %v4346_v18 }
0x4a83   :  { %4358 = vrot.lane.b32.xlu1 %v8227_v22, %s6500_s5  ;;  %6214 = vrcp.f32 %v4347_v62 }
0x4a8c   :  { %v6213_v14 = vpop.eup %6212 }
0x4a8d   :  { %v6215_v33 = vpop.eup %6214 }
0x4aef   :  { %v4367_v3 = vpop.permute.xlu0 %4366 }
0x4af0   :  { %v4372_v2 = vmul.f32 %v6213_v14, %v4367_v3 }
0x4af1   :  { %v4369_v37 = vpop.permute.xlu1 %4368 }
0x4af2   :  { %4376 = vrot.lane.b32.xlu0 %v4372_v2, %s6500_s5  ;;  %v4373_v11 = vmul.f32 %v6215_v33, %v4369_v37 }
0x4af3   :  { %v4357_v47 = vpop.permute.xlu0 %4356 }
0x4af4   :  { %4378 = vrot.lane.b32.xlu1 %v4373_v11, %s6500_s5  ;;  %v4362_v7 = vmul.f32 %v6213_v14, %v4357_v47 }
0x4af5   :  { %v4359_v6 = vpop.permute.xlu1 %4358 }
0x4af6   :  { %v4363_v26 = vmul.f32 %v6215_v33, %v4359_v6 }
0x4b64   :  { %v4377_v56 = vpop.permute.xlu0 %4376 }
0x4b65   :  { %v4382_v10 = vadd.f32 %v4377_v56, %v4362_v7 }
0x4b66   :  { %v4379_v48 = vpop.permute.xlu1 %4378 }
0x4b67   :  { %6216 = vtanh.f32 %v4382_v10  ;;  %v4383_v5 = vadd.f32 %v4379_v48, %v4363_v26 }
0x4b69   :  { %6218 = vtanh.f32 %v4383_v5 }
0x4b71   :  { %v6217_v60 = vpop.eup %6216 }
0x4b72   :  { %4388 = vrot.lane.b32.xlu0 %v6217_v60, %s6490_s22 }
0x4b73   :  { %v6219_v31 = vpop.eup %6218 }
0x4b74   :  { %4390 = vrot.lane.b32.xlu1 %v6219_v31, %s6490_s22 }
0x4b78   :  { %4408 = vrot.lane.b32.xlu1 %v4382_v10, %s6501_s16 }
0x4be4   :  { %v4389_v53 = vpop.permute.xlu0 %4388 }
0x4be5   :  { %v4394_v21 = vmul.f32 %v6213_v14, %v4389_v53 }
0x4be6   :  { %v4391_v59 = vpop.permute.xlu1 %4390 }
0x4be7   :  { %v4395_v63 = vmul.f32 %v6215_v33, %v4391_v59 }
0x4be9   :  { %v5641_v52 = vpack.i.bf16 %v4395_v63, %v4394_v21 }
0x4bea   :  { %v4409_v3 = vpop.permute.xlu1 %4408 }
0x4beb   :  { %5642 = vrot.lane.b32.xlu0 %v5641_v52, %s6500_s5  ;;  %v8259_v25 = vsel %vm172_vm7, %v4409_v3, %v8219_v29  ;;  %v5026_v3 = vmul.f32 -1.442695, %v8003_v19 }
0x4bef   :  { %4410 = vrot.lane.b32.xlu0 %v4383_v5, %s6501_s16 }
0x4c5d   :  { %v5643_v12 = vpop.permute.xlu0 %5642 }
0x4c5e   :  { %v5645_v4 = vunpack.i.h.bf16 %v5643_v12  ;;  %v5644_v46 = vunpack.i.l.bf16 %v5643_v12 }
0x4c60   :  { %v8241_v39 = vsel %vm173_vm6, %v5645_v4, %v8196_v45  ;;  %v8246_v51 = vsel %vm172_vm7, %v5644_v46, %v8201_v20  ;;  %vm8531_vm7 = vcmp.gt.f32.partialorder %v8510_v61, 0.5 }
0x4c61   :  { %v4416_v0 = vpack.c.bf16 %v8241_v39, %v8246_v51  ;;  %v4411_v33 = vpop.permute.xlu0 %4410  ;;  %vm8535_vm11 = vmmov %vm8531_vm7 }
0x4c62   :  { %v8267_v13 = vsel %vm173_vm6, %v4411_v33, %v8227_v22  ;;  %v2614_v33 = vadd.f32 %v7542_v44, %v7995_v54  ;;  %vm8530_vm6 = vcmp.gt.f32.partialorder %v8512_v17, 0.5 }
0x4c63   :  { %5432 = vmatmul.mubr.msk.bf16.vlgmr.msra.gmra.mrb[88].mxu1 %vm283_vm1, %v4416_v0  ;;  %vm8534_vm10 = vmmov %vm8530_vm6 }
0x4c64   :  { %vm8539_vm15 = vmmov %vm8530_vm6 }
0x4d36   :  { %v4454_v49 = vpop.f32.mrb[88].mxu1 }
0x4d37   :  { %v4461_v34 = vadd.f32 %v4454_v49, %v2620_v28  ;;  %v5433_v45 = vpop.f32.mrb[89].mxu1 }
0x4d38   :  { %v4457_v18 = vpop.f32.mrb[90].mxu1 }
0x4d39   :  { %6220 = vtanh.f32 %v4461_v34  ;;  %v4462_v62 = vadd.f32 %v4457_v18, %v2624_v40  ;;  %v5434_v14 = vpop.f32.mrb[91].mxu1  ;;  %v5047_v37 = vmul.f32 -1.442695, %v4461_v34 }
0x4d3b   :  { %6222 = vtanh.f32 %v4462_v62  ;;  %v5048_v11 = vmul.f32 -1.442695, %v4462_v62 }
0x4d3c   :  { %6224 = vpow2.f32 %v5047_v37 }
0x4d3d   :  { %6226 = vpow2.f32 %v5048_v11 }
0x4d43   :  { %v6221_v20 = vpop.eup %6220 }
0x4d44   :  { %4489 = vrot.lane.b32.xlu1 %v6221_v20, %s6490_s22  ;;  %v5025_v20 = vmul.f32 -1.442695, %v7999_v8 }
0x4d45   :  { %v6223_v2 = vpop.eup %6222 }
0x4d46   :  { %4491 = vrot.lane.b32.xlu0 %v6223_v2, %s6490_s22  ;;  %v6225_v9 = vpop.eup %6224  ;;  %v2610_v2 = vadd.f32 %v7539_v24, %v7995_v54 }
0x4d47   :  { %v6227_v29 = vpop.eup %6226  ;;  %v4469_v47 = vadd.f32 1.0, %v6225_v9 }
0x4d48   :  { %4479 = vrot.lane.b32.xlu1 %v8259_v25, %s6500_s5  ;;  %v4470_v7 = vadd.f32 1.0, %v6227_v29 }
0x4d49   :  { %6228 = vrcp.f32 %v4469_v47 }
0x4d4a   :  { %4481 = vrot.lane.b32.xlu0 %v8267_v13, %s6500_s5  ;;  %6230 = vrcp.f32 %v4470_v7 }
0x4d53   :  { %v6229_v6 = vpop.eup %6228 }
0x4d54   :  { %v6231_v26 = vpop.eup %6230 }
0x4db6   :  { %v4490_v56 = vpop.permute.xlu1 %4489 }
0x4db7   :  { %v4495_v10 = vmul.f32 %v6229_v6, %v4490_v56 }
0x4db8   :  { %v4492_v23 = vpop.permute.xlu0 %4491 }
0x4db9   :  { %4499 = vrot.lane.b32.xlu1 %v4495_v10, %s6500_s5  ;;  %v4496_v22 = vmul.f32 %v6231_v26, %v4492_v23 }
0x4dba   :  { %v4480_v48 = vpop.permute.xlu1 %4479 }
0x4dbb   :  { %4501 = vrot.lane.b32.xlu0 %v4496_v22, %s6500_s5  ;;  %v4485_v5 = vmul.f32 %v6229_v6, %v4480_v48 }
0x4dbc   :  { %v4482_v60 = vpop.permute.xlu0 %4481 }
0x4dbd   :  { %v4486_v59 = vmul.f32 %v6231_v26, %v4482_v60 }
0x4e2b   :  { %v4500_v31 = vpop.permute.xlu1 %4499 }
0x4e2c   :  { %v4505_v53 = vadd.f32 %v4500_v31, %v4485_v5 }
0x4e2d   :  { %v4502_v21 = vpop.permute.xlu0 %4501 }
0x4e2e   :  { %6232 = vtanh.f32 %v4505_v53  ;;  %v4506_v63 = vadd.f32 %v4502_v21, %v4486_v59 }
0x4e30   :  { %6234 = vtanh.f32 %v4506_v63 }
0x4e31   :  { %6236 = vtanh.f32 %v7999_v8 }
0x4e32   :  { %6238 = vtanh.f32 %v8003_v19 }
0x4e33   :  { %6240 = vpow2.f32 %v5025_v20 }
0x4e34   :  { %6242 = vpow2.f32 %v5026_v3 }
0x4e38   :  { %v6233_v52 = vpop.eup %6232 }
0x4e39   :  { %4511 = vrot.lane.b32.xlu1 %v6233_v52, %s6490_s22 }
0x4e3a   :  { %v6235_v12 = vpop.eup %6234 }
0x4e3b   :  { %4513 = vrot.lane.b32.xlu0 %v6235_v12, %s6490_s22  ;;  %v6237_v4 = vpop.eup %6236 }
0x4e3c   :  { %v6239_v34 = vpop.eup %6238 }
0x4e3d   :  { %v6241_v47 = vpop.eup %6240 }
0x4e3e   :  { %v6243_v8 = vpop.eup %6242  ;;  %v3604_v19 = vadd.f32 1.0, %v6241_v47 }
0x4e3f   :  { %3543 = vrot.lane.b32.xlu0 %v7916_v50, %s6501_s16  ;;  %v3605_v56 = vadd.f32 1.0, %v6243_v8  ;;  %v8520_v8 = vld [vmem:[#allocation36_spill] sm:$0xff] }
0x4e43   :  { %3624 = vrot.lane.b32.xlu0 %v6237_v4, %s6490_s22 }
0x4e47   :  { %4531 = vrot.lane.b32.xlu0 %v4505_v53, %s6501_s16 }
0x4eab   :  { %v4512_v46 = vpop.permute.xlu1 %4511 }
0x4eac   :  { %v4517_v28 = vmul.f32 %v6229_v6, %v4512_v46 }
0x4ead   :  { %v4514_v0 = vpop.permute.xlu0 %4513 }
0x4eae   :  { %v4518_v49 = vmul.f32 %v6231_v26, %v4514_v0 }
0x4eb0   :  { %v5646_v40 = vpack.i.bf16 %v4518_v49, %v4517_v28 }
0x4eb1   :  { %v3544_v7 = vpop.permute.xlu0 %3543 }
0x4eb2   :  { %5647 = vrot.lane.b32.xlu1 %v5646_v40, %s6500_s5  ;;  %v8309_v54 = vsel %vm180_vm14, %v3544_v7, %v7884_v43  ;;  %vm8538_vm14 = vmmov %vm8531_vm7 }
0x4eb5   :  { %v3625_v10 = vpop.permute.xlu0 %3624 }
0x4eb6   :  { %3545 = vrot.lane.b32.xlu1 %v7919_v1, %s6501_s16 }
0x4eb9   :  { %v4532_v23 = vpop.permute.xlu0 %4531 }
0x4eba   :  { %3626 = vrot.lane.b32.xlu1 %v6239_v34, %s6490_s22  ;;  %v8322_v48 = vsel %vm170_vm5, %v4532_v23, %v8259_v25  ;;  %v8523_v23 = vpack.i.bf16 %v7925_v16, %v7921_v27 }
0x4ebe   :  { %4533 = vrot.lane.b32.xlu1 %v4506_v63, %s6501_s16 }
0x4f24   :  { %v5648_v50 = vpop.permute.xlu1 %5647 }
0x4f25   :  { %v5650_v45 = vunpack.i.h.bf16 %v5648_v50  ;;  %v5649_v18 = vunpack.i.l.bf16 %v5648_v50 }
0x4f27   :  { %v8289_v62 = vsel %vm171_vm4, %v5650_v45, %v8241_v39  ;;  %v8294_v14 = vsel %vm170_vm5, %v5649_v18, %v8246_v51 }
0x4f28   :  { %v4539_v1 = vpack.c.bf16 %v8289_v62, %v8294_v14  ;;  %v3546_v6 = vpop.permute.xlu1 %3545 }
0x4f29   :  { %v8317_v22 = vsel %vm8519_vm0, %v3546_v6, %v7892_v30 }
0x4f2a   :  { %5440 = vmatmul.mubr.msk.bf16.vlgmr.msra.gmra.mrb[96].mxu0 %vm283_vm1, %v4539_v1 }
0x4f2c   :  { %v3627_v26 = vpop.permute.xlu1 %3626 }
0x4f30   :  { %v4534_v5 = vpop.permute.xlu1 %4533 }
0x4f31   :  { %v8331_v32 = vsel %vm171_vm4, %v4534_v5, %v8267_v13 }
0x4ffd   :  { %v4577_v39 = vpop.f32.mrb[96].mxu0 }
0x4ffe   :  { %v4584_v51 = vadd.f32 %v4577_v39, %v2610_v2  ;;  %v5441_v37 = vpop.f32.mrb[97].mxu0 }
0x4fff   :  { %v4580_v11 = vpop.f32.mrb[98].mxu0 }
0x5000   :  { %6244 = vtanh.f32 %v4584_v51  ;;  %v4585_v9 = vadd.f32 %v4580_v11, %v2614_v33  ;;  %v5442_v29 = vpop.f32.mrb[99].mxu0  ;;  %v5050_v25 = vmul.f32 -1.442695, %v4584_v51 }
0x5002   :  { %6246 = vtanh.f32 %v4585_v9  ;;  %v5051_v60 = vmul.f32 -1.442695, %v4585_v9 }
0x5003   :  { %6248 = vrcp.f32 %v3604_v19  ;;  %v8521_v19 = vld [vmem:[#allocation35_spill] sm:$0xff] }
0x5004   :  { %6250 = vrcp.f32 %v3605_v56  ;;  %v8522_v6 = vpack.i.bf16 %v8520_v8, %v8521_v19  ;;  %v5753_v8 = vld [vmem:[#allocation14 + $0x30] sm:$0xff]   ;;  %v5755_v19 = vld [vmem:[#allocation14 + $0x38] sm:$0xff]  }
0x5005   :  { %6252 = vpow2.f32 %v5050_v25 }
0x5006   :  { %6254 = vpow2.f32 %v5051_v60 }
0x500a   :  { %v6245_v24 = vpop.eup %6244 }
0x500b   :  { %4612 = vrot.lane.b32.xlu0 %v6245_v24, %s6490_s22 }
0x500c   :  { %v6247_v44 = vpop.eup %6246 }
0x500d   :  { %4614 = vrot.lane.b32.xlu1 %v6247_v44, %s6490_s22  ;;  %v6249_v15 = vpop.eup %6248 }
0x500e   :  { %v3630_v43 = vmul.f32 %v6249_v15, %v3625_v10  ;;  %v6251_v57 = vpop.eup %6250 }
0x500f   :  { %3614 = vrot.lane.b32.xlu0 %v8309_v54, %s6500_s5  ;;  %v3631_v30 = vmul.f32 %v6251_v57, %v3627_v26  ;;  %v6253_v31 = vpop.eup %6252 }
0x5010   :  { %v6255_v53 = vpop.eup %6254  ;;  %v4592_v59 = vadd.f32 1.0, %v6253_v31 }
0x5011   :  { %3616 = vrot.lane.b32.xlu1 %v8317_v22, %s6500_s5  ;;  %v4593_v21 = vadd.f32 1.0, %v6255_v53 }
0x5012   :  { %6256 = vrcp.f32 %v4592_v59 }
0x5013   :  { %4602 = vrot.lane.b32.xlu0 %v8322_v48, %s6500_s5  ;;  %6258 = vrcp.f32 %v4593_v21  ;;  %v8524_v21 = vld [vmem:[#allocation34_spill] sm:$0xff] }
0x5015   :  { %4604 = vrot.lane.b32.xlu1 %v8331_v32, %s6500_s5 }
0x5017   :  { %3634 = vrot.lane.b32.xlu0 %v3630_v43, %s6500_s5 }
0x5019   :  { %3636 = vrot.lane.b32.xlu1 %v3631_v30, %s6500_s5 }
0x501c   :  { %v6257_v55 = vpop.eup %6256 }
0x501d   :  { %v6259_v52 = vpop.eup %6258 }
0x507d   :  { %v4613_v13 = vpop.permute.xlu0 %4612 }
0x507e   :  { %v4618_v63 = vmul.f32 %v6257_v55, %v4613_v13  ;;  %v8525_v13 = vld [vmem:[#allocation23_spill] sm:$0xff] }
0x507f   :  { %v4615_v12 = vpop.permute.xlu1 %4614  ;;  %vm8526_vm4 = vcmp.gt.f32.partialorder %v8525_v13, 0.5 }
0x5080   :  { %4622 = vrot.lane.b32.xlu0 %v4618_v63, %s6500_s5  ;;  %v4619_v4 = vmul.f32 %v6259_v52, %v4615_v12  ;;  %v8528_v63 = vld [vmem:[#allocation24_spill] sm:$0xff]  ;;  %vm8532_vm8 = vmmov %vm8526_vm4 }
0x5081   :  { %v3615_v46 = vpop.permute.xlu0 %3614  ;;  %vm8529_vm5 = vcmp.gt.f32.partialorder %v8528_v63, 0.5  ;;  %vm8536_vm12 = vmmov %vm8526_vm4 }
0x5082   :  { %4624 = vrot.lane.b32.xlu1 %v4619_v4, %s6500_s5  ;;  %v3620_v49 = vmul.f32 %v6249_v15, %v3615_v46  ;;  %vm8533_vm9 = vmmov %vm8529_vm5 }
0x5083   :  { %v3617_v0 = vpop.permute.xlu1 %3616  ;;  %vm8537_vm13 = vmmov %vm8529_vm5 }
0x5084   :  { %v3621_v45 = vmul.f32 %v6251_v57, %v3617_v0 }
0x5085   :  { %v4603_v28 = vpop.permute.xlu0 %4602 }
0x5086   :  { %v4608_v39 = vmul.f32 %v6257_v55, %v4603_v28 }
0x5087   :  { %v4605_v40 = vpop.permute.xlu1 %4604 }
0x5088   :  { %v4609_v37 = vmul.f32 %v6259_v52, %v4605_v40 }
0x5089   :  { %v3635_v34 = vpop.permute.xlu0 %3634 }
0x508a   :  { %v3640_v50 = vadd.f32 %v3635_v34, %v3620_v49  ;;  %v5740_v34 = vld [vmem:[#allocation14 + $0x40] sm:$0xff]  }
0x508b   :  { %v3637_v18 = vpop.permute.xlu1 %3636  ;;  %5165 = vmatprep.subr.bf16.mxu1 %v5740_v34 }
0x508c   :  { %6260 = vtanh.f32 %v3640_v50  ;;  %v3641_v1 = vadd.f32 %v3637_v18, %v3621_v45  ;;  %v5742_v45 = vld [vmem:[#allocation14 + $0x48] sm:$0xff]  }
0x508e   :  { %6262 = vtanh.f32 %v3641_v1  ;;  %v5656_v20 = vpack.i.bf16 %v3641_v1, %v3640_v50  ;;  %v5741_v50 = vld [vmem:[#allocation14] sm:$0xff]   ;;  %v5743_v1 = vld [vmem:[#allocation14 + $0x8] sm:$0xff]  }
0x508f   :  { %5166 = vmatpush3.bf16.msra.mxu1 %v5741_v50 }
0x5090   :  { %5167 = vmatprep.subr.bf16.mxu1 %v5742_v45 }
0x5093   :  { %5168 = vmatpush3.bf16.msra.mxu1 %v5743_v1 }
0x5096   :  { %v6261_v3 = vpop.eup %6260 }
0x5097   :  { %3646 = vrot.lane.b32.xlu0 %v6261_v3, %s6490_s22 }
0x5098   :  { %v6263_v2 = vpop.eup %6262 }
0x5099   :  { %3648 = vrot.lane.b32.xlu1 %v6263_v2, %s6490_s22 }
0x50f2   :  { %v4623_v33 = vpop.permute.xlu0 %4622 }
0x50f3   :  { %v4628_v51 = vadd.f32 %v4623_v33, %v4608_v39  ;;  %v5745_v33 = vld [vmem:[#allocation14 + $0x10] sm:$0xff]  }
0x50f4   :  { %v4625_v11 = vpop.permute.xlu1 %4624 }
0x50f5   :  { %6264 = vtanh.f32 %v4628_v51  ;;  %v4629_v9 = vadd.f32 %v4625_v11, %v4609_v37  ;;  %v5747_v11 = vld [vmem:[#allocation14 + $0x18] sm:$0xff]  }
0x50f7   :  { %6266 = vtanh.f32 %v4629_v9  ;;  %v5666_v29 = vpack.i.bf16 %v4629_v9, %v4628_v51  ;;  %v5746_v51 = vld [vmem:[#allocation14 + $0x58] sm:$0xff]   ;;  %v5748_v9 = vld [vmem:[#allocation14 + $0x60] sm:$0xff]  }
0x50ff   :  { %v6265_v47 = vpop.eup %6264 }
0x5100   :  { %4634 = vrot.lane.b32.xlu0 %v6265_v47, %s6490_s22  ;;  %v5750_v47 = vld [vmem:[#allocation14 + $0x68] sm:$0xff]  }
0x5101   :  { %v6267_v7 = vpop.eup %6266 }
0x5102   :  { %4636 = vrot.lane.b32.xlu1 %v6267_v7, %s6490_s22  ;;  %v5751_v7 = vld [vmem:[#allocation14 + $0x28] sm:$0xff]  }
0x5104   :  { %5652 = vrot.lane.b32.xlu0 %v8522_v6, %s6501_s16 }
0x5106   :  { %5657 = vrot.lane.b32.xlu1 %v5656_v20, %s6501_s16  ;;  %v5744_v20 = vld [vmem:[#allocation14 + $0x50] sm:$0xff]  }
0x5107   :  { %5169 = vmatprep.subr.bf16.mxu1 %v5744_v20 }
0x5108   :  { %5170 = vmatpush3.bf16.msra.mxu1 %v5745_v33 }
0x5109   :  { %v3647_v56 = vpop.permute.xlu0 %3646  ;;  %5171 = vmatprep.subr.bf16.mxu1 %v5746_v51 }
0x510a   :  { %5667 = vrot.lane.b32.xlu1 %v5666_v29, %s6501_s16  ;;  %v3652_v24 = vmul.f32 %v6249_v15, %v3647_v56  ;;  %v5749_v29 = vld [vmem:[#allocation14 + $0x20] sm:$0xff]  }
0x510b   :  { %v3649_v10 = vpop.permute.xlu1 %3648 }
0x510c   :  { %v3653_v26 = vmul.f32 %v6251_v57, %v3649_v10  ;;  %v8527_v57 = vld [vmem:[#allocation33_spill] sm:$0xff]  ;;  %5172 = vmatpush3.bf16.msra.mxu1 %v5747_v11 }
0x510d   :  { %5173 = vmatprep.subr.bf16.mxu1 %v5748_v9 }
0x510e   :  { %v5661_v44 = vpack.i.bf16 %v3653_v26, %v3652_v24  ;;  %5677 = vrot.lane.b32.xlu1 %v8523_v23, %s6501_s16 }
0x5110   :  { %5662 = vrot.lane.b32.xlu0 %v5661_v44, %s6500_s5  ;;  %5174 = vmatpush3.bf16.msra.mxu1 %v5749_v29 }
0x5111   :  { %5175 = vmatprep.subr.bf16.mxu1 %v5750_v47 }
0x5114   :  { %5176 = vmatpush3.bf16.msra.mxu1 %v5751_v7 }
0x5172   :  { %v4635_v5 = vpop.permute.xlu0 %4634 }
0x5173   :  { %v4640_v30 = vmul.f32 %v6257_v55, %v4635_v5 }
0x5174   :  { %v4637_v43 = vpop.permute.xlu1 %4636 }
0x5175   :  { %v4641_v25 = vmul.f32 %v6259_v52, %v4637_v43 }
0x5176   :  { %v5653_v60 = vpop.permute.xlu0 %5652 }
0x5177   :  { %v5655_v31 = vunpack.i.h.bf16 %v5653_v60  ;;  %v5654_v53 = vunpack.i.l.bf16 %v5653_v60  ;;  %v5671_v59 = vpack.i.bf16 %v4641_v25, %v4640_v30 }
0x5178   :  { %v5658_v27 = vpop.permute.xlu1 %5657 }
0x5179   :  { %v2399_v15 = vsel %vm8526_vm4, %v5655_v31, %v8524_v21  ;;  %v2398_v12 = vsel %vm8529_vm5, %v5654_v53, %v8527_v57  ;;  %v5660_v4 = vunpack.i.h.bf16 %v5658_v27  ;;  %v5659_v46 = vunpack.i.l.bf16 %v5658_v27  ;;  %5672 = vrot.lane.b32.xlu0 %v5671_v59, %s6500_s5 }
0x517a   :  { %v5681_v16 = vpack.i.bf16 %v2399_v15, %v2398_v12 }
0x517b   :  { %v3672_v55 = vsel %vm8530_vm6, %v5659_v46, %v8309_v54  ;;  %v3673_v52 = vsel %vm8531_vm7, %v5660_v4, %v8317_v22 }
0x517c   :  { %v5668_v0 = vpop.permute.xlu1 %5667  ;;  %v5686_v28 = vpack.i.bf16 %v3673_v52, %v3672_v55  ;;  %v8540_v55 = vld [vmem:[#allocation37_spill] sm:$0xff] }
0x517d   :  { %v5670_v49 = vunpack.i.h.bf16 %v5668_v0  ;;  %v5669_v40 = vunpack.i.l.bf16 %v5668_v0  ;;  %5682 = vrot.lane.b32.xlu0 %v5681_v16, %s6500_s5  ;;  %v8541_v52 = vunpack.i.l.bf16 %v8540_v55 }
0x517e   :  { %5687 = vrot.lane.b32.xlu1 %v5686_v28, %s6490_s22  ;;  %v8542_v28 = vunpack.i.h.bf16 %v8540_v55 }
0x517f   :  { %v4661_v18 = vsel %vm8532_vm8, %v5670_v49, %v8331_v32  ;;  %v4660_v54 = vsel %vm8533_vm9, %v5669_v40, %v8322_v48  ;;  %v4702_v0 = vsel %vm283_vm1, %v7968_v35, %v8541_v52  ;;  %v5052_v35 = vld [vmem:[%s8443_s11] ss:$0 sm:$0xff] }
0x5180   :  { %v5696_v22 = vpack.i.bf16 %v4661_v18, %v4660_v54  ;;  %v5678_v6 = vpop.permute.xlu1 %5677  ;;  %v4703_v49 = vsel %vm283_vm1, %v7963_v41, %v8542_v28 }
0x5181   :  { %v5680_v26 = vunpack.i.h.bf16 %v5678_v6  ;;  %v5679_v44 = vunpack.i.l.bf16 %v5678_v6 }
0x5182   :  { %5697 = vrot.lane.b32.xlu1 %v5696_v22, %s6501_s16  ;;  %v5663_v3 = vpop.permute.xlu0 %5662 }
0x5183   :  { %v5665_v2 = vunpack.i.h.bf16 %v5663_v3  ;;  %v5664_v39 = vunpack.i.l.bf16 %v5663_v3  ;;  %v1411_v53 = vsel %vm8538_vm14, %v5680_v26, %v7906_v38  ;;  %v1410_v59 = vsel %vm8539_vm15, %v5679_v44, %v7897_v58 }
0x5185   :  { %v3662_v32 = vsel %vm8534_vm10, %v5664_v39, %v7955_v36  ;;  %v3663_v48 = vsel %vm8535_vm11, %v5665_v2, %v7950_v42  ;;  %v5752_v36 = vld [vmem:[#allocation14 + $0x70] sm:$0xff]   ;;  %v5754_v42 = vld [vmem:[#allocation14 + $0x78] sm:$0xff]  }
0x5186   :  { %v5691_v37 = vpack.i.bf16 %v3663_v48, %v3662_v32  ;;  %5177 = vmatprep.subr.bf16.mxu1 %v5752_v36 }
0x5187   :  { %5178 = vmatpush3.bf16.msra.mxu1 %v5753_v8 }
0x5188   :  { %5692 = vrot.lane.b32.xlu0 %v5691_v37, %s6490_s22  ;;  %5179 = vmatprep.subr.bf16.mxu1 %v5754_v42 }
0x518b   :  { %5180 = vmatpush3.bf16.msra.mxu1 %v5755_v19 }
0x51eb   :  { %v5673_v56 = vpop.permute.xlu0 %5672 }
0x51ec   :  { %v5675_v10 = vunpack.i.h.bf16 %v5673_v56  ;;  %v5674_v24 = vunpack.i.l.bf16 %v5673_v56 }
0x51ee   :  { %v4651_v23 = vsel %vm8536_vm12, %v5675_v10, %v8289_v62  ;;  %v4650_v5 = vsel %vm8537_vm13, %v5674_v24, %v8294_v14 }
0x51ef   :  { %v5701_v43 = vpack.i.bf16 %v4651_v23, %v4650_v5  ;;  %v5683_v30 = vpop.permute.xlu0 %5682 }
0x51f0   :  { %v5685_v25 = vunpack.i.h.bf16 %v5683_v30  ;;  %v5684_v60 = vunpack.i.l.bf16 %v5683_v30  ;;  %v5688_v31 = vpop.permute.xlu1 %5687 }
0x51f1   :  { %5702 = vrot.lane.b32.xlu0 %v5701_v43, %s6501_s16  ;;  %v5690_v62 = vunpack.i.h.bf16 %v5688_v31  ;;  %v5689_v21 = vunpack.i.l.bf16 %v5688_v31 }
0x51f2   :  { %v4710_v13 = vsel %vm283_vm1, %v1411_v53, %v5685_v25  ;;  %v4709_v14 = vsel %vm283_vm1, %v1410_v59, %v5684_v60 }
0x51f3   :  { %v4711_v12 = vsel %vm2548_vm2, %v4709_v14, %v5689_v21  ;;  %v4712_v27 = vsel %vm2548_vm2, %v4710_v13, %v5690_v62 }
0x51f4   :  { %v5698_v15 = vpop.permute.xlu1 %5697 }
0x51f5   :  { %v5700_v57 = vunpack.i.h.bf16 %v5698_v15  ;;  %v5699_v63 = vunpack.i.l.bf16 %v5698_v15 }
0x51f7   :  { %v4713_v38 = vsel %vm4706_vm3, %v4711_v12, %v5699_v63  ;;  %v4714_v61 = vsel %vm4706_vm3, %v4712_v27, %v5700_v57 }
0x51f8   :  { %v4716_v17 = vpack.c.bf16 %v4714_v61, %v4713_v38 }
0x51fa   :  { %4884 = vmatprep.mubr.bf16.mxu1 %v4716_v17  ;;  %v5693_v58 = vpop.permute.xlu0 %5692 }
0x51fb   :  { %v5695_v16 = vunpack.i.h.bf16 %v5693_v58  ;;  %v5694_v4 = vunpack.i.l.bf16 %v5693_v58 }
0x51fd   :  { %v4705_v50 = vsel %vm2548_vm2, %v4703_v49, %v5695_v16  ;;  %v4704_v45 = vsel %vm2548_vm2, %v4702_v0, %v5694_v4 }
0x5263   :  { %v5703_v46 = vpop.permute.xlu0 %5702 }
0x5264   :  { %v5705_v40 = vunpack.i.h.bf16 %v5703_v46  ;;  %v5704_v34 = vunpack.i.l.bf16 %v5703_v46 }
0x5266   :  { %v4707_v18 = vsel %vm4706_vm3, %v4704_v45, %v5704_v34  ;;  %v4708_v54 = vsel %vm4706_vm3, %v4705_v50, %v5705_v40 }
0x5267   :  { %v4715_v22 = vpack.c.bf16 %v4708_v54, %v4707_v18 }
0x5269   :  { %4885 = vmatmul.mubr.bf16.vlgmr.msra.gmra.mrb[92].mxu1 %v4715_v22 }
0x533c   :  { %v5181_v1 = vpop.f32.mrb[92].mxu1 }
0x533d   :  { %v5182_v20 = vpop.f32.mrb[93].mxu1 }
0x533e   :  { %v5183_v3 = vadd.f32 %v5182_v20, %v5181_v1  ;;  %v5184_v41 = vpop.f32.mrb[94].mxu1 }
0x533f   :  { %v5185_v2 = vpop.f32.mrb[95].mxu1 }
0x5340   :  { %v4887_v39 = vadd.f32 %v5183_v3, %v5052_v35  ;;  %v5186_v33 = vadd.f32 %v5185_v2, %v5184_v41 }
0x5342   :  { %4893 = vst [vmem:[#allocation16] sm:$0xff] %v4887_v39  ;;  %v4890_v32 = vadd.f32 %v5186_v33, %v5052_v35 }
0x5344   :  { %4894 = vst [vmem:[#allocation16 + $0x8] sm:$0xff] %v4890_v32 }
0x5345   :  { %6462 = shalt.err (!%p6459_p12)
}
0x5346   :  { %s6463_s30 = scalar_lea.hbm %s8444_s12, 256 }
0x5347   :  { %p6464_p13 = scmp.ne.s32.totalorder %s8444_s12, %s6463_s30  ;;  %p6467_p0 = scmp.lt.u32.totalorder %s6463_s30, %s8444_s12 }
0x5349   :  { %p6469_p1 = pnand %p6467_p0, %p6464_p13 }
0x534b   :  { %6472 = shalt.err (!%p6469_p1)
}
0x534c   :  { %4906 = dma.vmem_to_hbm [thread:$0]  %s4901_s18, 256, %s8444_s12, [#allocation4], %s6486_s13, %s6486_s13, %s6487_s14  }
0x534d   :  { %6483 = dma.done.wait [#allocation4], 256  }
0x534e   :  { %6484 = vsyncadd [#allocation4], 4294967040 }
0x534f   :  { %4910 = vsyncpa [#allocation3], 1 }
0x5350   :  { %4911 = vsyncpa [#allocation6], 1 }
0x5351   :  { %4912 = vsyncpa [#allocation9], 1 }
0x5352   :  { %4913 = vsyncpa [#allocation12], 1 }
0x5353   :  { %4914 = vsyncpa [#allocation15], 1 }
0x5354   :  { %4915 = vsyncpa [#allocation4], 1 }

</bundles_post_ra>
